<compile_context>
chip_gen: v6e
topology: v6e:2x2x1
jax: 0.10.0
libtpu: 0.0.40
codegen_flags: <defaults>
</compile_context>

<pallas_src>
import jax
import jax.numpy as jnp
from jax.experimental import pallas as pl
from jax.experimental.pallas import tpu as pltpu


# Original (logical) dims.
INPUT_DIM = 256
HIDDEN_IN = [1500, 450]
HIDDEN_OUT = [450, 150]
NUM_CLASSES = 2

# Lane-aligned (padded) dims used inside the kernel.
D_IN = 256
D_H1 = 1536
D_H2 = 512
D_H3 = 256
D_OUT_PAD = 128

_PADDED_IN_DIMS = (D_IN, D_H1, D_H2, D_H3)
_PADDED_OUT_DIMS = (D_H1, D_H2, D_H3, D_OUT_PAD)

MAX_TILE_M = 512  # max batch-tile rows (weights amortized over more rows/step)


def _round_up(n, m):
    return ((n + m - 1) // m) * m


def _choose_tiling(batch, max_tile=MAX_TILE_M):
    """Pick (tile_m, padded_batch) minimizing padded rows.

    tile_m is always a multiple of 16 (bf16 sublane packing) or equal to the
    full padded batch.  When one tile would cover everything and it splits
    cleanly, use two tiles so a 2-TensorCore chip (v7x) can use both cores.
    """
    batch16 = _round_up(batch, 16)
    if batch16 <= max_tile:
        if batch16 >= 32 and batch16 % 32 == 0:
            return batch16 // 2, batch16          # grid of 2 steps
        return batch16, batch16                   # single full-array tile
    best_tile, best_pad = None, None
    t = max_tile
    while t >= 16:
        pad = _round_up(batch16, t)
        if best_pad is None or pad < best_pad:    # ties keep the larger tile
            best_tile, best_pad = t, pad
        t -= 16
    return best_tile, best_pad


def _mlp_kernel(x_ref,
                w0_ref, b0_ref,
                w1_ref, b1_ref,
                w2_ref, b2_ref,
                w3_ref, b3_ref,
                out_ref):
    """Fused 4-layer MLP on one batch tile: bf16 matmuls, f32 MXU accumulate."""
    x = x_ref[...]  # already bf16 (cast host-side)

    h = jnp.dot(x, w0_ref[...], preferred_element_type=jnp.float32) + b0_ref[...]
    h = jnp.maximum(h.astype(jnp.bfloat16), 0.0)

    h = jnp.dot(h, w1_ref[...], preferred_element_type=jnp.float32) + b1_ref[...]
    h = jnp.maximum(h.astype(jnp.bfloat16), 0.0)

    h = jnp.dot(h, w2_ref[...], preferred_element_type=jnp.float32) + b2_ref[...]
    h = jnp.maximum(h.astype(jnp.bfloat16), 0.0)

    # TODO(synk): nn.Dropout(p=0.5) is identity at inference; training-mode
    # dropout (pltpu.prng_random_bits mask) not implemented here.

    logits = jnp.dot(h, w3_ref[...], preferred_element_type=jnp.float32) + b3_ref[...]
    out_ref[...] = logits.astype(out_ref.dtype)


def prepare_params(params):
    """Pad weights/biases to lane-aligned dims; weights bf16, biases f32 (host-side, once)."""
    padded = []
    for (w, b), din, dout in zip(params, _PADDED_IN_DIMS, _PADDED_OUT_DIMS):
        wp = jnp.zeros((din, dout), jnp.bfloat16)
        wp = wp.at[: w.shape[0], : w.shape[1]].set(w.astype(jnp.bfloat16))
        bp = jnp.zeros((1, dout), jnp.float32)
        bp = bp.at[:, : b.shape[1]].set(b.astype(jnp.float32))
        padded.append((wp, bp))
    return tuple(padded)


@jax.jit
def net_forward(x, padded_params):
    """x: (batch, 256); padded_params from prepare_params(). Returns (batch, 2) f32."""
    (w0, b0), (w1, b1), (w2, b2), (w3, b3) = padded_params
    batch = x.shape[0]

    # Cast input to bf16 before the kernel (half the HBM traffic / x buffers).
    x = x.astype(jnp.bfloat16)

    tile_m, padded_batch = _choose_tiling(batch)
    if padded_batch != batch:
        x = jnp.pad(x, ((0, padded_batch - batch), (0, 0)))

    grid = (padded_batch // tile_m,)
    const = lambda i: (0, 0)          # same block every step -> VMEM-resident
    single = pl.Buffered(1)           # weights never change: no double-buffer

    in_specs = [
        pl.BlockSpec((tile_m, D_IN), lambda i: (i, 0)),
        pl.BlockSpec((D_IN, D_H1), const, pipeline_mode=single),
        pl.BlockSpec((1, D_H1), const, pipeline_mode=single),
        pl.BlockSpec((D_H1, D_H2), const, pipeline_mode=single),
        pl.BlockSpec((1, D_H2), const, pipeline_mode=single),
        pl.BlockSpec((D_H2, D_H3), const, pipeline_mode=single),
        pl.BlockSpec((1, D_H3), const, pipeline_mode=single),
        pl.BlockSpec((D_H3, D_OUT_PAD), const, pipeline_mode=single),
        pl.BlockSpec((1, D_OUT_PAD), const, pipeline_mode=single),
    ]
    out_specs = pl.BlockSpec((tile_m, D_OUT_PAD), lambda i: (i, 0))

    flops = 2 * padded_batch * (D_IN * D_H1 + D_H1 * D_H2 + D_H2 * D_H3 + D_H3 * D_OUT_PAD)
    weight_bytes = sum(w.size * w.dtype.itemsize + b.size * b.dtype.itemsize
                       for w, b in padded_params)
    bytes_accessed = (padded_batch * D_IN * 2          # bf16 input
                      + weight_bytes                    # bf16 weights + f32 biases
                      + padded_batch * D_OUT_PAD * 4)   # f32 output

    out = pl.pallas_call(
        _mlp_kernel,
        out_shape=jax.ShapeDtypeStruct((padded_batch, D_OUT_PAD), jnp.float32),
        grid=grid,
        in_specs=in_specs,
        out_specs=out_specs,
        compiler_params=pltpu.CompilerParams(
            dimension_semantics=("parallel",),
            vmem_limit_bytes=32 << 20,
        ),
        cost_estimate=pl.CostEstimate(
            flops=flops, transcendentals=0, bytes_accessed=bytes_accessed),
    )(x, w0, b0, w1, b1, w2, b2, w3, b3)

    # Strip batch padding and the padded logit lanes.
    return out[:batch, :NUM_CLASSES]


def init_params(key):
    """Deterministic init mimicking nn.Linear default (U[-1/sqrt(fan_in), ...])."""
    dims = [INPUT_DIM, HIDDEN_IN[0], HIDDEN_OUT[0], HIDDEN_OUT[1], NUM_CLASSES]
    params = []
    for i in range(len(dims) - 1):
        fan_in, fan_out = dims[i], dims[i + 1]
        key, kw, kb = jax.random.split(key, 3)
        bound = 1.0 / (fan_in ** 0.5)
        w = jax.random.uniform(kw, (fan_in, fan_out), jnp.float32, -bound, bound)
        b = jax.random.uniform(kb, (1, fan_out), jnp.float32, -bound, bound)
        params.append((w, b))
    return tuple(params)


def _reference_forward_f32(x, params):
    """Pure-JAX f32 reference of the original module."""
    h = x.astype(jnp.float32)
    for i, (w, b) in enumerate(params):
        h = h @ w + b
        if i < len(params) - 1:
            h = jnp.maximum(h, 0.0)
    return h


def _reference_forward_bf16(x, padded_params):
    """Pure-JAX reference mirroring the kernel's bf16/f32 mixed-precision math."""
    h = x.astype(jnp.bfloat16)
    for i, (w, b) in enumerate(padded_params):
        h = jnp.dot(h, w, preferred_element_type=jnp.float32) + b
        if i < len(padded_params) - 1:
            h = jnp.maximum(h.astype(jnp.bfloat16), 0.0)
    return h[:, :NUM_CLASSES]


if __name__ == "__main__":
    key = jax.random.PRNGKey(0)
    key, kx = jax.random.split(key)

    batch = 8
    x = jax.random.normal(kx, (batch, INPUT_DIM), jnp.float32)
    params = init_params(key)
    padded_params = prepare_params(params)

    logits = net_forward(x, padded_params)
    logits = jax.block_until_ready(logits)
    assert logits.shape == (batch, NUM_CLASSES)

    # Tight check against a reference that mirrors the kernel's precision.
    ref_bf16 = _reference_forward_bf16(x, padded_params)
    assert jnp.allclose(logits, ref_bf16, atol=1e-2, rtol=1e-2), "mismatch vs bf16 reference"

    # Loose semantic check against the original full-f32 module math.
    ref_f32 = _reference_forward_f32(x, params)
    assert jnp.allclose(logits, ref_f32, atol=1e-1, rtol=5e-2), "mismatch vs f32 reference"

    print("KERNEL_OK")
</pallas_src>

<mosaic_0001>
module attributes {stable_mosaic.version = 11 : i64} {
  func.func @_mlp_kernel(%arg0: i32, %arg1: memref<16x256xbf16, #tpu.memory_space<vmem>>, %arg2: memref<256x1536xbf16, #tpu.memory_space<vmem>>, %arg3: memref<1x1536xf32, #tpu.memory_space<vmem>>, %arg4: memref<1536x512xbf16, #tpu.memory_space<vmem>>, %arg5: memref<1x512xf32, #tpu.memory_space<vmem>>, %arg6: memref<512x256xbf16, #tpu.memory_space<vmem>>, %arg7: memref<1x256xf32, #tpu.memory_space<vmem>>, %arg8: memref<256x128xbf16, #tpu.memory_space<vmem>>, %arg9: memref<1x128xf32, #tpu.memory_space<vmem>>, %arg10: memref<16x128xf32, #tpu.memory_space<vmem>>) attributes {dimension_semantics = [#tpu.dimension_semantics<parallel>], iteration_bounds = array<i64: 1>, scalar_prefetch = 0 : i64, scratch_operands = 0 : i64, tpu.core_type = #tpu.core_type<tc>, window_params = [{transform_indices = @transform_0, window_bounds = array<i64: 16, 256>}, {pipeline_mode = #tpu.pipeline_mode<synchronous>, transform_indices = @transform_1, window_bounds = array<i64: 256, 1536>}, {pipeline_mode = #tpu.pipeline_mode<synchronous>, transform_indices = @transform_2, window_bounds = array<i64: 1, 1536>}, {pipeline_mode = #tpu.pipeline_mode<synchronous>, transform_indices = @transform_3, window_bounds = array<i64: 1536, 512>}, {pipeline_mode = #tpu.pipeline_mode<synchronous>, transform_indices = @transform_4, window_bounds = array<i64: 1, 512>}, {pipeline_mode = #tpu.pipeline_mode<synchronous>, transform_indices = @transform_5, window_bounds = array<i64: 512, 256>}, {pipeline_mode = #tpu.pipeline_mode<synchronous>, transform_indices = @transform_6, window_bounds = array<i64: 1, 256>}, {pipeline_mode = #tpu.pipeline_mode<synchronous>, transform_indices = @transform_7, window_bounds = array<i64: 256, 128>}, {pipeline_mode = #tpu.pipeline_mode<synchronous>, transform_indices = @transform_8, window_bounds = array<i64: 1, 128>}, {transform_indices = @transform_9, window_bounds = array<i64: 16, 128>}]} {
    %c0 = arith.constant 0 : index
    %c0_0 = arith.constant 0 : index
    %0 = vector.load %arg1[%c0, %c0_0] : memref<16x256xbf16, #tpu.memory_space<vmem>>, vector<16x256xbf16>
    %c0_1 = arith.constant 0 : index
    %c0_2 = arith.constant 0 : index
    %1 = vector.load %arg2[%c0_1, %c0_2] : memref<256x1536xbf16, #tpu.memory_space<vmem>>, vector<256x1536xbf16>
    %cst = arith.constant dense<0.000000e+00> : vector<16x1536xf32>
    %2 = tpu.matmul %0, %1, %cst {dimension_numbers = #tpu.dot_dimension_numbers<[1], [0], [0], [1], [0, 0, 1, 1], [], []>} : vector<16x256xbf16>, vector<256x1536xbf16>, vector<16x1536xf32> -> vector<16x1536xf32>
    %c0_3 = arith.constant 0 : index
    %c0_4 = arith.constant 0 : index
    %3 = vector.load %arg3[%c0_3, %c0_4] : memref<1x1536xf32, #tpu.memory_space<vmem>>, vector<1x1536xf32>
    %4 = vector.broadcast %3 : vector<1x1536xf32> to vector<16x1536xf32>
    %5 = arith.addf %2, %4 : vector<16x1536xf32>
    %6 = arith.truncf %5 : vector<16x1536xf32> to vector<16x1536xbf16>
    %cst_5 = arith.constant 0.000000e+00 : bf16
    %7 = vector.broadcast %cst_5 : bf16 to vector<16x1536xbf16>
    %8 = arith.maximumf %6, %7 : vector<16x1536xbf16>
    %c0_6 = arith.constant 0 : index
    %c0_7 = arith.constant 0 : index
    %9 = vector.load %arg4[%c0_6, %c0_7] : memref<1536x512xbf16, #tpu.memory_space<vmem>>, vector<1536x512xbf16>
    %cst_8 = arith.constant dense<0.000000e+00> : vector<16x512xf32>
    %10 = tpu.matmul %8, %9, %cst_8 {dimension_numbers = #tpu.dot_dimension_numbers<[1], [0], [0], [1], [0, 0, 1, 1], [], []>} : vector<16x1536xbf16>, vector<1536x512xbf16>, vector<16x512xf32> -> vector<16x512xf32>
    %c0_9 = arith.constant 0 : index
    %c0_10 = arith.constant 0 : index
    %11 = vector.load %arg5[%c0_9, %c0_10] : memref<1x512xf32, #tpu.memory_space<vmem>>, vector<1x512xf32>
    %12 = vector.broadcast %11 : vector<1x512xf32> to vector<16x512xf32>
    %13 = arith.addf %10, %12 : vector<16x512xf32>
    %14 = arith.truncf %13 : vector<16x512xf32> to vector<16x512xbf16>
    %cst_11 = arith.constant 0.000000e+00 : bf16
    %15 = vector.broadcast %cst_11 : bf16 to vector<16x512xbf16>
    %16 = arith.maximumf %14, %15 : vector<16x512xbf16>
    %c0_12 = arith.constant 0 : index
    %c0_13 = arith.constant 0 : index
    %17 = vector.load %arg6[%c0_12, %c0_13] : memref<512x256xbf16, #tpu.memory_space<vmem>>, vector<512x256xbf16>
    %cst_14 = arith.constant dense<0.000000e+00> : vector<16x256xf32>
    %18 = tpu.matmul %16, %17, %cst_14 {dimension_numbers = #tpu.dot_dimension_numbers<[1], [0], [0], [1], [0, 0, 1, 1], [], []>} : vector<16x512xbf16>, vector<512x256xbf16>, vector<16x256xf32> -> vector<16x256xf32>
    %c0_15 = arith.constant 0 : index
    %c0_16 = arith.constant 0 : index
    %19 = vector.load %arg7[%c0_15, %c0_16] : memref<1x256xf32, #tpu.memory_space<vmem>>, vector<1x256xf32>
    %20 = vector.broadcast %19 : vector<1x256xf32> to vector<16x256xf32>
    %21 = arith.addf %18, %20 : vector<16x256xf32>
    %22 = arith.truncf %21 : vector<16x256xf32> to vector<16x256xbf16>
    %cst_17 = arith.constant 0.000000e+00 : bf16
    %23 = vector.broadcast %cst_17 : bf16 to vector<16x256xbf16>
    %24 = arith.maximumf %22, %23 : vector<16x256xbf16>
    %c0_18 = arith.constant 0 : index
    %c0_19 = arith.constant 0 : index
    %25 = vector.load %arg8[%c0_18, %c0_19] : memref<256x128xbf16, #tpu.memory_space<vmem>>, vector<256x128xbf16>
    %cst_20 = arith.constant dense<0.000000e+00> : vector<16x128xf32>
    %26 = tpu.matmul %24, %25, %cst_20 {dimension_numbers = #tpu.dot_dimension_numbers<[1], [0], [0], [1], [0, 0, 1, 1], [], []>} : vector<16x256xbf16>, vector<256x128xbf16>, vector<16x128xf32> -> vector<16x128xf32>
    %c0_21 = arith.constant 0 : index
    %c0_22 = arith.constant 0 : index
    %27 = vector.load %arg9[%c0_21, %c0_22] : memref<1x128xf32, #tpu.memory_space<vmem>>, vector<1x128xf32>
    %28 = vector.broadcast %27 : vector<1x128xf32> to vector<16x128xf32>
    %29 = arith.addf %26, %28 : vector<16x128xf32>
    %c0_23 = arith.constant 0 : index
    %c0_24 = arith.constant 0 : index
    %30 = vector.load %arg10[%c0_23, %c0_24] : memref<16x128xf32, #tpu.memory_space<vmem>>, vector<16x128xf32>
    tpu.vector_store %arg10[%c0_23, %c0_24], %29 {strides = array<i32>} : memref<16x128xf32, #tpu.memory_space<vmem>>, vector<16x128xf32>,
    return
  }
  func.func @transform_0(%arg0: i32) -> (i32, i32) {
    %c0_i32 = arith.constant 0 : i32
    %c0_i32_0 = arith.constant 0 : i32
    return %arg0, %c0_i32 : i32, i32
  }
  func.func @transform_1(%arg0: i32) -> (i32, i32) {
    %c0_i32 = arith.constant 0 : i32
    %c0_i32_0 = arith.constant 0 : i32
    %c0_i32_1 = arith.constant 0 : i32
    return %c0_i32, %c0_i32_0 : i32, i32
  }
  func.func @transform_2(%arg0: i32) -> (i32, i32) {
    %c0_i32 = arith.constant 0 : i32
    %c0_i32_0 = arith.constant 0 : i32
    %c0_i32_1 = arith.constant 0 : i32
    return %c0_i32, %c0_i32_0 : i32, i32
  }
  func.func @transform_3(%arg0: i32) -> (i32, i32) {
    %c0_i32 = arith.constant 0 : i32
    %c0_i32_0 = arith.constant 0 : i32
    %c0_i32_1 = arith.constant 0 : i32
    return %c0_i32, %c0_i32_0 : i32, i32
  }
  func.func @transform_4(%arg0: i32) -> (i32, i32) {
    %c0_i32 = arith.constant 0 : i32
    %c0_i32_0 = arith.constant 0 : i32
    %c0_i32_1 = arith.constant 0 : i32
    return %c0_i32, %c0_i32_0 : i32, i32
  }
  func.func @transform_5(%arg0: i32) -> (i32, i32) {
    %c0_i32 = arith.constant 0 : i32
    %c0_i32_0 = arith.constant 0 : i32
    %c0_i32_1 = arith.constant 0 : i32
    return %c0_i32, %c0_i32_0 : i32, i32
  }
  func.func @transform_6(%arg0: i32) -> (i32, i32) {
    %c0_i32 = arith.constant 0 : i32
    %c0_i32_0 = arith.constant 0 : i32
    %c0_i32_1 = arith.constant 0 : i32
    return %c0_i32, %c0_i32_0 : i32, i32
  }
  func.func @transform_7(%arg0: i32) -> (i32, i32) {
    %c0_i32 = arith.constant 0 : i32
    %c0_i32_0 = arith.constant 0 : i32
    %c0_i32_1 = arith.constant 0 : i32
    return %c0_i32, %c0_i32_0 : i32, i32
  }
  func.func @transform_8(%arg0: i32) -> (i32, i32) {
    %c0_i32 = arith.constant 0 : i32
    %c0_i32_0 = arith.constant 0 : i32
    %c0_i32_1 = arith.constant 0 : i32
    return %c0_i32, %c0_i32_0 : i32, i32
  }
  func.func @transform_9(%arg0: i32) -> (i32, i32) {
    %c0_i32 = arith.constant 0 : i32
    %c0_i32_0 = arith.constant 0 : i32
    return %arg0, %c0_i32 : i32, i32
  }
}

</mosaic_0001>

<bundles_post_ra>
// kernel: net_forward.1
= control target key start
LH: loop header
LB: loop body
LE: loop exit
PB: predicated region body
PF: predicated region fallthrough
CT: control target
= control target key end

     0   :  { %14 = vsyncpa [#allocation3], 0  ;;  %s7283_s0 = inlined_call_operand.vmem [shape: bf16[16,256], index: 0, kind: input, shape index: {}]   ;;  %s7284_s1 = inlined_call_operand.hbm [shape: bf16[256,1536], index: 1, kind: input, shape index: {}]   ;;  %s7285_s2 = inlined_call_operand.hbm [shape: f32[1,1536], index: 2, kind: input, shape index: {}]   ;;  %s7286_s3 = inlined_call_operand.hbm [shape: bf16[1536,512], index: 3, kind: input, shape index: {}]   ;;  %s7287_s4 = inlined_call_operand.hbm [shape: f32[1,512], index: 4, kind: input, shape index: {}]   ;;  %s7288_s5 = inlined_call_operand.hbm [shape: bf16[512,256], index: 5, kind: input, shape index: {}]   ;;  %s7289_s6 = inlined_call_operand.hbm [shape: f32[1,256], index: 6, kind: input, shape index: {}]   ;;  %s7290_s7 = inlined_call_operand.hbm [shape: bf16[256,128], index: 7, kind: input, shape index: {}]   ;;  %s7291_s8 = inlined_call_operand.hbm [shape: f32[1,128], index: 8, kind: input, shape index: {}]   ;;  %s7292_s9 = inlined_call_operand.vmem [shape: f32[16,128], index: 9, kind: output, shape index: {}]  }
   0x1   :  { %15 = vsyncpa [#allocation5], 0 }
   0x2   :  { %16 = vsyncpa [#allocation8], 0 }
   0x3   :  { %17 = vsyncpa [#allocation11], 0 }
   0x4   :  { %18 = vsyncpa [#allocation14], 0  ;;  %s7014_s30 = smov [#allocation4]   ;;  %s7015_s11 = smov [#allocation7]  }
   0x5   :  { %s39_s10 = sshll.u32 %s7014_s30, 4  ;;  %s61_s12 = sshll.u32 %s7015_s11, 4  ;;  %s40_s10 = int_to_ptr.vmem [resolvable:$true] %s39_s10  ;;  %s62_s12 = int_to_ptr.vmem [resolvable:$true] %s61_s12 }
   0x6   :  { %s6852_s13 = scalar_lea.vmem %s40_s10, 192  ;;  %p6857_p1 = scmp.lt.s32.totalorder %s40_s10, %s40_s10 }
   0x7   :  { %p6853_p0 = scmp.ne.s32.totalorder %s40_s10, %s6852_s13  ;;  %p6858_p2 = scmp.lt.s32.totalorder %s6852_s13, %s6852_s13 }
   0x9   :  { %p6859_p3 = por %p6858_p2, %p6857_p1 }
   0xb   :  { %p6860_p4 = pnand %p6859_p3, %p6853_p0 }
   0xd   :  { %6863 = shalt.err (!%p6860_p4)
}
   0xe   :  { %42 = dma.hbm_to_vmem [thread:$0]  %s7285_s2, 192, %s40_s10, [#allocation5]  }
   0xf   :  { %s6872_s16 = scalar_lea.vmem %s62_s12, 64  ;;  %p6877_p6 = scmp.lt.s32.totalorder %s62_s12, %s62_s12 }
  0x10   :  { %p6873_p5 = scmp.ne.s32.totalorder %s62_s12, %s6872_s16  ;;  %p6878_p7 = scmp.lt.s32.totalorder %s6872_s16, %s6872_s16 }
  0x12   :  { %p6879_p8 = por %p6878_p7, %p6877_p6 }
  0x14   :  { %p6880_p9 = pnand %p6879_p8, %p6873_p5 }
  0x16   :  { %6883 = shalt.err (!%p6880_p9)
}
  0x17   :  { %64 = dma.hbm_to_vmem [thread:$0]  %s7287_s4, 64, %s62_s12, [#allocation8]  }
  0x18   :  { %s7016_s19 = smov [#allocation10]   ;;  %s7017_s21 = smov [#allocation2]  }
  0x19   :  { %s83_s20 = sshll.u32 %s7016_s19, 4  ;;  %s26_s22 = sshll.u32 %s7017_s21, 4  ;;  %s84_s20 = int_to_ptr.vmem [resolvable:$true] %s83_s20  ;;  %s27_s22 = int_to_ptr.vmem [resolvable:$true] %s26_s22 }
  0x1a   :  { %s6892_s23 = scalar_lea.vmem %s84_s20, 32  ;;  %p6897_p11 = scmp.lt.s32.totalorder %s84_s20, %s84_s20 }
  0x1b   :  { %p6893_p10 = scmp.ne.s32.totalorder %s84_s20, %s6892_s23  ;;  %p6898_p12 = scmp.lt.s32.totalorder %s6892_s23, %s6892_s23 }
  0x1d   :  { %p6899_p13 = por %p6898_p12, %p6897_p11 }
  0x1f   :  { %p6900_p0 = pnand %p6899_p13, %p6893_p10 }
  0x21   :  { %6903 = shalt.err (!%p6900_p0)
}
  0x22   :  { %86 = dma.hbm_to_vmem [thread:$0]  %s7289_s6, 32, %s84_s20, [#allocation11]  }
  0x23   :  { %s6912_s25 = scalar_lea.vmem %s27_s22, 24576  ;;  %p6917_p2 = scmp.lt.s32.totalorder %s27_s22, %s27_s22 }
  0x24   :  { %p6913_p1 = scmp.ne.s32.totalorder %s27_s22, %s6912_s25  ;;  %p6918_p3 = scmp.lt.s32.totalorder %s6912_s25, %s6912_s25 }
  0x26   :  { %p6919_p4 = por %p6918_p3, %p6917_p2 }
  0x28   :  { %p6920_p5 = pnand %p6919_p4, %p6913_p1 }
  0x2a   :  { %6923 = shalt.err (!%p6920_p5)
}
  0x2b   :  { %s7018_s4 = smov 768   ;;  %s7019_s26 = smov 48  }
  0x2c   :  { %32 = dma.hbm_to_vmem [thread:$0]  %s7284_s1, 24576, %s27_s22, [#allocation3], %s7018_s4, %s7018_s4, %s7019_s26  }
  0x2d   :  { %s7020_s29 = smov [#allocation6]  }
  0x2e   :  { %s48_s30 = sshll.u32 %s7020_s29, 4  ;;  %s49_s30 = int_to_ptr.vmem [resolvable:$true] %s48_s30 }
  0x2f   :  { %s6932_s10 = scalar_lea.vmem %s49_s30, 49152  ;;  %p6937_p7 = scmp.lt.s32.totalorder %s49_s30, %s49_s30 }
  0x30   :  { %p6933_p6 = scmp.ne.s32.totalorder %s49_s30, %s6932_s10  ;;  %p6938_p8 = scmp.lt.s32.totalorder %s6932_s10, %s6932_s10 }
  0x32   :  { %p6939_p9 = por %p6938_p8, %p6937_p7 }
  0x34   :  { %p6940_p10 = pnand %p6939_p9, %p6933_p6 }
  0x36   :  { %6943 = shalt.err (!%p6940_p10)
}
  0x37   :  { %s7021_s6 = smov 256   ;;  %s7022_s11 = smov 16  }
  0x38   :  { %54 = dma.hbm_to_vmem [thread:$0]  %s7286_s3, 49152, %s49_s30, [#allocation5], %s7021_s6, %s7021_s6, %s7022_s11  }
  0x39   :  { %s7023_s14 = smov [#allocation9]  }
  0x3a   :  { %s70_s15 = sshll.u32 %s7023_s14, 4  ;;  %s71_s15 = int_to_ptr.vmem [resolvable:$true] %s70_s15 }
  0x3b   :  { %s6952_s1 = scalar_lea.vmem %s71_s15, 8192  ;;  %p6957_p12 = scmp.lt.s32.totalorder %s71_s15, %s71_s15 }
  0x3c   :  { %p6953_p11 = scmp.ne.s32.totalorder %s71_s15, %s6952_s1  ;;  %p6958_p13 = scmp.lt.s32.totalorder %s6952_s1, %s6952_s1 }
  0x3e   :  { %p6959_p0 = por %p6958_p13, %p6957_p12 }
  0x40   :  { %p6960_p1 = pnand %p6959_p0, %p6953_p11 }
  0x42   :  { %6963 = shalt.err (!%p6960_p1)
}
  0x43   :  { %s7024_s16 = smov 128   ;;  %s7025_s17 = smov 8  }
  0x44   :  { %76 = dma.hbm_to_vmem [thread:$0]  %s7288_s5, 8192, %s71_s15, [#allocation8], %s7024_s16, %s7024_s16, %s7025_s17  }
  0x45   :  { %s7026_s20 = smov [#allocation12]  }
  0x46   :  { %s92_s21 = sshll.u32 %s7026_s20, 4  ;;  %s93_s21 = int_to_ptr.vmem [resolvable:$true] %s92_s21 }
  0x47   :  { %s6972_s3 = scalar_lea.vmem %s93_s21, 2048  ;;  %p6977_p3 = scmp.lt.s32.totalorder %s93_s21, %s93_s21 }
  0x48   :  { %p6973_p2 = scmp.ne.s32.totalorder %s93_s21, %s6972_s3  ;;  %p6978_p4 = scmp.lt.s32.totalorder %s6972_s3, %s6972_s3 }
  0x4a   :  { %p6979_p5 = por %p6978_p4, %p6977_p3 }
  0x4c   :  { %p6980_p6 = pnand %p6979_p5, %p6973_p2 }
  0x4e   :  { %6983 = shalt.err (!%p6980_p6)
}
  0x4f   :  { %s7027_s22 = smov 64   ;;  %s7028_s23 = smov 4  }
  0x50   :  { %98 = dma.hbm_to_vmem [thread:$0]  %s7290_s7, 2048, %s93_s21, [#allocation11], %s7027_s22, %s7027_s22, %s7028_s23  }
  0x51   :  { %s7029_s25 = smov [#allocation13]  }
  0x52   :  { %s105_s4 = sshll.u32 %s7029_s25, 4  ;;  %s106_s4 = int_to_ptr.vmem [resolvable:$true] %s105_s4 }
  0x53   :  { %s6992_s5 = scalar_lea.vmem %s106_s4, 16  ;;  %s6996_s26 = scalar_lea.vmem %s106_s4, 32 }
  0x54   :  { %p6993_p7 = scmp.ne.s32.totalorder %s106_s4, %s6992_s5  ;;  %p6997_p8 = scmp.lt.s32.totalorder %s106_s4, %s106_s4 }
  0x55   :  { %p6998_p9 = scmp.lt.s32.totalorder %s6996_s26, %s6992_s5 }
  0x57   :  { %p6999_p10 = por %p6998_p9, %p6997_p8 }
  0x59   :  { %p7000_p11 = pnand %p6999_p10, %p6993_p7 }
  0x5b   :  { %7003 = shalt.err (!%p7000_p11)
}
  0x5c   :  { %108 = dma.hbm_to_vmem [thread:$0]  %s7291_s8, 16, %s106_s4, [#allocation14]  }
  0x5d   :  { %7004 = dma.done.wait [#allocation3], 24576  }
  0x5e   :  { %7005 = vsyncadd [#allocation3], 4294942720 }
  0x5f   :  { %7006 = dma.done.wait [#allocation5], 49344  }
  0x60   :  { %7007 = vsyncadd [#allocation5], 4294917952 }
  0x61   :  { %7008 = dma.done.wait [#allocation8], 8256  }
  0x62   :  { %7009 = vsyncadd [#allocation8], 4294959040 }
  0x63   :  { %7010 = dma.done.wait [#allocation11], 2080  }
  0x64   :  { %7011 = vsyncadd [#allocation11], 4294965216 }
  0x65   :  { %7012 = dma.done.wait [#allocation14], 16  }
  0x66   :  { %7013 = vsyncadd [#allocation14], 4294967280  ;;  %v5865_v0 = vld [vmem:[#allocation2 + $0x2a4] ss:$48 sps:$4 sm:$0xff]   ;;  %v5867_v1 = vld [vmem:[#allocation2 + $0x2ac] ss:$48 sps:$4 sm:$0xff]  }
  0x67   :  { %1362 = vmatprep.subr.bf16.mxu0 %v5865_v0  ;;  %v5869_v2 = vld [vmem:[#allocation2 + $0x2a0] ss:$48 sps:$4 sm:$0xff]   ;;  %v5870_v3 = vld [vmem:[#allocation2 + $0x2a8] ss:$48 sps:$4 sm:$0xff]   ;;  %1405 = vmatprep.subr.bf16.mxu1 %v5867_v1  ;;  %v5871_v4 = vld [vmem:[#allocation2 + $0x244] ss:$48 sps:$4 sm:$0xff]  }
  0x68   :  { %1363 = vmatpush1.bf16.msra.mxu0 %v5869_v2  ;;  %1406 = vmatpush1.bf16.msra.mxu1 %v5870_v3  ;;  %v5873_v5 = vld [vmem:[#allocation2 + $0x24c] ss:$48 sps:$4 sm:$0xff]   ;;  %v5875_v6 = vld [vmem:[#allocation2 + $0x240] ss:$48 sps:$4 sm:$0xff]   ;;  %v5876_v7 = vld [vmem:[#allocation2 + $0x248] ss:$48 sps:$4 sm:$0xff]  }
  0x69   :  { %1364 = vmatprep.subr.bf16.mxu0 %v5871_v4  ;;  %1407 = vmatprep.subr.bf16.mxu1 %v5873_v5  ;;  %v5877_v8 = vld [vmem:[#allocation2 + $0x1e4] ss:$48 sps:$4 sm:$0xff]   ;;  %v5879_v9 = vld [vmem:[#allocation2 + $0x1ec] ss:$48 sps:$4 sm:$0xff]   ;;  %v5881_v10 = vld [vmem:[#allocation2 + $0x1e0] ss:$48 sps:$4 sm:$0xff]  }
  0x6a   :  { %v5882_v11 = vld [vmem:[#allocation2 + $0x1e8] ss:$48 sps:$4 sm:$0xff]   ;;  %v5883_v12 = vld [vmem:[#allocation2 + $0x184] ss:$48 sps:$4 sm:$0xff]   ;;  %v5885_v13 = vld [vmem:[#allocation2 + $0x18c] ss:$48 sps:$4 sm:$0xff]  }
  0x6b   :  { %v5887_v14 = vld [vmem:[#allocation2 + $0x180] ss:$48 sps:$4 sm:$0xff]   ;;  %v5888_v15 = vld [vmem:[#allocation2 + $0x188] ss:$48 sps:$4 sm:$0xff]   ;;  %v5889_v16 = vld [vmem:[#allocation2 + $0x124] ss:$48 sps:$4 sm:$0xff]  }
  0x6c   :  { %1365 = vmatpush1.bf16.msra.mxu0 %v5875_v6  ;;  %1408 = vmatpush1.bf16.msra.mxu1 %v5876_v7  ;;  %v5891_v17 = vld [vmem:[#allocation2 + $0x12c] ss:$48 sps:$4 sm:$0xff]   ;;  %v5893_v18 = vld [vmem:[#allocation2 + $0x120] ss:$48 sps:$4 sm:$0xff]   ;;  %v5894_v19 = vld [vmem:[#allocation2 + $0x128] ss:$48 sps:$4 sm:$0xff]  }
  0x6d   :  { %1366 = vmatprep.subr.bf16.mxu0 %v5877_v8  ;;  %1409 = vmatprep.subr.bf16.mxu1 %v5879_v9  ;;  %v5895_v20 = vld [vmem:[#allocation2 + $0xc4] ss:$48 sps:$4 sm:$0xff]   ;;  %v5897_v21 = vld [vmem:[#allocation2 + $0xcc] ss:$48 sps:$4 sm:$0xff]   ;;  %v5899_v22 = vld [vmem:[#allocation2 + $0xc0] ss:$48 sps:$4 sm:$0xff]  }
  0x6e   :  { %v5900_v23 = vld [vmem:[#allocation2 + $0xc8] ss:$48 sps:$4 sm:$0xff]   ;;  %v5901_v24 = vld [vmem:[#allocation2 + $0x64] ss:$48 sps:$4 sm:$0xff]   ;;  %v5903_v25 = vld [vmem:[#allocation2 + $0x6c] ss:$48 sps:$4 sm:$0xff]  }
  0x6f   :  { %v5905_v26 = vld [vmem:[#allocation2 + $0x60] ss:$48 sps:$4 sm:$0xff]   ;;  %v5906_v27 = vld [vmem:[#allocation2 + $0x68] ss:$48 sps:$4 sm:$0xff]   ;;  %v5907_v28 = vld [vmem:[#allocation2 + $0x4] ss:$48 sps:$4 sm:$0xff]  }
  0x70   :  { %1367 = vmatpush1.bf16.msra.mxu0 %v5881_v10  ;;  %1410 = vmatpush1.bf16.msra.mxu1 %v5882_v11  ;;  %v5909_v29 = vld [vmem:[#allocation2 + $0xc] ss:$48 sps:$4 sm:$0xff]   ;;  %v5911_v30 = vld [vmem:[#allocation2] ss:$48 sps:$4 sm:$0xff]   ;;  %v5912_v31 = vld [vmem:[#allocation2 + $0x8] ss:$48 sps:$4 sm:$0xff]  }
  0x71   :  { %1368 = vmatprep.subr.bf16.mxu0 %v5883_v12  ;;  %1411 = vmatprep.subr.bf16.mxu1 %v5885_v13  ;;  %v5913_v32 = vld [vmem:[#allocation2 + $0x5a4] ss:$48 sps:$4 sm:$0xff]   ;;  %v5915_v33 = vld [vmem:[#allocation2 + $0x5ac] ss:$48 sps:$4 sm:$0xff]   ;;  %v5917_v34 = vld [vmem:[#allocation2 + $0x5a0] ss:$48 sps:$4 sm:$0xff]  }
  0x72   :  { %v5918_v35 = vld [vmem:[#allocation2 + $0x5a8] ss:$48 sps:$4 sm:$0xff]   ;;  %v5919_v36 = vld [vmem:[#allocation2 + $0x544] ss:$48 sps:$4 sm:$0xff]   ;;  %v5921_v37 = vld [vmem:[#allocation2 + $0x54c] ss:$48 sps:$4 sm:$0xff]  }
  0x73   :  { %v5923_v38 = vld [vmem:[#allocation2 + $0x540] ss:$48 sps:$4 sm:$0xff]   ;;  %v5924_v39 = vld [vmem:[#allocation2 + $0x548] ss:$48 sps:$4 sm:$0xff]   ;;  %v5925_v40 = vld [vmem:[#allocation2 + $0x4e4] ss:$48 sps:$4 sm:$0xff]  }
  0x74   :  { %1369 = vmatpush1.bf16.msra.mxu0 %v5887_v14  ;;  %1412 = vmatpush1.bf16.msra.mxu1 %v5888_v15  ;;  %v5927_v41 = vld [vmem:[#allocation2 + $0x4ec] ss:$48 sps:$4 sm:$0xff]   ;;  %v5929_v42 = vld [vmem:[#allocation2 + $0x4e0] ss:$48 sps:$4 sm:$0xff]   ;;  %v5930_v43 = vld [vmem:[#allocation2 + $0x4e8] ss:$48 sps:$4 sm:$0xff]  }
  0x75   :  { %1370 = vmatprep.subr.bf16.mxu0 %v5889_v16  ;;  %1413 = vmatprep.subr.bf16.mxu1 %v5891_v17  ;;  %v5931_v44 = vld [vmem:[#allocation2 + $0x484] ss:$48 sps:$4 sm:$0xff]   ;;  %v5933_v45 = vld [vmem:[#allocation2 + $0x48c] ss:$48 sps:$4 sm:$0xff]   ;;  %v5935_v46 = vld [vmem:[#allocation2 + $0x480] ss:$48 sps:$4 sm:$0xff]  }
  0x76   :  { %v5936_v47 = vld [vmem:[#allocation2 + $0x488] ss:$48 sps:$4 sm:$0xff]   ;;  %v7108_v48 = vld [vmem:[%s7283_s0 + $0x4] ss:$8 sps:$4 sm:$0xff]   ;;  %v5941_v51 = vld [vmem:[#allocation2 + $0x420] ss:$48 sps:$4 sm:$0xff]  }
  0x77   :  { %v5937_v49 = vld [vmem:[#allocation2 + $0x424] ss:$48 sps:$4 sm:$0xff]   ;;  %v5939_v50 = vld [vmem:[#allocation2 + $0x42c] ss:$48 sps:$4 sm:$0xff]   ;;  %1394 = vmatprep.mubr.bf16.mxu0 %v7108_v48  ;;  %1437 = vmatprep.mubr.bf16.mxu1 %v7108_v48  ;;  %v5942_v52 = vld [vmem:[#allocation2 + $0x428] ss:$48 sps:$4 sm:$0xff]  }
  0x78   :  { %1371 = vmatpush1.bf16.msra.mxu0 %v5893_v18  ;;  %1414 = vmatpush1.bf16.msra.mxu1 %v5894_v19  ;;  %v5943_v53 = vld [vmem:[#allocation2 + $0x3c4] ss:$48 sps:$4 sm:$0xff]   ;;  %v5945_v54 = vld [vmem:[#allocation2 + $0x3cc] ss:$48 sps:$4 sm:$0xff]   ;;  %v5947_v55 = vld [vmem:[#allocation2 + $0x3c0] ss:$48 sps:$4 sm:$0xff]  }
  0x79   :  { %1372 = vmatprep.subr.bf16.mxu0 %v5895_v20  ;;  %1415 = vmatprep.subr.bf16.mxu1 %v5897_v21  ;;  %v5948_v56 = vld [vmem:[#allocation2 + $0x3c8] ss:$48 sps:$4 sm:$0xff]   ;;  %v5949_v57 = vld [vmem:[#allocation2 + $0x364] ss:$48 sps:$4 sm:$0xff]   ;;  %v5951_v58 = vld [vmem:[#allocation2 + $0x36c] ss:$48 sps:$4 sm:$0xff]  }
  0x7a   :  { %v5953_v59 = vld [vmem:[#allocation2 + $0x360] ss:$48 sps:$4 sm:$0xff]   ;;  %v5954_v60 = vld [vmem:[#allocation2 + $0x368] ss:$48 sps:$4 sm:$0xff]   ;;  %v5955_v61 = vld [vmem:[#allocation2 + $0x304] ss:$48 sps:$4 sm:$0xff]  }
  0x7b   :  { %v5957_v62 = vld [vmem:[#allocation2 + $0x30c] ss:$48 sps:$4 sm:$0xff]   ;;  %v5959_v63 = vld [vmem:[#allocation2 + $0x300] ss:$48 sps:$4 sm:$0xff]   ;;  %v5960_v0 = vld [vmem:[#allocation2 + $0x308] ss:$48 sps:$4 sm:$0xff]  }
  0x7c   :  { %1373 = vmatpush1.bf16.msra.mxu0 %v5899_v22  ;;  %1416 = vmatpush1.bf16.msra.mxu1 %v5900_v23  ;;  %v5966_v1 = vld [vmem:[#allocation2 + $0x2b4] ss:$48 sps:$4 sm:$0xff]   ;;  %v5969_v2 = vld [vmem:[#allocation2 + $0x2bc] ss:$48 sps:$4 sm:$0xff]   ;;  %v7115_v3 = vld [vmem:[%s7283_s0] ss:$8 sps:$4 sm:$0xff]  }
  0x7d   :  { %1374 = vmatprep.subr.bf16.mxu0 %v5901_v24  ;;  %1417 = vmatprep.subr.bf16.mxu1 %v5903_v25  ;;  %v5964_v4 = vld [vmem:[#allocation2 + $0x2b0] ss:$48 sps:$4 sm:$0xff]   ;;  %v5967_v5 = vld [vmem:[#allocation2 + $0x2b8] ss:$48 sps:$4 sm:$0xff]   ;;  %v5972_v6 = vld [vmem:[#allocation2 + $0x254] ss:$48 sps:$4 sm:$0xff]  }
  0x7e   :  { %v5975_v7 = vld [vmem:[#allocation2 + $0x25c] ss:$48 sps:$4 sm:$0xff]   ;;  %v5970_v8 = vld [vmem:[#allocation2 + $0x250] ss:$48 sps:$4 sm:$0xff]   ;;  %v5973_v9 = vld [vmem:[#allocation2 + $0x258] ss:$48 sps:$4 sm:$0xff]  }
  0x7f   :  { %v5978_v10 = vld [vmem:[#allocation2 + $0x1f4] ss:$48 sps:$4 sm:$0xff]   ;;  %v5981_v11 = vld [vmem:[#allocation2 + $0x1fc] ss:$48 sps:$4 sm:$0xff]   ;;  %v5976_v12 = vld [vmem:[#allocation2 + $0x1f0] ss:$48 sps:$4 sm:$0xff]  }
  0x80   :  { %1375 = vmatpush1.bf16.msra.mxu0 %v5905_v26  ;;  %1418 = vmatpush1.bf16.msra.mxu1 %v5906_v27  ;;  %v5979_v13 = vld [vmem:[#allocation2 + $0x1f8] ss:$48 sps:$4 sm:$0xff]   ;;  %v5984_v14 = vld [vmem:[#allocation2 + $0x194] ss:$48 sps:$4 sm:$0xff]   ;;  %v5987_v15 = vld [vmem:[#allocation2 + $0x19c] ss:$48 sps:$4 sm:$0xff]  }
  0x81   :  { %1376 = vmatprep.subr.bf16.mxu0 %v5907_v28  ;;  %1419 = vmatprep.subr.bf16.mxu1 %v5909_v29  ;;  %v5982_v16 = vld [vmem:[#allocation2 + $0x190] ss:$48 sps:$4 sm:$0xff]   ;;  %v5985_v17 = vld [vmem:[#allocation2 + $0x198] ss:$48 sps:$4 sm:$0xff]   ;;  %v5990_v18 = vld [vmem:[#allocation2 + $0x134] ss:$48 sps:$4 sm:$0xff]  }
  0x82   :  { %v5993_v19 = vld [vmem:[#allocation2 + $0x13c] ss:$48 sps:$4 sm:$0xff]   ;;  %v5988_v20 = vld [vmem:[#allocation2 + $0x130] ss:$48 sps:$4 sm:$0xff]   ;;  %v5991_v21 = vld [vmem:[#allocation2 + $0x138] ss:$48 sps:$4 sm:$0xff]  }
  0x83   :  { %v5996_v22 = vld [vmem:[#allocation2 + $0xd4] ss:$48 sps:$4 sm:$0xff]   ;;  %v5999_v23 = vld [vmem:[#allocation2 + $0xdc] ss:$48 sps:$4 sm:$0xff]   ;;  %v5994_v24 = vld [vmem:[#allocation2 + $0xd0] ss:$48 sps:$4 sm:$0xff]  }
  0x84   :  { %1377 = vmatpush1.bf16.msra.mxu0 %v5911_v30  ;;  %1420 = vmatpush1.bf16.msra.mxu1 %v5912_v31  ;;  %v5997_v25 = vld [vmem:[#allocation2 + $0xd8] ss:$48 sps:$4 sm:$0xff]   ;;  %v6002_v26 = vld [vmem:[#allocation2 + $0x74] ss:$48 sps:$4 sm:$0xff]   ;;  %v6005_v27 = vld [vmem:[#allocation2 + $0x7c] ss:$48 sps:$4 sm:$0xff]  }
  0x85   :  { %1378 = vmatprep.subr.bf16.mxu0 %v5913_v32  ;;  %1421 = vmatprep.subr.bf16.mxu1 %v5915_v33  ;;  %v6000_v28 = vld [vmem:[#allocation2 + $0x70] ss:$48 sps:$4 sm:$0xff]   ;;  %v6003_v29 = vld [vmem:[#allocation2 + $0x78] ss:$48 sps:$4 sm:$0xff]   ;;  %v6008_v30 = vld [vmem:[#allocation2 + $0x14] ss:$48 sps:$4 sm:$0xff]  }
  0x86   :  { %v6011_v31 = vld [vmem:[#allocation2 + $0x1c] ss:$48 sps:$4 sm:$0xff]   ;;  %v6006_v32 = vld [vmem:[#allocation2 + $0x10] ss:$48 sps:$4 sm:$0xff]   ;;  %v6009_v33 = vld [vmem:[#allocation2 + $0x18] ss:$48 sps:$4 sm:$0xff]  }
  0x88   :  { %1379 = vmatpush2.bf16.msra.mxu0 %v5917_v34  ;;  %1422 = vmatpush2.bf16.msra.mxu1 %v5918_v35  ;;  %v6014_v34 = vld [vmem:[#allocation2 + $0x5b4] ss:$48 sps:$4 sm:$0xff]   ;;  %v6017_v35 = vld [vmem:[#allocation2 + $0x5bc] ss:$48 sps:$4 sm:$0xff]  }
  0x89   :  { %1380 = vmatprep.subr.bf16.mxu0 %v5919_v36  ;;  %1423 = vmatprep.subr.bf16.mxu1 %v5921_v37  ;;  %v6012_v36 = vld [vmem:[#allocation2 + $0x5b0] ss:$48 sps:$4 sm:$0xff]   ;;  %v6015_v37 = vld [vmem:[#allocation2 + $0x5b8] ss:$48 sps:$4 sm:$0xff]  }
  0x8c   :  { %1381 = vmatpush2.bf16.msra.mxu0 %v5923_v38  ;;  %1424 = vmatpush2.bf16.msra.mxu1 %v5924_v39  ;;  %v6020_v38 = vld [vmem:[#allocation2 + $0x554] ss:$48 sps:$4 sm:$0xff]   ;;  %v6023_v39 = vld [vmem:[#allocation2 + $0x55c] ss:$48 sps:$4 sm:$0xff]  }
  0x8d   :  { %1382 = vmatprep.subr.bf16.mxu0 %v5925_v40  ;;  %1425 = vmatprep.subr.bf16.mxu1 %v5927_v41  ;;  %v6018_v40 = vld [vmem:[#allocation2 + $0x550] ss:$48 sps:$4 sm:$0xff]   ;;  %v6021_v41 = vld [vmem:[#allocation2 + $0x558] ss:$48 sps:$4 sm:$0xff]  }
  0x90   :  { %1383 = vmatpush2.bf16.msra.mxu0 %v5929_v42  ;;  %1426 = vmatpush2.bf16.msra.mxu1 %v5930_v43  ;;  %v6026_v42 = vld [vmem:[#allocation2 + $0x4f4] ss:$48 sps:$4 sm:$0xff]   ;;  %v6029_v43 = vld [vmem:[#allocation2 + $0x4fc] ss:$48 sps:$4 sm:$0xff]  }
  0x91   :  { %1384 = vmatprep.subr.bf16.mxu0 %v5931_v44  ;;  %1427 = vmatprep.subr.bf16.mxu1 %v5933_v45  ;;  %v6024_v44 = vld [vmem:[#allocation2 + $0x4f0] ss:$48 sps:$4 sm:$0xff]   ;;  %v6027_v45 = vld [vmem:[#allocation2 + $0x4f8] ss:$48 sps:$4 sm:$0xff]  }
  0x94   :  { %1385 = vmatpush2.bf16.msra.mxu0 %v5935_v46  ;;  %1428 = vmatpush2.bf16.msra.mxu1 %v5936_v47  ;;  %v6032_v46 = vld [vmem:[#allocation2 + $0x494] ss:$48 sps:$4 sm:$0xff]   ;;  %v6035_v47 = vld [vmem:[#allocation2 + $0x49c] ss:$48 sps:$4 sm:$0xff]  }
  0x95   :  { %1386 = vmatprep.subr.bf16.mxu0 %v5937_v49  ;;  %1429 = vmatprep.subr.bf16.mxu1 %v5939_v50  ;;  %v6030_v49 = vld [vmem:[#allocation2 + $0x490] ss:$48 sps:$4 sm:$0xff]   ;;  %v6033_v50 = vld [vmem:[#allocation2 + $0x498] ss:$48 sps:$4 sm:$0xff]  }
  0x98   :  { %1387 = vmatpush2.bf16.msra.mxu0 %v5941_v51  ;;  %1430 = vmatpush2.bf16.msra.mxu1 %v5942_v52  ;;  %v6038_v51 = vld [vmem:[#allocation2 + $0x434] ss:$48 sps:$4 sm:$0xff]   ;;  %v6041_v52 = vld [vmem:[#allocation2 + $0x43c] ss:$48 sps:$4 sm:$0xff]  }
  0x99   :  { %1388 = vmatprep.subr.bf16.mxu0 %v5943_v53  ;;  %1431 = vmatprep.subr.bf16.mxu1 %v5945_v54  ;;  %v6036_v53 = vld [vmem:[#allocation2 + $0x430] ss:$48 sps:$4 sm:$0xff]   ;;  %v6039_v54 = vld [vmem:[#allocation2 + $0x438] ss:$48 sps:$4 sm:$0xff]  }
  0x9c   :  { %1389 = vmatpush2.bf16.msra.mxu0 %v5947_v55  ;;  %1432 = vmatpush2.bf16.msra.mxu1 %v5948_v56  ;;  %v6044_v55 = vld [vmem:[#allocation2 + $0x3d4] ss:$48 sps:$4 sm:$0xff]   ;;  %v6047_v56 = vld [vmem:[#allocation2 + $0x3dc] ss:$48 sps:$4 sm:$0xff]  }
  0x9d   :  { %1390 = vmatprep.subr.bf16.mxu0 %v5949_v57  ;;  %1433 = vmatprep.subr.bf16.mxu1 %v5951_v58  ;;  %v6042_v57 = vld [vmem:[#allocation2 + $0x3d0] ss:$48 sps:$4 sm:$0xff]   ;;  %v6045_v58 = vld [vmem:[#allocation2 + $0x3d8] ss:$48 sps:$4 sm:$0xff]  }
  0xa0   :  { %1391 = vmatpush2.bf16.msra.mxu0 %v5953_v59  ;;  %1434 = vmatpush2.bf16.msra.mxu1 %v5954_v60  ;;  %v6050_v59 = vld [vmem:[#allocation2 + $0x374] ss:$48 sps:$4 sm:$0xff]   ;;  %v6053_v60 = vld [vmem:[#allocation2 + $0x37c] ss:$48 sps:$4 sm:$0xff]  }
  0xa1   :  { %1392 = vmatprep.subr.bf16.mxu0 %v5955_v61  ;;  %1435 = vmatprep.subr.bf16.mxu1 %v5957_v62  ;;  %v6048_v61 = vld [vmem:[#allocation2 + $0x370] ss:$48 sps:$4 sm:$0xff]   ;;  %v6051_v62 = vld [vmem:[#allocation2 + $0x378] ss:$48 sps:$4 sm:$0xff]  }
  0xa4   :  { %1393 = vmatpush2.bf16.msra.mxu0 %v5959_v63  ;;  %1436 = vmatpush2.bf16.msra.mxu1 %v5960_v0  ;;  %v6056_v63 = vld [vmem:[#allocation2 + $0x314] ss:$48 sps:$4 sm:$0xff]   ;;  %v6059_v0 = vld [vmem:[#allocation2 + $0x31c] ss:$48 sps:$4 sm:$0xff]  }
  0xa5   :  { %1448 = vmatprep.subr.bf16.mxu0 %v5966_v1  ;;  %1491 = vmatprep.subr.bf16.mxu1 %v5969_v2  ;;  %v6054_v1 = vld [vmem:[#allocation2 + $0x310] ss:$48 sps:$4 sm:$0xff]   ;;  %v6057_v2 = vld [vmem:[#allocation2 + $0x318] ss:$48 sps:$4 sm:$0xff]  }
  0xa7   :  { %1395 = vmatmul.mubr.bf16.vlgmr.msra.gmra.mxu0 %v7115_v3  ;;  %1438 = vmatmul.mubr.bf16.vlgmr.msra.gmra.mxu1 %v7115_v3 }
  0xa8   :  { %1449 = vmatpush1.bf16.msra.mxu0 %v5964_v4  ;;  %1492 = vmatpush1.bf16.msra.mxu1 %v5967_v5  ;;  %v6062_v4 = vld [vmem:[#allocation2 + $0x2c4] ss:$48 sps:$4 sm:$0xff]   ;;  %v6065_v5 = vld [vmem:[#allocation2 + $0x2cc] ss:$48 sps:$4 sm:$0xff]  }
  0xa9   :  { %1450 = vmatprep.subr.bf16.mxu0 %v5972_v6  ;;  %1493 = vmatprep.subr.bf16.mxu1 %v5975_v7  ;;  %v6060_v6 = vld [vmem:[#allocation2 + $0x2c0] ss:$48 sps:$4 sm:$0xff]   ;;  %v6063_v7 = vld [vmem:[#allocation2 + $0x2c8] ss:$48 sps:$4 sm:$0xff]  }
  0xaa   :  { %1480 = vmatprep.mubr.bf16.mxu0 %v7108_v48  ;;  %1523 = vmatprep.mubr.bf16.mxu1 %v7108_v48 }
  0xac   :  { %1451 = vmatpush1.bf16.msra.mxu0 %v5970_v8  ;;  %1494 = vmatpush1.bf16.msra.mxu1 %v5973_v9  ;;  %v6068_v8 = vld [vmem:[#allocation2 + $0x264] ss:$48 sps:$4 sm:$0xff]   ;;  %v6071_v9 = vld [vmem:[#allocation2 + $0x26c] ss:$48 sps:$4 sm:$0xff]  }
  0xad   :  { %1452 = vmatprep.subr.bf16.mxu0 %v5978_v10  ;;  %1495 = vmatprep.subr.bf16.mxu1 %v5981_v11  ;;  %v6066_v10 = vld [vmem:[#allocation2 + $0x260] ss:$48 sps:$4 sm:$0xff]   ;;  %v6069_v11 = vld [vmem:[#allocation2 + $0x268] ss:$48 sps:$4 sm:$0xff]  }
  0xb0   :  { %1453 = vmatpush1.bf16.msra.mxu0 %v5976_v12  ;;  %1496 = vmatpush1.bf16.msra.mxu1 %v5979_v13  ;;  %v6074_v12 = vld [vmem:[#allocation2 + $0x204] ss:$48 sps:$4 sm:$0xff]   ;;  %v6077_v13 = vld [vmem:[#allocation2 + $0x20c] ss:$48 sps:$4 sm:$0xff]  }
  0xb1   :  { %1454 = vmatprep.subr.bf16.mxu0 %v5984_v14  ;;  %1497 = vmatprep.subr.bf16.mxu1 %v5987_v15  ;;  %v6072_v14 = vld [vmem:[#allocation2 + $0x200] ss:$48 sps:$4 sm:$0xff]   ;;  %v6075_v15 = vld [vmem:[#allocation2 + $0x208] ss:$48 sps:$4 sm:$0xff]  }
  0xb4   :  { %1455 = vmatpush1.bf16.msra.mxu0 %v5982_v16  ;;  %1498 = vmatpush1.bf16.msra.mxu1 %v5985_v17  ;;  %v6080_v16 = vld [vmem:[#allocation2 + $0x1a4] ss:$48 sps:$4 sm:$0xff]   ;;  %v6083_v17 = vld [vmem:[#allocation2 + $0x1ac] ss:$48 sps:$4 sm:$0xff]  }
  0xb5   :  { %1456 = vmatprep.subr.bf16.mxu0 %v5990_v18  ;;  %1499 = vmatprep.subr.bf16.mxu1 %v5993_v19  ;;  %v6078_v18 = vld [vmem:[#allocation2 + $0x1a0] ss:$48 sps:$4 sm:$0xff]   ;;  %v6081_v19 = vld [vmem:[#allocation2 + $0x1a8] ss:$48 sps:$4 sm:$0xff]  }
  0xb8   :  { %1457 = vmatpush1.bf16.msra.mxu0 %v5988_v20  ;;  %1500 = vmatpush1.bf16.msra.mxu1 %v5991_v21  ;;  %v6086_v20 = vld [vmem:[#allocation2 + $0x144] ss:$48 sps:$4 sm:$0xff]   ;;  %v6089_v21 = vld [vmem:[#allocation2 + $0x14c] ss:$48 sps:$4 sm:$0xff]  }
  0xb9   :  { %1458 = vmatprep.subr.bf16.mxu0 %v5996_v22  ;;  %1501 = vmatprep.subr.bf16.mxu1 %v5999_v23  ;;  %v6084_v22 = vld [vmem:[#allocation2 + $0x140] ss:$48 sps:$4 sm:$0xff]   ;;  %v6087_v23 = vld [vmem:[#allocation2 + $0x148] ss:$48 sps:$4 sm:$0xff]  }
  0xbc   :  { %1459 = vmatpush1.bf16.msra.mxu0 %v5994_v24  ;;  %1502 = vmatpush1.bf16.msra.mxu1 %v5997_v25  ;;  %v6095_v24 = vld [vmem:[#allocation2 + $0xec] ss:$48 sps:$4 sm:$0xff]   ;;  %v6090_v25 = vld [vmem:[#allocation2 + $0xe0] ss:$48 sps:$4 sm:$0xff]  }
  0xbd   :  { %1460 = vmatprep.subr.bf16.mxu0 %v6002_v26  ;;  %1503 = vmatprep.subr.bf16.mxu1 %v6005_v27  ;;  %v6093_v26 = vld [vmem:[#allocation2 + $0xe8] ss:$48 sps:$4 sm:$0xff]   ;;  %v6098_v27 = vld [vmem:[#allocation2 + $0x84] ss:$48 sps:$4 sm:$0xff]  }
  0xc0   :  { %1461 = vmatpush1.bf16.msra.mxu0 %v6000_v28  ;;  %1504 = vmatpush1.bf16.msra.mxu1 %v6003_v29  ;;  %v6101_v28 = vld [vmem:[#allocation2 + $0x8c] ss:$48 sps:$4 sm:$0xff]   ;;  %v6096_v29 = vld [vmem:[#allocation2 + $0x80] ss:$48 sps:$4 sm:$0xff]  }
  0xc1   :  { %1462 = vmatprep.subr.bf16.mxu0 %v6008_v30  ;;  %1505 = vmatprep.subr.bf16.mxu1 %v6011_v31  ;;  %v6099_v30 = vld [vmem:[#allocation2 + $0x88] ss:$48 sps:$4 sm:$0xff]   ;;  %v6104_v31 = vld [vmem:[#allocation2 + $0x24] ss:$48 sps:$4 sm:$0xff]  }
  0xc4   :  { %1463 = vmatpush1.bf16.msra.mxu0 %v6006_v32  ;;  %1506 = vmatpush1.bf16.msra.mxu1 %v6009_v33  ;;  %v6107_v32 = vld [vmem:[#allocation2 + $0x2c] ss:$48 sps:$4 sm:$0xff]   ;;  %v6102_v33 = vld [vmem:[#allocation2 + $0x20] ss:$48 sps:$4 sm:$0xff]  }
  0xc5   :  { %1464 = vmatprep.subr.bf16.mxu0 %v6014_v34  ;;  %1507 = vmatprep.subr.bf16.mxu1 %v6017_v35  ;;  %v6105_v34 = vld [vmem:[#allocation2 + $0x28] ss:$48 sps:$4 sm:$0xff]   ;;  %v6110_v35 = vld [vmem:[#allocation2 + $0x5c4] ss:$48 sps:$4 sm:$0xff]  }
  0xc8   :  { %1465 = vmatpush2.bf16.msra.mxu0 %v6012_v36  ;;  %1508 = vmatpush2.bf16.msra.mxu1 %v6015_v37  ;;  %v6113_v36 = vld [vmem:[#allocation2 + $0x5cc] ss:$48 sps:$4 sm:$0xff]   ;;  %v6108_v37 = vld [vmem:[#allocation2 + $0x5c0] ss:$48 sps:$4 sm:$0xff]  }
  0xc9   :  { %1466 = vmatprep.subr.bf16.mxu0 %v6020_v38  ;;  %1509 = vmatprep.subr.bf16.mxu1 %v6023_v39  ;;  %v6111_v38 = vld [vmem:[#allocation2 + $0x5c8] ss:$48 sps:$4 sm:$0xff]   ;;  %v6116_v39 = vld [vmem:[#allocation2 + $0x564] ss:$48 sps:$4 sm:$0xff]  }
  0xcc   :  { %1467 = vmatpush2.bf16.msra.mxu0 %v6018_v40  ;;  %1510 = vmatpush2.bf16.msra.mxu1 %v6021_v41  ;;  %v6119_v40 = vld [vmem:[#allocation2 + $0x56c] ss:$48 sps:$4 sm:$0xff]   ;;  %v6114_v41 = vld [vmem:[#allocation2 + $0x560] ss:$48 sps:$4 sm:$0xff]  }
  0xcd   :  { %1468 = vmatprep.subr.bf16.mxu0 %v6026_v42  ;;  %1511 = vmatprep.subr.bf16.mxu1 %v6029_v43  ;;  %v6117_v42 = vld [vmem:[#allocation2 + $0x568] ss:$48 sps:$4 sm:$0xff]   ;;  %v6122_v43 = vld [vmem:[#allocation2 + $0x504] ss:$48 sps:$4 sm:$0xff]  }
  0xd0   :  { %1469 = vmatpush2.bf16.msra.mxu0 %v6024_v44  ;;  %1512 = vmatpush2.bf16.msra.mxu1 %v6027_v45  ;;  %v6125_v44 = vld [vmem:[#allocation2 + $0x50c] ss:$48 sps:$4 sm:$0xff]   ;;  %v6120_v45 = vld [vmem:[#allocation2 + $0x500] ss:$48 sps:$4 sm:$0xff]  }
  0xd1   :  { %1470 = vmatprep.subr.bf16.mxu0 %v6032_v46  ;;  %1513 = vmatprep.subr.bf16.mxu1 %v6035_v47  ;;  %v6123_v46 = vld [vmem:[#allocation2 + $0x508] ss:$48 sps:$4 sm:$0xff]   ;;  %v6128_v47 = vld [vmem:[#allocation2 + $0x4a4] ss:$48 sps:$4 sm:$0xff]  }
  0xd4   :  { %1471 = vmatpush2.bf16.msra.mxu0 %v6030_v49  ;;  %1514 = vmatpush2.bf16.msra.mxu1 %v6033_v50  ;;  %v6131_v49 = vld [vmem:[#allocation2 + $0x4ac] ss:$48 sps:$4 sm:$0xff]   ;;  %v6126_v50 = vld [vmem:[#allocation2 + $0x4a0] ss:$48 sps:$4 sm:$0xff]  }
  0xd5   :  { %1472 = vmatprep.subr.bf16.mxu0 %v6038_v51  ;;  %1515 = vmatprep.subr.bf16.mxu1 %v6041_v52  ;;  %v6129_v51 = vld [vmem:[#allocation2 + $0x4a8] ss:$48 sps:$4 sm:$0xff]   ;;  %v6134_v52 = vld [vmem:[#allocation2 + $0x444] ss:$48 sps:$4 sm:$0xff]  }
  0xd8   :  { %1473 = vmatpush2.bf16.msra.mxu0 %v6036_v53  ;;  %1516 = vmatpush2.bf16.msra.mxu1 %v6039_v54  ;;  %v6137_v53 = vld [vmem:[#allocation2 + $0x44c] ss:$48 sps:$4 sm:$0xff]   ;;  %v6132_v54 = vld [vmem:[#allocation2 + $0x440] ss:$48 sps:$4 sm:$0xff]  }
  0xd9   :  { %1474 = vmatprep.subr.bf16.mxu0 %v6044_v55  ;;  %1517 = vmatprep.subr.bf16.mxu1 %v6047_v56  ;;  %v6135_v55 = vld [vmem:[#allocation2 + $0x448] ss:$48 sps:$4 sm:$0xff]   ;;  %v6140_v56 = vld [vmem:[#allocation2 + $0x3e4] ss:$48 sps:$4 sm:$0xff]  }
  0xdc   :  { %1475 = vmatpush2.bf16.msra.mxu0 %v6042_v57  ;;  %1518 = vmatpush2.bf16.msra.mxu1 %v6045_v58  ;;  %v6143_v57 = vld [vmem:[#allocation2 + $0x3ec] ss:$48 sps:$4 sm:$0xff]   ;;  %v6138_v58 = vld [vmem:[#allocation2 + $0x3e0] ss:$48 sps:$4 sm:$0xff]  }
  0xdd   :  { %1476 = vmatprep.subr.bf16.mxu0 %v6050_v59  ;;  %1519 = vmatprep.subr.bf16.mxu1 %v6053_v60  ;;  %v6141_v59 = vld [vmem:[#allocation2 + $0x3e8] ss:$48 sps:$4 sm:$0xff]   ;;  %v6146_v60 = vld [vmem:[#allocation2 + $0x384] ss:$48 sps:$4 sm:$0xff]  }
  0xe0   :  { %1477 = vmatpush2.bf16.msra.mxu0 %v6048_v61  ;;  %1520 = vmatpush2.bf16.msra.mxu1 %v6051_v62  ;;  %v6149_v61 = vld [vmem:[#allocation2 + $0x38c] ss:$48 sps:$4 sm:$0xff]   ;;  %v6144_v62 = vld [vmem:[#allocation2 + $0x380] ss:$48 sps:$4 sm:$0xff]  }
  0xe1   :  { %1478 = vmatprep.subr.bf16.mxu0 %v6056_v63  ;;  %1521 = vmatprep.subr.bf16.mxu1 %v6059_v0  ;;  %v6147_v63 = vld [vmem:[#allocation2 + $0x388] ss:$48 sps:$4 sm:$0xff]   ;;  %v6152_v0 = vld [vmem:[#allocation2 + $0x324] ss:$48 sps:$4 sm:$0xff]  }
  0xe4   :  { %1479 = vmatpush2.bf16.msra.mxu0 %v6054_v1  ;;  %1522 = vmatpush2.bf16.msra.mxu1 %v6057_v2  ;;  %v6155_v1 = vld [vmem:[#allocation2 + $0x32c] ss:$48 sps:$4 sm:$0xff]   ;;  %v6150_v2 = vld [vmem:[#allocation2 + $0x320] ss:$48 sps:$4 sm:$0xff]  }
  0xe5   :  { %1534 = vmatprep.subr.bf16.mxu0 %v6062_v4  ;;  %1577 = vmatprep.subr.bf16.mxu1 %v6065_v5  ;;  %v6153_v4 = vld [vmem:[#allocation2 + $0x328] ss:$48 sps:$4 sm:$0xff]   ;;  %v6158_v5 = vld [vmem:[#allocation6 + $0xe4] ss:$16 sps:$4 sm:$0xff]  }
  0xe7   :  { %1481 = vmatmul.mubr.bf16.vlgmr.msra.gmra.mxu0 %v7115_v3  ;;  %1524 = vmatmul.mubr.bf16.vlgmr.msra.gmra.mxu1 %v7115_v3 }
  0xe8   :  { %1535 = vmatpush1.bf16.msra.mxu0 %v6060_v6  ;;  %1578 = vmatpush1.bf16.msra.mxu1 %v6063_v7  ;;  %v6161_v6 = vld [vmem:[#allocation6 + $0x2e4] ss:$16 sps:$4 sm:$0xff]   ;;  %v6156_v7 = vld [vmem:[#allocation6 + $0xe0] ss:$16 sps:$4 sm:$0xff]  }
  0xe9   :  { %1536 = vmatprep.subr.bf16.mxu0 %v6068_v8  ;;  %1579 = vmatprep.subr.bf16.mxu1 %v6071_v9  ;;  %v6159_v8 = vld [vmem:[#allocation6 + $0x2e0] ss:$16 sps:$4 sm:$0xff]   ;;  %v6164_v9 = vld [vmem:[#allocation6 + $0xc4] ss:$16 sps:$4 sm:$0xff]  }
  0xea   :  { %1566 = vmatprep.mubr.bf16.mxu0 %v7108_v48  ;;  %1609 = vmatprep.mubr.bf16.mxu1 %v7108_v48  ;;  %v6092_v48 = vld [vmem:[#allocation2 + $0xe4] ss:$48 sps:$4 sm:$0xff]  }
  0xec   :  { %1537 = vmatpush1.bf16.msra.mxu0 %v6066_v10  ;;  %1580 = vmatpush1.bf16.msra.mxu1 %v6069_v11  ;;  %v6167_v10 = vld [vmem:[#allocation6 + $0x2c4] ss:$16 sps:$4 sm:$0xff]   ;;  %v6162_v11 = vld [vmem:[#allocation6 + $0xc0] ss:$16 sps:$4 sm:$0xff]  }
  0xed   :  { %1538 = vmatprep.subr.bf16.mxu0 %v6074_v12  ;;  %1581 = vmatprep.subr.bf16.mxu1 %v6077_v13  ;;  %v6165_v12 = vld [vmem:[#allocation6 + $0x2c0] ss:$16 sps:$4 sm:$0xff]   ;;  %v6170_v13 = vld [vmem:[#allocation6 + $0xa4] ss:$16 sps:$4 sm:$0xff]  }
  0xf0   :  { %1539 = vmatpush1.bf16.msra.mxu0 %v6072_v14  ;;  %1582 = vmatpush1.bf16.msra.mxu1 %v6075_v15  ;;  %v6173_v14 = vld [vmem:[#allocation6 + $0x2a4] ss:$16 sps:$4 sm:$0xff]   ;;  %v6168_v15 = vld [vmem:[#allocation6 + $0xa0] ss:$16 sps:$4 sm:$0xff]  }
  0xf1   :  { %1540 = vmatprep.subr.bf16.mxu0 %v6080_v16  ;;  %1583 = vmatprep.subr.bf16.mxu1 %v6083_v17  ;;  %v6171_v16 = vld [vmem:[#allocation6 + $0x2a0] ss:$16 sps:$4 sm:$0xff]   ;;  %v6176_v17 = vld [vmem:[#allocation6 + $0x84] ss:$16 sps:$4 sm:$0xff]  }
  0xf4   :  { %1541 = vmatpush1.bf16.msra.mxu0 %v6078_v18  ;;  %1584 = vmatpush1.bf16.msra.mxu1 %v6081_v19  ;;  %v6179_v18 = vld [vmem:[#allocation6 + $0x284] ss:$16 sps:$4 sm:$0xff]   ;;  %v6174_v19 = vld [vmem:[#allocation6 + $0x80] ss:$16 sps:$4 sm:$0xff]  }
  0xf5   :  { %1542 = vmatprep.subr.bf16.mxu0 %v6086_v20  ;;  %1585 = vmatprep.subr.bf16.mxu1 %v6089_v21  ;;  %v6182_v20 = vld [vmem:[#allocation6 + $0x64] ss:$16 sps:$4 sm:$0xff]  }
  0xf6   :  { %v6185_v21 = vld [vmem:[#allocation6 + $0x264] ss:$16 sps:$4 sm:$0xff]  }
  0xf8   :  { %1543 = vmatpush1.bf16.msra.mxu0 %v6084_v22  ;;  %1586 = vmatpush1.bf16.msra.mxu1 %v6087_v23  ;;  %v6180_v22 = vld [vmem:[#allocation6 + $0x60] ss:$16 sps:$4 sm:$0xff]  }
  0xf9   :  { %1544 = vmatprep.subr.bf16.mxu0 %v6092_v48  ;;  %1587 = vmatprep.subr.bf16.mxu1 %v6095_v24  ;;  %v6183_v23 = vld [vmem:[#allocation6 + $0x260] ss:$16 sps:$4 sm:$0xff]   ;;  %v6188_v48 = vld [vmem:[#allocation6 + $0x44] ss:$16 sps:$4 sm:$0xff]  }
  0xfa   :  { %v6191_v24 = vld [vmem:[#allocation6 + $0x244] ss:$16 sps:$4 sm:$0xff]  }
  0xfc   :  { %1545 = vmatpush1.bf16.msra.mxu0 %v6090_v25  ;;  %1588 = vmatpush1.bf16.msra.mxu1 %v6093_v26  ;;  %v6186_v25 = vld [vmem:[#allocation6 + $0x40] ss:$16 sps:$4 sm:$0xff]  }
  0xfd   :  { %1546 = vmatprep.subr.bf16.mxu0 %v6098_v27  ;;  %1589 = vmatprep.subr.bf16.mxu1 %v6101_v28  ;;  %v6189_v26 = vld [vmem:[#allocation6 + $0x240] ss:$16 sps:$4 sm:$0xff]   ;;  %v6194_v27 = vld [vmem:[#allocation6 + $0x24] ss:$16 sps:$4 sm:$0xff]  }
  0xfe   :  { %v6197_v28 = vld [vmem:[#allocation6 + $0x224] ss:$16 sps:$4 sm:$0xff]  }
 0x100   :  { %1547 = vmatpush1.bf16.msra.mxu0 %v6096_v29  ;;  %1590 = vmatpush1.bf16.msra.mxu1 %v6099_v30  ;;  %v6192_v29 = vld [vmem:[#allocation6 + $0x20] ss:$16 sps:$4 sm:$0xff]  }
 0x101   :  { %1548 = vmatprep.subr.bf16.mxu0 %v6104_v31  ;;  %1591 = vmatprep.subr.bf16.mxu1 %v6107_v32  ;;  %v6195_v30 = vld [vmem:[#allocation6 + $0x220] ss:$16 sps:$4 sm:$0xff]   ;;  %v6200_v31 = vld [vmem:[#allocation6 + $0x4] ss:$16 sps:$4 sm:$0xff]  }
 0x102   :  { %v6203_v32 = vld [vmem:[#allocation6 + $0x204] ss:$16 sps:$4 sm:$0xff]  }
 0x104   :  { %1549 = vmatpush1.bf16.msra.mxu0 %v6102_v33  ;;  %1592 = vmatpush1.bf16.msra.mxu1 %v6105_v34  ;;  %v6198_v33 = vld [vmem:[#allocation6] ss:$16 sps:$4 sm:$0xff]  }
 0x105   :  { %1550 = vmatprep.subr.bf16.mxu0 %v6110_v35  ;;  %1593 = vmatprep.subr.bf16.mxu1 %v6113_v36  ;;  %v6201_v34 = vld [vmem:[#allocation6 + $0x200] ss:$16 sps:$4 sm:$0xff]   ;;  %v6206_v35 = vld [vmem:[#allocation6 + $0x1e4] ss:$16 sps:$4 sm:$0xff]  }
 0x106   :  { %v6209_v36 = vld [vmem:[#allocation6 + $0x3e4] ss:$16 sps:$4 sm:$0xff]  }
 0x108   :  { %1551 = vmatpush2.bf16.msra.mxu0 %v6108_v37  ;;  %1594 = vmatpush2.bf16.msra.mxu1 %v6111_v38  ;;  %v6204_v37 = vld [vmem:[#allocation6 + $0x1e0] ss:$16 sps:$4 sm:$0xff]  }
 0x109   :  { %1552 = vmatprep.subr.bf16.mxu0 %v6116_v39  ;;  %1595 = vmatprep.subr.bf16.mxu1 %v6119_v40  ;;  %v6207_v38 = vld [vmem:[#allocation6 + $0x3e0] ss:$16 sps:$4 sm:$0xff]   ;;  %v6212_v39 = vld [vmem:[#allocation6 + $0x1c4] ss:$16 sps:$4 sm:$0xff]  }
 0x10a   :  { %v6215_v40 = vld [vmem:[#allocation6 + $0x3c4] ss:$16 sps:$4 sm:$0xff]  }
 0x10c   :  { %1553 = vmatpush2.bf16.msra.mxu0 %v6114_v41  ;;  %1596 = vmatpush2.bf16.msra.mxu1 %v6117_v42  ;;  %v6210_v41 = vld [vmem:[#allocation6 + $0x1c0] ss:$16 sps:$4 sm:$0xff]  }
 0x10d   :  { %1554 = vmatprep.subr.bf16.mxu0 %v6122_v43  ;;  %1597 = vmatprep.subr.bf16.mxu1 %v6125_v44  ;;  %v6213_v42 = vld [vmem:[#allocation6 + $0x3c0] ss:$16 sps:$4 sm:$0xff]   ;;  %v6218_v43 = vld [vmem:[#allocation6 + $0x1a4] ss:$16 sps:$4 sm:$0xff]  }
 0x10e   :  { %v6221_v44 = vld [vmem:[#allocation6 + $0x3a4] ss:$16 sps:$4 sm:$0xff]  }
 0x110   :  { %1555 = vmatpush2.bf16.msra.mxu0 %v6120_v45  ;;  %1598 = vmatpush2.bf16.msra.mxu1 %v6123_v46  ;;  %v6216_v45 = vld [vmem:[#allocation6 + $0x1a0] ss:$16 sps:$4 sm:$0xff]  }
 0x111   :  { %1556 = vmatprep.subr.bf16.mxu0 %v6128_v47  ;;  %1599 = vmatprep.subr.bf16.mxu1 %v6131_v49  ;;  %v6219_v46 = vld [vmem:[#allocation6 + $0x3a0] ss:$16 sps:$4 sm:$0xff]   ;;  %v6224_v47 = vld [vmem:[#allocation6 + $0x184] ss:$16 sps:$4 sm:$0xff]  }
 0x112   :  { %v6227_v49 = vld [vmem:[#allocation6 + $0x384] ss:$16 sps:$4 sm:$0xff]  }
 0x114   :  { %1557 = vmatpush2.bf16.msra.mxu0 %v6126_v50  ;;  %1600 = vmatpush2.bf16.msra.mxu1 %v6129_v51  ;;  %v6222_v50 = vld [vmem:[#allocation6 + $0x180] ss:$16 sps:$4 sm:$0xff]  }
 0x115   :  { %1558 = vmatprep.subr.bf16.mxu0 %v6134_v52  ;;  %1601 = vmatprep.subr.bf16.mxu1 %v6137_v53  ;;  %v6225_v51 = vld [vmem:[#allocation6 + $0x380] ss:$16 sps:$4 sm:$0xff]   ;;  %v6230_v52 = vld [vmem:[#allocation6 + $0x164] ss:$16 sps:$4 sm:$0xff]  }
 0x116   :  { %v6233_v53 = vld [vmem:[#allocation6 + $0x364] ss:$16 sps:$4 sm:$0xff]  }
 0x118   :  { %1559 = vmatpush2.bf16.msra.mxu0 %v6132_v54  ;;  %1602 = vmatpush2.bf16.msra.mxu1 %v6135_v55  ;;  %v6228_v54 = vld [vmem:[#allocation6 + $0x160] ss:$16 sps:$4 sm:$0xff]  }
 0x119   :  { %1560 = vmatprep.subr.bf16.mxu0 %v6140_v56  ;;  %1603 = vmatprep.subr.bf16.mxu1 %v6143_v57  ;;  %v6231_v55 = vld [vmem:[#allocation6 + $0x360] ss:$16 sps:$4 sm:$0xff]   ;;  %v6236_v56 = vld [vmem:[#allocation6 + $0x144] ss:$16 sps:$4 sm:$0xff]  }
 0x11a   :  { %v6239_v57 = vld [vmem:[#allocation6 + $0x344] ss:$16 sps:$4 sm:$0xff]  }
 0x11c   :  { %1561 = vmatpush2.bf16.msra.mxu0 %v6138_v58  ;;  %1604 = vmatpush2.bf16.msra.mxu1 %v6141_v59  ;;  %v6234_v58 = vld [vmem:[#allocation6 + $0x140] ss:$16 sps:$4 sm:$0xff]  }
 0x11d   :  { %1562 = vmatprep.subr.bf16.mxu0 %v6146_v60  ;;  %1605 = vmatprep.subr.bf16.mxu1 %v6149_v61  ;;  %v6237_v59 = vld [vmem:[#allocation6 + $0x340] ss:$16 sps:$4 sm:$0xff]   ;;  %v6242_v60 = vld [vmem:[#allocation6 + $0x124] ss:$16 sps:$4 sm:$0xff]  }
 0x11e   :  { %v6245_v61 = vld [vmem:[#allocation6 + $0x324] ss:$16 sps:$4 sm:$0xff]  }
 0x120   :  { %1563 = vmatpush2.bf16.msra.mxu0 %v6144_v62  ;;  %1606 = vmatpush2.bf16.msra.mxu1 %v6147_v63  ;;  %v6240_v62 = vld [vmem:[#allocation6 + $0x120] ss:$16 sps:$4 sm:$0xff]  }
 0x121   :  { %1564 = vmatprep.subr.bf16.mxu0 %v6152_v0  ;;  %1607 = vmatprep.subr.bf16.mxu1 %v6155_v1  ;;  %v6243_v63 = vld [vmem:[#allocation6 + $0x320] ss:$16 sps:$4 sm:$0xff]   ;;  %v6248_v0 = vld [vmem:[#allocation6 + $0x104] ss:$16 sps:$4 sm:$0xff]  }
 0x122   :  { %v6251_v1 = vld [vmem:[#allocation6 + $0x304] ss:$16 sps:$4 sm:$0xff]  }
 0x124   :  { %1565 = vmatpush2.bf16.msra.mxu0 %v6150_v2  ;;  %1608 = vmatpush2.bf16.msra.mxu1 %v6153_v4  ;;  %v332_v2 = vlaneseq  ;;  %v6246_v4 = vld [vmem:[#allocation6 + $0x100] ss:$16 sps:$4 sm:$0xff]  }
 0x125   :  { %3970 = vmatprep.subr.bf16.mxu0 %v6158_v5  ;;  %4013 = vmatprep.subr.bf16.mxu1 %v6161_v6  ;;  %v6249_v5 = vld [vmem:[#allocation6 + $0x300] ss:$16 sps:$4 sm:$0xff]   ;;  %v6254_v6 = vld [vmem:[#allocation6 + $0x4e4] ss:$16 sps:$4 sm:$0xff]  }
 0x127   :  { %1567 = vmatmul.mubr.bf16.vlgmr.msra.gmra.mxu0 %v7115_v3  ;;  %1610 = vmatmul.mubr.bf16.vlgmr.msra.gmra.mxu1 %v7115_v3  ;;  %v6177_v3 = vld [vmem:[#allocation6 + $0x280] ss:$16 sps:$4 sm:$0xff]  }
 0x128   :  { %3971 = vmatpush1.bf16.msra.mxu0 %v6156_v7  ;;  %4014 = vmatpush1.bf16.msra.mxu1 %v6159_v8  ;;  %v6257_v7 = vld [vmem:[#allocation6 + $0x6e4] ss:$16 sps:$4 sm:$0xff]   ;;  %v7127_v8 = vshrl.u32 %v332_v2, 7  ;;  %v6288_v2 = vld [vmem:[#allocation6 + $0x420] ss:$16 sps:$4 sm:$0xff]  }
 0x129   :  { %3972 = vmatprep.subr.bf16.mxu0 %v6164_v9  ;;  %4015 = vmatprep.subr.bf16.mxu1 %v6167_v10  ;;  %v7129_v9 = vld [vmem:[#allocation4] sm:$0xff] }
 0x12a   :  { %v7132_v10 = vsub.s32 0, %v7127_v8 }
 0x12c   :  { %3973 = vmatpush1.bf16.msra.mxu0 %v6162_v11  ;;  %4016 = vmatpush1.bf16.msra.mxu1 %v6165_v12  ;;  %v7135_v11 = vsub.s32 2, %v7127_v8  ;;  %v7138_v12 = vsub.s32 1, %v7127_v8 }
 0x12d   :  { %3974 = vmatprep.subr.bf16.mxu0 %v6170_v13  ;;  %4017 = vmatprep.subr.bf16.mxu1 %v6173_v14  ;;  %v7141_v13 = vsub.s32 3, %v7127_v8 }
 0x130   :  { %3975 = vmatpush1.bf16.msra.mxu0 %v6168_v15  ;;  %4018 = vmatpush1.bf16.msra.mxu1 %v6171_v16  ;;  %v335_v16 = vrot.slane %v7129_v9, %v7132_v10 }
 0x131   :  { %3976 = vmatprep.subr.bf16.mxu0 %v6176_v17  ;;  %4019 = vmatprep.subr.bf16.mxu1 %v6179_v18  ;;  %v343_v17 = vrot.slane %v7129_v9, %v7135_v11 }
 0x134   :  { %3977 = vmatpush1.bf16.msra.mxu0 %v6174_v19  ;;  %4020 = vmatpush1.bf16.msra.mxu1 %v6177_v3  ;;  %v339_v3 = vrot.slane %v7129_v9, %v7138_v12 }
 0x135   :  { %3978 = vmatprep.subr.bf16.mxu0 %v6182_v20  ;;  %4021 = vmatprep.subr.bf16.mxu1 %v6185_v21  ;;  %v347_v20 = vrot.slane %v7129_v9, %v7141_v13 }
 0x138   :  { %3979 = vmatpush1.bf16.msra.mxu0 %v6180_v22  ;;  %4022 = vmatpush1.bf16.msra.mxu1 %v6183_v23 }
 0x139   :  { %3980 = vmatprep.subr.bf16.mxu0 %v6188_v48  ;;  %4023 = vmatprep.subr.bf16.mxu1 %v6191_v24 }
 0x13c   :  { %3981 = vmatpush1.bf16.msra.mxu0 %v6186_v25  ;;  %4024 = vmatpush1.bf16.msra.mxu1 %v6189_v26 }
 0x13d   :  { %3982 = vmatprep.subr.bf16.mxu0 %v6194_v27  ;;  %4025 = vmatprep.subr.bf16.mxu1 %v6197_v28 }
 0x140   :  { %3983 = vmatpush1.bf16.msra.mxu0 %v6192_v29  ;;  %4026 = vmatpush1.bf16.msra.mxu1 %v6195_v30 }
 0x141   :  { %3984 = vmatprep.subr.bf16.mxu0 %v6200_v31  ;;  %4027 = vmatprep.subr.bf16.mxu1 %v6203_v32 }
 0x144   :  { %3985 = vmatpush1.bf16.msra.mxu0 %v6198_v33  ;;  %4028 = vmatpush1.bf16.msra.mxu1 %v6201_v34 }
 0x145   :  { %3986 = vmatprep.subr.bf16.mxu0 %v6206_v35  ;;  %4029 = vmatprep.subr.bf16.mxu1 %v6209_v36  ;;  %v6252_v36 = vld [vmem:[#allocation6 + $0x4e0] ss:$16 sps:$4 sm:$0xff]  }
 0x148   :  { %3987 = vmatpush2.bf16.msra.mxu0 %v6204_v37  ;;  %4030 = vmatpush2.bf16.msra.mxu1 %v6207_v38  ;;  %v6255_v37 = vld [vmem:[#allocation6 + $0x6e0] ss:$16 sps:$4 sm:$0xff]   ;;  %v6260_v38 = vld [vmem:[#allocation6 + $0x4c4] ss:$16 sps:$4 sm:$0xff]  }
 0x149   :  { %3988 = vmatprep.subr.bf16.mxu0 %v6212_v39  ;;  %4031 = vmatprep.subr.bf16.mxu1 %v6215_v40  ;;  %v6263_v39 = vld [vmem:[#allocation6 + $0x6c4] ss:$16 sps:$4 sm:$0xff]   ;;  %v7030_v40 = vmov 0  }
 0x14c   :  { %3989 = vmatpush2.bf16.msra.mxu0 %v6210_v41  ;;  %4032 = vmatpush2.bf16.msra.mxu1 %v6213_v42 }
 0x14d   :  { %3990 = vmatprep.subr.bf16.mxu0 %v6218_v43  ;;  %4033 = vmatprep.subr.bf16.mxu1 %v6221_v44 }
 0x150   :  { %3991 = vmatpush2.bf16.msra.mxu0 %v6216_v45  ;;  %4034 = vmatpush2.bf16.msra.mxu1 %v6219_v46  ;;  %v6258_v45 = vld [vmem:[#allocation6 + $0x4c0] ss:$16 sps:$4 sm:$0xff]  }
 0x151   :  { %3992 = vmatprep.subr.bf16.mxu0 %v6224_v47  ;;  %4035 = vmatprep.subr.bf16.mxu1 %v6227_v49  ;;  %v6261_v46 = vld [vmem:[#allocation6 + $0x6c0] ss:$16 sps:$4 sm:$0xff]   ;;  %v6266_v47 = vld [vmem:[#allocation6 + $0x4a4] ss:$16 sps:$4 sm:$0xff]  }
 0x152   :  { %v6269_v49 = vld [vmem:[#allocation6 + $0x6a4] ss:$16 sps:$4 sm:$0xff]  }
 0x154   :  { %3993 = vmatpush2.bf16.msra.mxu0 %v6222_v50  ;;  %4036 = vmatpush2.bf16.msra.mxu1 %v6225_v51  ;;  %v6264_v50 = vld [vmem:[#allocation6 + $0x4a0] ss:$16 sps:$4 sm:$0xff]  }
 0x155   :  { %3994 = vmatprep.subr.bf16.mxu0 %v6230_v52  ;;  %4037 = vmatprep.subr.bf16.mxu1 %v6233_v53  ;;  %v6267_v51 = vld [vmem:[#allocation6 + $0x6a0] ss:$16 sps:$4 sm:$0xff]   ;;  %v6272_v52 = vld [vmem:[#allocation6 + $0x484] ss:$16 sps:$4 sm:$0xff]  }
 0x156   :  { %v6275_v53 = vld [vmem:[#allocation6 + $0x684] ss:$16 sps:$4 sm:$0xff]  }
 0x158   :  { %3995 = vmatpush2.bf16.msra.mxu0 %v6228_v54  ;;  %4038 = vmatpush2.bf16.msra.mxu1 %v6231_v55  ;;  %v6270_v54 = vld [vmem:[#allocation6 + $0x480] ss:$16 sps:$4 sm:$0xff]  }
 0x159   :  { %3996 = vmatprep.subr.bf16.mxu0 %v6236_v56  ;;  %4039 = vmatprep.subr.bf16.mxu1 %v6239_v57  ;;  %v6273_v55 = vld [vmem:[#allocation6 + $0x680] ss:$16 sps:$4 sm:$0xff]   ;;  %v6278_v56 = vld [vmem:[#allocation6 + $0x464] ss:$16 sps:$4 sm:$0xff]  }
 0x15a   :  { %v6281_v57 = vld [vmem:[#allocation6 + $0x664] ss:$16 sps:$4 sm:$0xff]  }
 0x15c   :  { %3997 = vmatpush2.bf16.msra.mxu0 %v6234_v58  ;;  %4040 = vmatpush2.bf16.msra.mxu1 %v6237_v59  ;;  %v6276_v58 = vld [vmem:[#allocation6 + $0x460] ss:$16 sps:$4 sm:$0xff]  }
 0x15d   :  { %3998 = vmatprep.subr.bf16.mxu0 %v6242_v60  ;;  %4041 = vmatprep.subr.bf16.mxu1 %v6245_v61  ;;  %v6279_v59 = vld [vmem:[#allocation6 + $0x660] ss:$16 sps:$4 sm:$0xff]   ;;  %v6284_v60 = vld [vmem:[#allocation6 + $0x444] ss:$16 sps:$4 sm:$0xff]  }
 0x15e   :  { %v6287_v61 = vld [vmem:[#allocation6 + $0x644] ss:$16 sps:$4 sm:$0xff]  }
 0x160   :  { %3999 = vmatpush2.bf16.msra.mxu0 %v6240_v62  ;;  %4042 = vmatpush2.bf16.msra.mxu1 %v6243_v63  ;;  %v6282_v62 = vld [vmem:[#allocation6 + $0x440] ss:$16 sps:$4 sm:$0xff]  }
 0x161   :  { %4000 = vmatprep.subr.bf16.mxu0 %v6248_v0  ;;  %4043 = vmatprep.subr.bf16.mxu1 %v6251_v1  ;;  %v6285_v63 = vld [vmem:[#allocation6 + $0x640] ss:$16 sps:$4 sm:$0xff]   ;;  %v6290_v0 = vld [vmem:[#allocation6 + $0x424] ss:$16 sps:$4 sm:$0xff]  }
 0x162   :  { %v6293_v1 = vld [vmem:[#allocation6 + $0x624] ss:$16 sps:$4 sm:$0xff]  }
 0x164   :  { %4001 = vmatpush2.bf16.msra.mxu0 %v6246_v4  ;;  %4044 = vmatpush2.bf16.msra.mxu1 %v6249_v5  ;;  %v6291_v4 = vld [vmem:[#allocation6 + $0x620] ss:$16 sps:$4 sm:$0xff]   ;;  %v6296_v5 = vld [vmem:[#allocation6 + $0x404] ss:$16 sps:$4 sm:$0xff]  }
 0x165   :  { %4056 = vmatprep.subr.bf16.mxu0 %v6254_v6  ;;  %4099 = vmatprep.subr.bf16.mxu1 %v6257_v7  ;;  %v6299_v6 = vld [vmem:[#allocation6 + $0x604] ss:$16 sps:$4 sm:$0xff]   ;;  %v6294_v7 = vld [vmem:[#allocation6 + $0x400] ss:$16 sps:$4 sm:$0xff]  }
 0x167   :  { %v1396_v14 = vpop.f32.mrf.mxu0  ;;  %v1439_v15 = vpop.f32.mrf.mxu1 }
 0x168   :  { %v1397_v24 = vadd.f32 %v1396_v14, %v335_v16  ;;  %v1440_v25 = vadd.f32 %v1439_v15, %v343_v17  ;;  %v6297_v14 = vld [vmem:[#allocation6 + $0x600] ss:$16 sps:$4 sm:$0xff]   ;;  %v6302_v15 = vld [vmem:[#allocation6 + $0x5e4] ss:$16 sps:$4 sm:$0xff]  }
 0x169   :  { %v1398_v18 = vpop.f32.mrf.mxu0  ;;  %v1441_v19 = vpop.f32.mrf.mxu1 }
 0x16a   :  { %v1399_v28 = vadd.f32 %v1398_v18, %v339_v3  ;;  %v1442_v29 = vadd.f32 %v1441_v19, %v347_v20  ;;  %v6303_v18 = vld [vmem:[#allocation6 + $0x7e0] ss:$16 sps:$4 sm:$0xff]   ;;  %v6308_v19 = vld [vmem:[#allocation6 + $0x5c4] ss:$16 sps:$4 sm:$0xff]  }
 0x16b   :  { %v1400_v21 = vpop.f32.mrf.mxu0  ;;  %v1443_v22 = vpop.f32.mrf.mxu1 }
 0x16c   :  { %v1401_v23 = vadd.f32 %v1400_v21, %v335_v16  ;;  %v1444_v48 = vadd.f32 %v1443_v22, %v343_v17  ;;  %v6305_v16 = vld [vmem:[#allocation6 + $0x7e4] ss:$16 sps:$4 sm:$0xff]   ;;  %v6300_v17 = vld [vmem:[#allocation6 + $0x5e0] ss:$16 sps:$4 sm:$0xff]  }
 0x16d   :  { %v1402_v26 = vpop.f32.mrf.mxu0  ;;  %v1445_v27 = vpop.f32.mrf.mxu1  ;;  %v6309_v21 = vld [vmem:[#allocation6 + $0x7c0] ss:$16 sps:$4 sm:$0xff]   ;;  %v6314_v22 = vld [vmem:[#allocation6 + $0x5a4] ss:$16 sps:$4 sm:$0xff]  }
 0x16e   :  { %v1403_v30 = vadd.f32 %v1402_v26, %v339_v3  ;;  %v1446_v31 = vadd.f32 %v1445_v27, %v347_v20  ;;  %v1620_v32 = vpack.c.bf16 %v1401_v23, %v1397_v24  ;;  %v1622_v33 = vpack.c.bf16 %v1444_v48, %v1440_v25  ;;  %v6311_v3 = vld [vmem:[#allocation6 + $0x7c4] ss:$16 sps:$4 sm:$0xff]   ;;  %v6306_v20 = vld [vmem:[#allocation6 + $0x5c0] ss:$16 sps:$4 sm:$0xff]  }
 0x16f   :  { %v6317_v23 = vld [vmem:[#allocation6 + $0x7a4] ss:$16 sps:$4 sm:$0xff]   ;;  %v6312_v48 = vld [vmem:[#allocation6 + $0x5a0] ss:$16 sps:$4 sm:$0xff]  }
 0x170   :  { %v1621_v34 = vpack.c.bf16 %v1403_v30, %v1399_v28  ;;  %v1623_v35 = vpack.c.bf16 %v1446_v31, %v1442_v29  ;;  %v7158_v43 = vmax.bf16 %v7030_v40, %v1620_v32  ;;  %v7161_v44 = vmax.bf16 %v7030_v40, %v1622_v33  ;;  %v6315_v24 = vld [vmem:[#allocation6 + $0x7a0] ss:$16 sps:$4 sm:$0xff]   ;;  %v6320_v25 = vld [vmem:[#allocation6 + $0x584] ss:$16 sps:$4 sm:$0xff]  }
 0x171   :  { %v6323_v26 = vld [vmem:[#allocation6 + $0x784] ss:$16 sps:$4 sm:$0xff]   ;;  %v6318_v27 = vld [vmem:[#allocation6 + $0x580] ss:$16 sps:$4 sm:$0xff]  }
 0x172   :  { %v7152_v41 = vmax.bf16 %v7030_v40, %v1621_v34  ;;  %v7155_v42 = vmax.bf16 %v7030_v40, %v1623_v35  ;;  %v6321_v28 = vld [vmem:[#allocation6 + $0x780] ss:$16 sps:$4 sm:$0xff]   ;;  %v6326_v29 = vld [vmem:[#allocation6 + $0x564] ss:$16 sps:$4 sm:$0xff]  }
 0x173   :  { %v6329_v30 = vld [vmem:[#allocation6 + $0x764] ss:$16 sps:$4 sm:$0xff]   ;;  %v6324_v31 = vld [vmem:[#allocation6 + $0x560] ss:$16 sps:$4 sm:$0xff]  }
 0x174   :  { %4002 = vmatprep.mubr.bf16.mxu0 %v7152_v41  ;;  %4045 = vmatprep.mubr.bf16.mxu1 %v7155_v42  ;;  %v6327_v32 = vld [vmem:[#allocation6 + $0x760] ss:$16 sps:$4 sm:$0xff]   ;;  %v6332_v33 = vld [vmem:[#allocation6 + $0x544] ss:$16 sps:$4 sm:$0xff]  }
 0x175   :  { %4003 = vmatmul.mubr.bf16.vlgmr.msra.gmra.mxu0 %v7158_v43  ;;  %4046 = vmatmul.mubr.bf16.vlgmr.msra.gmra.mxu1 %v7161_v44  ;;  %v6335_v34 = vld [vmem:[#allocation6 + $0x744] ss:$16 sps:$4 sm:$0xff]   ;;  %v6330_v35 = vld [vmem:[#allocation6 + $0x540] ss:$16 sps:$4 sm:$0xff]  }
 0x176   :  { %4057 = vmatpush1.bf16.msra.mxu0 %v6252_v36  ;;  %4100 = vmatpush1.bf16.msra.mxu1 %v6255_v37  ;;  %v6333_v36 = vld [vmem:[#allocation6 + $0x740] ss:$16 sps:$4 sm:$0xff]   ;;  %v350_v37 = vsub.s32 4, %v7127_v8 }
 0x177   :  { %4058 = vmatprep.subr.bf16.mxu0 %v6260_v38  ;;  %4101 = vmatprep.subr.bf16.mxu1 %v6263_v39  ;;  %v358_v38 = vsub.s32 6, %v7127_v8  ;;  %v354_v39 = vsub.s32 5, %v7127_v8 }
 0x17a   :  { %4059 = vmatpush1.bf16.msra.mxu0 %v6258_v45  ;;  %4102 = vmatpush1.bf16.msra.mxu1 %v6261_v46  ;;  %v362_v45 = vsub.s32 7, %v7127_v8 }
 0x17b   :  { %4060 = vmatprep.subr.bf16.mxu0 %v6266_v47  ;;  %4103 = vmatprep.subr.bf16.mxu1 %v6269_v49  ;;  %v6338_v49 = vld [vmem:[#allocation6 + $0x524] ss:$16 sps:$4 sm:$0xff]  }
 0x17e   :  { %4061 = vmatpush1.bf16.msra.mxu0 %v6264_v50  ;;  %4104 = vmatpush1.bf16.msra.mxu1 %v6267_v51  ;;  %v6341_v50 = vld [vmem:[#allocation6 + $0x724] ss:$16 sps:$4 sm:$0xff]   ;;  %v6336_v51 = vld [vmem:[#allocation6 + $0x520] ss:$16 sps:$4 sm:$0xff]  }
 0x17f   :  { %4062 = vmatprep.subr.bf16.mxu0 %v6272_v52  ;;  %4105 = vmatprep.subr.bf16.mxu1 %v6275_v53  ;;  %v351_v52 = vrot.slane %v7129_v9, %v350_v37  ;;  %v359_v53 = vrot.slane %v7129_v9, %v358_v38  ;;  %v6369_v37 = vld [vmem:[#allocation6 + $0xa80] ss:$16 sps:$4 sm:$0xff]   ;;  %v6374_v38 = vld [vmem:[#allocation6 + $0x864] ss:$16 sps:$4 sm:$0xff]  }
 0x182   :  { %4063 = vmatpush1.bf16.msra.mxu0 %v6270_v54  ;;  %4106 = vmatpush1.bf16.msra.mxu1 %v6273_v55 }
 0x183   :  { %4064 = vmatprep.subr.bf16.mxu0 %v6278_v56  ;;  %4107 = vmatprep.subr.bf16.mxu1 %v6281_v57  ;;  %v355_v56 = vrot.slane %v7129_v9, %v354_v39  ;;  %v363_v57 = vrot.slane %v7129_v9, %v362_v45  ;;  %v6372_v39 = vld [vmem:[#allocation6 + $0x860] ss:$16 sps:$4 sm:$0xff]   ;;  %v6377_v45 = vld [vmem:[#allocation6 + $0xa64] ss:$16 sps:$4 sm:$0xff]  }
 0x186   :  { %4065 = vmatpush1.bf16.msra.mxu0 %v6276_v58  ;;  %4108 = vmatpush1.bf16.msra.mxu1 %v6279_v59  ;;  %v6339_v59 = vld [vmem:[#allocation6 + $0x720] ss:$16 sps:$4 sm:$0xff]  }
 0x187   :  { %4066 = vmatprep.subr.bf16.mxu0 %v6284_v60  ;;  %4109 = vmatprep.subr.bf16.mxu1 %v6287_v61  ;;  %v6344_v60 = vld [vmem:[#allocation6 + $0x504] ss:$16 sps:$4 sm:$0xff]  }
 0x18a   :  { %4067 = vmatpush1.bf16.msra.mxu0 %v6282_v62  ;;  %4110 = vmatpush1.bf16.msra.mxu1 %v6285_v63  ;;  %v6342_v63 = vld [vmem:[#allocation6 + $0x500] ss:$16 sps:$4 sm:$0xff]  }
 0x18b   :  { %4068 = vmatprep.subr.bf16.mxu0 %v6290_v0  ;;  %4111 = vmatprep.subr.bf16.mxu1 %v6293_v1  ;;  %v6347_v0 = vld [vmem:[#allocation6 + $0x704] ss:$16 sps:$4 sm:$0xff]  }
 0x18e   :  { %4069 = vmatpush1.bf16.msra.mxu0 %v6288_v2  ;;  %4112 = vmatpush1.bf16.msra.mxu1 %v6291_v4 }
 0x18f   :  { %4070 = vmatprep.subr.bf16.mxu0 %v6296_v5  ;;  %4113 = vmatprep.subr.bf16.mxu1 %v6299_v6 }
 0x192   :  { %4071 = vmatpush1.bf16.msra.mxu0 %v6294_v7  ;;  %4114 = vmatpush1.bf16.msra.mxu1 %v6297_v14 }
 0x193   :  { %4072 = vmatprep.subr.bf16.mxu0 %v6302_v15  ;;  %4115 = vmatprep.subr.bf16.mxu1 %v6305_v16  ;;  %v6345_v16 = vld [vmem:[#allocation6 + $0x700] ss:$16 sps:$4 sm:$0xff]  }
 0x196   :  { %4073 = vmatpush2.bf16.msra.mxu0 %v6300_v17  ;;  %4116 = vmatpush2.bf16.msra.mxu1 %v6303_v18  ;;  %v6350_v17 = vld [vmem:[#allocation6 + $0x8e4] ss:$16 sps:$4 sm:$0xff]  }
 0x197   :  { %4074 = vmatprep.subr.bf16.mxu0 %v6308_v19  ;;  %4117 = vmatprep.subr.bf16.mxu1 %v6311_v3 }
 0x19a   :  { %4075 = vmatpush2.bf16.msra.mxu0 %v6306_v20  ;;  %4118 = vmatpush2.bf16.msra.mxu1 %v6309_v21  ;;  %v6348_v20 = vld [vmem:[#allocation6 + $0x8e0] ss:$16 sps:$4 sm:$0xff]   ;;  %v6353_v21 = vld [vmem:[#allocation6 + $0xae4] ss:$16 sps:$4 sm:$0xff]  }
 0x19b   :  { %4076 = vmatprep.subr.bf16.mxu0 %v6314_v22  ;;  %4119 = vmatprep.subr.bf16.mxu1 %v6317_v23  ;;  %v6351_v22 = vld [vmem:[#allocation6 + $0xae0] ss:$16 sps:$4 sm:$0xff]   ;;  %v6356_v23 = vld [vmem:[#allocation6 + $0x8c4] ss:$16 sps:$4 sm:$0xff]  }
 0x19e   :  { %4077 = vmatpush2.bf16.msra.mxu0 %v6312_v48  ;;  %4120 = vmatpush2.bf16.msra.mxu1 %v6315_v24 }
 0x19f   :  { %4078 = vmatprep.subr.bf16.mxu0 %v6320_v25  ;;  %4121 = vmatprep.subr.bf16.mxu1 %v6323_v26 }
 0x1a2   :  { %4079 = vmatpush2.bf16.msra.mxu0 %v6318_v27  ;;  %4122 = vmatpush2.bf16.msra.mxu1 %v6321_v28  ;;  %v6359_v27 = vld [vmem:[#allocation6 + $0xac4] ss:$16 sps:$4 sm:$0xff]   ;;  %v6354_v28 = vld [vmem:[#allocation6 + $0x8c0] ss:$16 sps:$4 sm:$0xff]  }
 0x1a3   :  { %4080 = vmatprep.subr.bf16.mxu0 %v6326_v29  ;;  %4123 = vmatprep.subr.bf16.mxu1 %v6329_v30  ;;  %v6357_v29 = vld [vmem:[#allocation6 + $0xac0] ss:$16 sps:$4 sm:$0xff]   ;;  %v6362_v30 = vld [vmem:[#allocation6 + $0x8a4] ss:$16 sps:$4 sm:$0xff]  }
 0x1a6   :  { %4081 = vmatpush2.bf16.msra.mxu0 %v6324_v31  ;;  %4124 = vmatpush2.bf16.msra.mxu1 %v6327_v32  ;;  %v6365_v31 = vld [vmem:[#allocation6 + $0xaa4] ss:$16 sps:$4 sm:$0xff]   ;;  %v6360_v32 = vld [vmem:[#allocation6 + $0x8a0] ss:$16 sps:$4 sm:$0xff]  }
 0x1a7   :  { %v1482_v46 = vpop.f32.mrf.mxu0  ;;  %v1525_v47 = vpop.f32.mrf.mxu1  ;;  %4082 = vmatprep.subr.bf16.mxu0 %v6332_v33  ;;  %4125 = vmatprep.subr.bf16.mxu1 %v6335_v34  ;;  %v6363_v33 = vld [vmem:[#allocation6 + $0xaa0] ss:$16 sps:$4 sm:$0xff]   ;;  %v6368_v34 = vld [vmem:[#allocation6 + $0x884] ss:$16 sps:$4 sm:$0xff]  }
 0x1a8   :  { %v1483_v1 = vadd.f32 %v1482_v46, %v351_v52  ;;  %v1526_v2 = vadd.f32 %v1525_v47, %v359_v53  ;;  %v6375_v46 = vld [vmem:[#allocation6 + $0xa60] ss:$16 sps:$4 sm:$0xff]   ;;  %v6380_v47 = vld [vmem:[#allocation6 + $0x844] ss:$16 sps:$4 sm:$0xff]  }
 0x1a9   :  { %v1484_v54 = vpop.f32.mrf.mxu0  ;;  %v1527_v55 = vpop.f32.mrf.mxu1 }
 0x1aa   :  { %4083 = vmatpush2.bf16.msra.mxu0 %v6330_v35  ;;  %4126 = vmatpush2.bf16.msra.mxu1 %v6333_v36  ;;  %v1485_v6 = vadd.f32 %v1484_v54, %v355_v56  ;;  %v1528_v7 = vadd.f32 %v1527_v55, %v363_v57  ;;  %v6371_v35 = vld [vmem:[#allocation6 + $0xa84] ss:$16 sps:$4 sm:$0xff]   ;;  %v6366_v36 = vld [vmem:[#allocation6 + $0x880] ss:$16 sps:$4 sm:$0xff]  }
 0x1ab   :  { %v1486_v8 = vpop.f32.mrf.mxu0  ;;  %v1529_v58 = vpop.f32.mrf.mxu1  ;;  %4084 = vmatprep.subr.bf16.mxu0 %v6338_v49  ;;  %4127 = vmatprep.subr.bf16.mxu1 %v6341_v50  ;;  %v6378_v49 = vld [vmem:[#allocation6 + $0x840] ss:$16 sps:$4 sm:$0xff]   ;;  %v6383_v50 = vld [vmem:[#allocation6 + $0xa44] ss:$16 sps:$4 sm:$0xff]  }
 0x1ac   :  { %v1487_v61 = vadd.f32 %v1486_v8, %v351_v52  ;;  %v1530_v62 = vadd.f32 %v1529_v58, %v359_v53  ;;  %v6386_v52 = vld [vmem:[#allocation6 + $0x824] ss:$16 sps:$4 sm:$0xff]   ;;  %v6384_v53 = vld [vmem:[#allocation6 + $0x820] ss:$16 sps:$4 sm:$0xff]  }
 0x1ad   :  { %v1488_v4 = vpop.f32.mrf.mxu0  ;;  %v1531_v5 = vpop.f32.mrf.mxu1  ;;  %v6389_v54 = vld [vmem:[#allocation6 + $0xa24] ss:$16 sps:$4 sm:$0xff]   ;;  %v6387_v55 = vld [vmem:[#allocation6 + $0xa20] ss:$16 sps:$4 sm:$0xff]  }
 0x1ae   :  { %v1489_v14 = vadd.f32 %v1488_v4, %v355_v56  ;;  %v1532_v9 = vadd.f32 %v1531_v5, %v363_v57  ;;  %4085 = vmatpush2.bf16.msra.mxu0 %v6336_v51  ;;  %v1624_v15 = vpack.c.bf16 %v1487_v61, %v1483_v1  ;;  %4128 = vmatpush2.bf16.msra.mxu1 %v6339_v59  ;;  %v6381_v51 = vld [vmem:[#allocation6 + $0xa40] ss:$16 sps:$4 sm:$0xff]   ;;  %v6392_v56 = vld [vmem:[#allocation6 + $0x804] ss:$16 sps:$4 sm:$0xff]  }
 0x1af   :  { %4086 = vmatprep.subr.bf16.mxu0 %v6344_v60  ;;  %v1626_v18 = vpack.c.bf16 %v1530_v62, %v1526_v2  ;;  %4129 = vmatprep.subr.bf16.mxu1 %v6347_v0  ;;  %v6390_v57 = vld [vmem:[#allocation6 + $0x800] ss:$16 sps:$4 sm:$0xff]   ;;  %v6395_v8 = vld [vmem:[#allocation6 + $0xa04] ss:$16 sps:$4 sm:$0xff]  }
 0x1b0   :  { %v1625_v19 = vpack.c.bf16 %v1489_v14, %v1485_v6  ;;  %v1627_v3 = vpack.c.bf16 %v1532_v9, %v1528_v7  ;;  %v7182_v25 = vmax.bf16 %v7030_v40, %v1624_v15  ;;  %v6393_v58 = vld [vmem:[#allocation6 + $0xa00] ss:$16 sps:$4 sm:$0xff]   ;;  %v6398_v59 = vld [vmem:[#allocation6 + $0x9e4] ss:$16 sps:$4 sm:$0xff]  }
 0x1b1   :  { %v7185_v26 = vmax.bf16 %v7030_v40, %v1626_v18  ;;  %v6396_v60 = vld [vmem:[#allocation6 + $0x9e0] ss:$16 sps:$4 sm:$0xff]   ;;  %v6401_v61 = vld [vmem:[#allocation6 + $0xbe4] ss:$16 sps:$4 sm:$0xff]  }
 0x1b2   :  { %4087 = vmatpush2.bf16.msra.mxu0 %v6342_v63  ;;  %v7176_v48 = vmax.bf16 %v7030_v40, %v1625_v19  ;;  %v7179_v24 = vmax.bf16 %v7030_v40, %v1627_v3  ;;  %4130 = vmatpush2.bf16.msra.mxu1 %v6345_v16  ;;  %v6399_v62 = vld [vmem:[#allocation6 + $0xbe0] ss:$16 sps:$4 sm:$0xff]   ;;  %v6404_v63 = vld [vmem:[#allocation6 + $0x9c4] ss:$16 sps:$4 sm:$0xff]  }
 0x1b3   :  { %4142 = vmatprep.subr.bf16.mxu0 %v6350_v17  ;;  %4185 = vmatprep.subr.bf16.mxu1 %v6353_v21  ;;  %v6402_v0 = vld [vmem:[#allocation6 + $0x9c0] ss:$16 sps:$4 sm:$0xff]   ;;  %v6407_v1 = vld [vmem:[#allocation6 + $0xbc4] ss:$16 sps:$4 sm:$0xff]   ;;  %v329_v21 = vld [vmem:[#allocation4 + $0x8] sm:$0xf] }
 0x1b4   :  { %4088 = vmatprep.mubr.bf16.mxu0 %v7176_v48  ;;  %4131 = vmatprep.mubr.bf16.mxu1 %v7179_v24  ;;  %v6405_v2 = vld [vmem:[#allocation6 + $0xbc0] ss:$16 sps:$4 sm:$0xff]   ;;  %v6410_v4 = vld [vmem:[#allocation6 + $0x9a4] ss:$16 sps:$4 sm:$0xff]  }
 0x1b5   :  { %4089 = vmatmul.mubr.bf16.vlgmr.msra.gmra.mxu0 %v7182_v25  ;;  %4132 = vmatmul.mubr.bf16.vlgmr.msra.gmra.mxu1 %v7185_v26  ;;  %v6408_v5 = vld [vmem:[#allocation6 + $0x9a0] ss:$16 sps:$4 sm:$0xff]   ;;  %v6413_v6 = vld [vmem:[#allocation6 + $0xba4] ss:$16 sps:$4 sm:$0xff]  }
 0x1b6   :  { %4143 = vmatpush1.bf16.msra.mxu0 %v6348_v20  ;;  %4186 = vmatpush1.bf16.msra.mxu1 %v6351_v22  ;;  %v6411_v7 = vld [vmem:[#allocation6 + $0xba0] ss:$16 sps:$4 sm:$0xff]   ;;  %v6416_v14 = vld [vmem:[#allocation6 + $0x984] ss:$16 sps:$4 sm:$0xff]  }
 0x1b7   :  { %4144 = vmatprep.subr.bf16.mxu0 %v6356_v23  ;;  %4187 = vmatprep.subr.bf16.mxu1 %v6359_v27  ;;  %v6414_v9 = vld [vmem:[#allocation6 + $0x980] ss:$16 sps:$4 sm:$0xff]   ;;  %v6419_v15 = vld [vmem:[#allocation6 + $0xb84] ss:$16 sps:$4 sm:$0xff]  }
 0x1b8   :  { %v6417_v16 = vld [vmem:[#allocation6 + $0xb80] ss:$16 sps:$4 sm:$0xff]   ;;  %v6422_v17 = vld [vmem:[#allocation6 + $0x964] ss:$16 sps:$4 sm:$0xff]  }
 0x1b9   :  { %v6420_v18 = vld [vmem:[#allocation6 + $0x960] ss:$16 sps:$4 sm:$0xff]   ;;  %v6425_v19 = vld [vmem:[#allocation6 + $0xb64] ss:$16 sps:$4 sm:$0xff]  }
 0x1ba   :  { %4145 = vmatpush1.bf16.msra.mxu0 %v6354_v28  ;;  %4188 = vmatpush1.bf16.msra.mxu1 %v6357_v29  ;;  %v6423_v3 = vld [vmem:[#allocation6 + $0xb60] ss:$16 sps:$4 sm:$0xff]   ;;  %v6428_v20 = vld [vmem:[#allocation6 + $0x944] ss:$16 sps:$4 sm:$0xff]  }
 0x1bb   :  { %4146 = vmatprep.subr.bf16.mxu0 %v6362_v30  ;;  %4189 = vmatprep.subr.bf16.mxu1 %v6365_v31  ;;  %v6426_v22 = vld [vmem:[#allocation6 + $0x940] ss:$16 sps:$4 sm:$0xff]   ;;  %v6431_v23 = vld [vmem:[#allocation6 + $0xb44] ss:$16 sps:$4 sm:$0xff]  }
 0x1bc   :  { %v6429_v29 = vld [vmem:[#allocation6 + $0xb40] ss:$16 sps:$4 sm:$0xff]   ;;  %v6434_v30 = vld [vmem:[#allocation6 + $0x924] ss:$16 sps:$4 sm:$0xff]  }
 0x1bd   :  { %v6437_v31 = vld [vmem:[#allocation6 + $0xb24] ss:$16 sps:$4 sm:$0xff]  }
 0x1be   :  { %4147 = vmatpush1.bf16.msra.mxu0 %v6360_v32  ;;  %4190 = vmatpush1.bf16.msra.mxu1 %v6363_v33  ;;  %v6432_v32 = vld [vmem:[#allocation6 + $0x920] ss:$16 sps:$4 sm:$0xff]   ;;  %v367_v33 = vrot.slane %v329_v21, %v7132_v10 }
 0x1bf   :  { %4148 = vmatprep.subr.bf16.mxu0 %v6368_v34  ;;  %4191 = vmatprep.subr.bf16.mxu1 %v6371_v35  ;;  %v375_v34 = vrot.slane %v329_v21, %v7135_v11 }
 0x1c2   :  { %4149 = vmatpush1.bf16.msra.mxu0 %v6366_v36  ;;  %4192 = vmatpush1.bf16.msra.mxu1 %v6369_v37  ;;  %v371_v37 = vrot.slane %v329_v21, %v7138_v12 }
 0x1c3   :  { %4150 = vmatprep.subr.bf16.mxu0 %v6374_v38  ;;  %4193 = vmatprep.subr.bf16.mxu1 %v6377_v45  ;;  %v379_v38 = vrot.slane %v329_v21, %v7141_v13  ;;  %v6459_v21 = vld [vmem:[#allocation6 + $0x2a8] ss:$16 sps:$4 sm:$0xff]  }
 0x1c6   :  { %4151 = vmatpush1.bf16.msra.mxu0 %v6372_v39  ;;  %4194 = vmatpush1.bf16.msra.mxu1 %v6375_v46  ;;  %v6435_v46 = vld [vmem:[#allocation6 + $0xb20] ss:$16 sps:$4 sm:$0xff]  }
 0x1c7   :  { %4152 = vmatprep.subr.bf16.mxu0 %v6380_v47  ;;  %4195 = vmatprep.subr.bf16.mxu1 %v6383_v50  ;;  %v6440_v47 = vld [vmem:[#allocation6 + $0x904] ss:$16 sps:$4 sm:$0xff]  }
 0x1ca   :  { %4153 = vmatpush1.bf16.msra.mxu0 %v6378_v49  ;;  %4196 = vmatpush1.bf16.msra.mxu1 %v6381_v51  ;;  %v6438_v51 = vld [vmem:[#allocation6 + $0x900] ss:$16 sps:$4 sm:$0xff]  }
 0x1cb   :  { %4154 = vmatprep.subr.bf16.mxu0 %v6386_v52  ;;  %4197 = vmatprep.subr.bf16.mxu1 %v6389_v54  ;;  %v6443_v52 = vld [vmem:[#allocation6 + $0xb04] ss:$16 sps:$4 sm:$0xff]  }
 0x1ce   :  { %4155 = vmatpush1.bf16.msra.mxu0 %v6384_v53  ;;  %4198 = vmatpush1.bf16.msra.mxu1 %v6387_v55 }
 0x1cf   :  { %4156 = vmatprep.subr.bf16.mxu0 %v6392_v56  ;;  %4199 = vmatprep.subr.bf16.mxu1 %v6395_v8 }
 0x1d2   :  { %4157 = vmatpush1.bf16.msra.mxu0 %v6390_v57  ;;  %4200 = vmatpush1.bf16.msra.mxu1 %v6393_v58 }
 0x1d3   :  { %4158 = vmatprep.subr.bf16.mxu0 %v6398_v59  ;;  %4201 = vmatprep.subr.bf16.mxu1 %v6401_v61  ;;  %v6441_v61 = vld [vmem:[#allocation6 + $0xb00] ss:$16 sps:$4 sm:$0xff]  }
 0x1d6   :  { %4159 = vmatpush2.bf16.msra.mxu0 %v6396_v60  ;;  %4202 = vmatpush2.bf16.msra.mxu1 %v6399_v62  ;;  %v6446_v62 = vld [vmem:[#allocation6 + $0xec] ss:$16 sps:$4 sm:$0xff]  }
 0x1d7   :  { %4160 = vmatprep.subr.bf16.mxu0 %v6404_v63  ;;  %4203 = vmatprep.subr.bf16.mxu1 %v6407_v1 }
 0x1da   :  { %4161 = vmatpush2.bf16.msra.mxu0 %v6402_v0  ;;  %4204 = vmatpush2.bf16.msra.mxu1 %v6405_v2  ;;  %v6449_v2 = vld [vmem:[#allocation6 + $0x2ec] ss:$16 sps:$4 sm:$0xff]  }
 0x1db   :  { %4162 = vmatprep.subr.bf16.mxu0 %v6410_v4  ;;  %4205 = vmatprep.subr.bf16.mxu1 %v6413_v6  ;;  %v6444_v6 = vld [vmem:[#allocation6 + $0xe8] ss:$16 sps:$4 sm:$0xff]  }
 0x1de   :  { %4163 = vmatpush2.bf16.msra.mxu0 %v6408_v5  ;;  %4206 = vmatpush2.bf16.msra.mxu1 %v6411_v7 }
 0x1df   :  { %4164 = vmatprep.subr.bf16.mxu0 %v6416_v14  ;;  %4207 = vmatprep.subr.bf16.mxu1 %v6419_v15  ;;  %v6447_v14 = vld [vmem:[#allocation6 + $0x2e8] ss:$16 sps:$4 sm:$0xff]   ;;  %v6452_v15 = vld [vmem:[#allocation6 + $0xcc] ss:$16 sps:$4 sm:$0xff]  }
 0x1e2   :  { %4165 = vmatpush2.bf16.msra.mxu0 %v6414_v9  ;;  %4208 = vmatpush2.bf16.msra.mxu1 %v6417_v16  ;;  %v6455_v16 = vld [vmem:[#allocation6 + $0x2cc] ss:$16 sps:$4 sm:$0xff]  }
 0x1e3   :  { %4166 = vmatprep.subr.bf16.mxu0 %v6422_v17  ;;  %4209 = vmatprep.subr.bf16.mxu1 %v6425_v19  ;;  %v6450_v17 = vld [vmem:[#allocation6 + $0xc8] ss:$16 sps:$4 sm:$0xff]   ;;  %v6458_v19 = vld [vmem:[#allocation6 + $0xac] ss:$16 sps:$4 sm:$0xff]  }
 0x1e6   :  { %4167 = vmatpush2.bf16.msra.mxu0 %v6420_v18  ;;  %4210 = vmatpush2.bf16.msra.mxu1 %v6423_v3  ;;  %v6453_v18 = vld [vmem:[#allocation6 + $0x2c8] ss:$16 sps:$4 sm:$0xff]   ;;  %v6461_v3 = vld [vmem:[#allocation6 + $0x2ac] ss:$16 sps:$4 sm:$0xff]  }
 0x1e7   :  { %v1568_v27 = vpop.f32.mrf.mxu0  ;;  %v1611_v28 = vpop.f32.mrf.mxu1  ;;  %4168 = vmatprep.subr.bf16.mxu0 %v6428_v20  ;;  %4211 = vmatprep.subr.bf16.mxu1 %v6431_v23  ;;  %v6456_v20 = vld [vmem:[#allocation6 + $0xa8] ss:$16 sps:$4 sm:$0xff]   ;;  %v6467_v23 = vld [vmem:[#allocation6 + $0x28c] ss:$16 sps:$4 sm:$0xff]  }
 0x1e8   :  { %v1569_v53 = vadd.f32 %v1568_v27, %v367_v33  ;;  %v1612_v54 = vadd.f32 %v1611_v28, %v375_v34  ;;  %v6462_v27 = vld [vmem:[#allocation6 + $0x88] ss:$16 sps:$4 sm:$0xff]   ;;  %v6470_v28 = vld [vmem:[#allocation6 + $0x6c] ss:$16 sps:$4 sm:$0xff]  }
 0x1e9   :  { %v1570_v35 = vpop.f32.mrf.mxu0  ;;  %v1613_v36 = vpop.f32.mrf.mxu1 }
 0x1ea   :  { %4169 = vmatpush2.bf16.msra.mxu0 %v6426_v22  ;;  %4212 = vmatpush2.bf16.msra.mxu1 %v6429_v29  ;;  %v1571_v57 = vadd.f32 %v1570_v35, %v371_v37  ;;  %v1614_v8 = vadd.f32 %v1613_v36, %v379_v38  ;;  %v6464_v22 = vld [vmem:[#allocation6 + $0x8c] ss:$16 sps:$4 sm:$0xff]  }
 0x1eb   :  { %v1572_v39 = vpop.f32.mrf.mxu0  ;;  %v1615_v45 = vpop.f32.mrf.mxu1  ;;  %4170 = vmatprep.subr.bf16.mxu0 %v6434_v30  ;;  %4213 = vmatprep.subr.bf16.mxu1 %v6437_v31  ;;  %v6473_v29 = vld [vmem:[#allocation6 + $0x26c] ss:$16 sps:$4 sm:$0xff]   ;;  %v6471_v30 = vld [vmem:[#allocation6 + $0x268] ss:$16 sps:$4 sm:$0xff]  }
 0x1ec   :  { %v1573_v49 = vadd.f32 %v1572_v39, %v367_v33  ;;  %v1616_v50 = vadd.f32 %v1615_v45, %v375_v34  ;;  %v6476_v31 = vld [vmem:[#allocation6 + $0x4c] ss:$16 sps:$4 sm:$0xff]   ;;  %v6474_v33 = vld [vmem:[#allocation6 + $0x48] ss:$16 sps:$4 sm:$0xff]  }
 0x1ed   :  { %v1574_v55 = vpop.f32.mrf.mxu0  ;;  %v1617_v56 = vpop.f32.mrf.mxu1  ;;  %v6477_v34 = vld [vmem:[#allocation6 + $0x248] ss:$16 sps:$4 sm:$0xff]   ;;  %v6482_v35 = vld [vmem:[#allocation6 + $0x2c] ss:$16 sps:$4 sm:$0xff]  }
 0x1ee   :  { %v1575_v58 = vadd.f32 %v1574_v55, %v371_v37  ;;  %v1618_v59 = vadd.f32 %v1617_v56, %v379_v38  ;;  %4171 = vmatpush2.bf16.msra.mxu0 %v6432_v32  ;;  %v1628_v60 = vpack.c.bf16 %v1573_v49, %v1569_v53  ;;  %4214 = vmatpush2.bf16.msra.mxu1 %v6435_v46  ;;  %v6479_v32 = vld [vmem:[#allocation6 + $0x24c] ss:$16 sps:$4 sm:$0xff]   ;;  %v6480_v37 = vld [vmem:[#allocation6 + $0x28] ss:$16 sps:$4 sm:$0xff]  }
 0x1ef   :  { %4172 = vmatprep.subr.bf16.mxu0 %v6440_v47  ;;  %v1630_v63 = vpack.c.bf16 %v1616_v50, %v1612_v54  ;;  %4215 = vmatprep.subr.bf16.mxu1 %v6443_v52  ;;  %v6485_v36 = vld [vmem:[#allocation6 + $0x22c] ss:$16 sps:$4 sm:$0xff]   ;;  %v6483_v38 = vld [vmem:[#allocation6 + $0x228] ss:$16 sps:$4 sm:$0xff]  }
 0x1f0   :  { %v1629_v0 = vpack.c.bf16 %v1575_v58, %v1571_v57  ;;  %v1631_v1 = vpack.c.bf16 %v1618_v59, %v1614_v8  ;;  %v7202_v7 = vmax.bf16 %v7030_v40, %v1628_v60  ;;  %v6488_v39 = vld [vmem:[#allocation6 + $0xc] ss:$16 sps:$4 sm:$0xff]   ;;  %v6486_v46 = vld [vmem:[#allocation6 + $0x8] ss:$16 sps:$4 sm:$0xff]  }
 0x1f1   :  { %v7205_v9 = vmax.bf16 %v7030_v40, %v1630_v63  ;;  %v6491_v45 = vld [vmem:[#allocation6 + $0x20c] ss:$16 sps:$4 sm:$0xff]   ;;  %v6489_v47 = vld [vmem:[#allocation6 + $0x208] ss:$16 sps:$4 sm:$0xff]  }
 0x1f2   :  { %4173 = vmatpush2.bf16.msra.mxu0 %v6438_v51  ;;  %v7196_v4 = vmax.bf16 %v7030_v40, %v1629_v0  ;;  %v7199_v5 = vmax.bf16 %v7030_v40, %v1631_v1  ;;  %4216 = vmatpush2.bf16.msra.mxu1 %v6441_v61  ;;  %v6494_v49 = vld [vmem:[#allocation6 + $0x1ec] ss:$16 sps:$4 sm:$0xff]   ;;  %v6492_v51 = vld [vmem:[#allocation6 + $0x1e8] ss:$16 sps:$4 sm:$0xff]  }
 0x1f3   :  { %4228 = vmatprep.subr.bf16.mxu0 %v6446_v62  ;;  %4271 = vmatprep.subr.bf16.mxu1 %v6449_v2  ;;  %v6497_v50 = vld [vmem:[#allocation6 + $0x3ec] ss:$16 sps:$4 sm:$0xff]   ;;  %v6495_v52 = vld [vmem:[#allocation6 + $0x3e8] ss:$16 sps:$4 sm:$0xff]  }
 0x1f4   :  { %4174 = vmatprep.mubr.bf16.mxu0 %v7196_v4  ;;  %4217 = vmatprep.mubr.bf16.mxu1 %v7199_v5  ;;  %v6500_v53 = vld [vmem:[#allocation6 + $0x1cc] ss:$16 sps:$4 sm:$0xff]   ;;  %v6498_v55 = vld [vmem:[#allocation6 + $0x1c8] ss:$16 sps:$4 sm:$0xff]  }
 0x1f5   :  { %4175 = vmatmul.mubr.bf16.vlgmr.msra.gmra.mxu0 %v7202_v7  ;;  %4218 = vmatmul.mubr.bf16.vlgmr.msra.gmra.mxu1 %v7205_v9  ;;  %v6503_v54 = vld [vmem:[#allocation6 + $0x3cc] ss:$16 sps:$4 sm:$0xff]   ;;  %v6501_v56 = vld [vmem:[#allocation6 + $0x3c8] ss:$16 sps:$4 sm:$0xff]  }
 0x1f6   :  { %4229 = vmatpush1.bf16.msra.mxu0 %v6444_v6  ;;  %4272 = vmatpush1.bf16.msra.mxu1 %v6447_v14  ;;  %v6506_v57 = vld [vmem:[#allocation6 + $0x1ac] ss:$16 sps:$4 sm:$0xff]   ;;  %v6504_v58 = vld [vmem:[#allocation6 + $0x1a8] ss:$16 sps:$4 sm:$0xff]  }
 0x1f7   :  { %4260 = vmatprep.mubr.bf16.mxu0 %v7152_v41  ;;  %4303 = vmatprep.mubr.bf16.mxu1 %v7155_v42  ;;  %v6465_v41 = vld [vmem:[#allocation6 + $0x288] ss:$16 sps:$4 sm:$0xff]   ;;  %v6509_v8 = vld [vmem:[#allocation6 + $0x3ac] ss:$16 sps:$4 sm:$0xff]  }
 0x1f8   :  { %4230 = vmatprep.subr.bf16.mxu0 %v6452_v15  ;;  %4273 = vmatprep.subr.bf16.mxu1 %v6455_v16  ;;  %v6468_v42 = vld [vmem:[#allocation6 + $0x68] ss:$16 sps:$4 sm:$0xff]   ;;  %v6512_v60 = vld [vmem:[#allocation6 + $0x18c] ss:$16 sps:$4 sm:$0xff]  }
 0x1f9   :  { %v6507_v59 = vld [vmem:[#allocation6 + $0x3a8] ss:$16 sps:$4 sm:$0xff]   ;;  %v6515_v61 = vld [vmem:[#allocation6 + $0x38c] ss:$16 sps:$4 sm:$0xff]  }
 0x1fa   :  { %4231 = vmatpush1.bf16.msra.mxu0 %v6450_v17  ;;  %4274 = vmatpush1.bf16.msra.mxu1 %v6453_v18  ;;  %v6510_v62 = vld [vmem:[#allocation6 + $0x188] ss:$16 sps:$4 sm:$0xff]   ;;  %v6518_v0 = vld [vmem:[#allocation6 + $0x16c] ss:$16 sps:$4 sm:$0xff]  }
 0x1fb   :  { %4232 = vmatprep.subr.bf16.mxu0 %v6458_v19  ;;  %4275 = vmatprep.subr.bf16.mxu1 %v6461_v3  ;;  %v6513_v63 = vld [vmem:[#allocation6 + $0x388] ss:$16 sps:$4 sm:$0xff]   ;;  %v6521_v1 = vld [vmem:[#allocation6 + $0x36c] ss:$16 sps:$4 sm:$0xff]  }
 0x1fc   :  { %v6516_v2 = vld [vmem:[#allocation6 + $0x168] ss:$16 sps:$4 sm:$0xff]   ;;  %v6524_v14 = vld [vmem:[#allocation6 + $0x14c] ss:$16 sps:$4 sm:$0xff]  }
 0x1fd   :  { %v6519_v6 = vld [vmem:[#allocation6 + $0x368] ss:$16 sps:$4 sm:$0xff]   ;;  %v6527_v15 = vld [vmem:[#allocation6 + $0x34c] ss:$16 sps:$4 sm:$0xff]  }
 0x1fe   :  { %4233 = vmatpush1.bf16.msra.mxu0 %v6456_v20  ;;  %4276 = vmatpush1.bf16.msra.mxu1 %v6459_v21  ;;  %v6522_v16 = vld [vmem:[#allocation6 + $0x148] ss:$16 sps:$4 sm:$0xff]   ;;  %v6530_v18 = vld [vmem:[#allocation6 + $0x12c] ss:$16 sps:$4 sm:$0xff]  }
 0x1ff   :  { %4234 = vmatprep.subr.bf16.mxu0 %v6464_v22  ;;  %4277 = vmatprep.subr.bf16.mxu1 %v6467_v23  ;;  %v6525_v17 = vld [vmem:[#allocation6 + $0x348] ss:$16 sps:$4 sm:$0xff]   ;;  %v6533_v19 = vld [vmem:[#allocation6 + $0x32c] ss:$16 sps:$4 sm:$0xff]  }
 0x200   :  { %v6528_v3 = vld [vmem:[#allocation6 + $0x128] ss:$16 sps:$4 sm:$0xff]   ;;  %v6536_v21 = vld [vmem:[#allocation6 + $0x10c] ss:$16 sps:$4 sm:$0xff]  }
 0x201   :  { %v6531_v20 = vld [vmem:[#allocation6 + $0x328] ss:$16 sps:$4 sm:$0xff]   ;;  %v6539_v22 = vld [vmem:[#allocation6 + $0x30c] ss:$16 sps:$4 sm:$0xff]  }
 0x202   :  { %4235 = vmatpush1.bf16.msra.mxu0 %v6462_v27  ;;  %4278 = vmatpush1.bf16.msra.mxu1 %v6465_v41  ;;  %v6534_v23 = vld [vmem:[#allocation6 + $0x108] ss:$16 sps:$4 sm:$0xff]   ;;  %v6542_v41 = vld [vmem:[#allocation6 + $0x4ec] ss:$16 sps:$4 sm:$0xff]  }
 0x203   :  { %4236 = vmatprep.subr.bf16.mxu0 %v6470_v28  ;;  %4279 = vmatprep.subr.bf16.mxu1 %v6473_v29  ;;  %v6537_v27 = vld [vmem:[#allocation6 + $0x308] ss:$16 sps:$4 sm:$0xff]   ;;  %v6545_v28 = vld [vmem:[#allocation6 + $0x6ec] ss:$16 sps:$4 sm:$0xff]  }
 0x204   :  { %v6540_v29 = vld [vmem:[#allocation6 + $0x4e8] ss:$16 sps:$4 sm:$0xff]  }
 0x206   :  { %4237 = vmatpush1.bf16.msra.mxu0 %v6468_v42  ;;  %4280 = vmatpush1.bf16.msra.mxu1 %v6471_v30  ;;  %v6543_v42 = vld [vmem:[#allocation6 + $0x6e8] ss:$16 sps:$4 sm:$0xff]   ;;  %v6548_v30 = vld [vmem:[#allocation6 + $0x4cc] ss:$16 sps:$4 sm:$0xff]  }
 0x207   :  { %4238 = vmatprep.subr.bf16.mxu0 %v6476_v31  ;;  %4281 = vmatprep.subr.bf16.mxu1 %v6479_v32  ;;  %v6551_v31 = vld [vmem:[#allocation6 + $0x6cc] ss:$16 sps:$4 sm:$0xff]   ;;  %v6546_v32 = vld [vmem:[#allocation6 + $0x4c8] ss:$16 sps:$4 sm:$0xff]  }
 0x20a   :  { %4239 = vmatpush1.bf16.msra.mxu0 %v6474_v33  ;;  %4282 = vmatpush1.bf16.msra.mxu1 %v6477_v34  ;;  %v6549_v33 = vld [vmem:[#allocation6 + $0x6c8] ss:$16 sps:$4 sm:$0xff]   ;;  %v6554_v34 = vld [vmem:[#allocation6 + $0x4ac] ss:$16 sps:$4 sm:$0xff]  }
 0x20b   :  { %4240 = vmatprep.subr.bf16.mxu0 %v6482_v35  ;;  %4283 = vmatprep.subr.bf16.mxu1 %v6485_v36  ;;  %v6557_v35 = vld [vmem:[#allocation6 + $0x6ac] ss:$16 sps:$4 sm:$0xff]   ;;  %v6552_v36 = vld [vmem:[#allocation6 + $0x4a8] ss:$16 sps:$4 sm:$0xff]  }
 0x20e   :  { %4241 = vmatpush1.bf16.msra.mxu0 %v6480_v37  ;;  %4284 = vmatpush1.bf16.msra.mxu1 %v6483_v38  ;;  %v6560_v37 = vld [vmem:[#allocation6 + $0x48c] ss:$16 sps:$4 sm:$0xff]   ;;  %v6558_v38 = vld [vmem:[#allocation6 + $0x488] ss:$16 sps:$4 sm:$0xff]  }
 0x20f   :  { %4242 = vmatprep.subr.bf16.mxu0 %v6488_v39  ;;  %4285 = vmatprep.subr.bf16.mxu1 %v6491_v45  ;;  %v6566_v39 = vld [vmem:[#allocation6 + $0x46c] ss:$16 sps:$4 sm:$0xff]  }
 0x210   :  { %v6569_v45 = vld [vmem:[#allocation6 + $0x66c] ss:$16 sps:$4 sm:$0xff]  }
 0x212   :  { %4243 = vmatpush1.bf16.msra.mxu0 %v6486_v46  ;;  %4286 = vmatpush1.bf16.msra.mxu1 %v6489_v47  ;;  %v6567_v46 = vld [vmem:[#allocation6 + $0x668] ss:$16 sps:$4 sm:$0xff]   ;;  %v6572_v47 = vld [vmem:[#allocation6 + $0x44c] ss:$16 sps:$4 sm:$0xff]  }
 0x213   :  { %4244 = vmatprep.subr.bf16.mxu0 %v6494_v49  ;;  %4287 = vmatprep.subr.bf16.mxu1 %v6497_v50  ;;  %v6575_v49 = vld [vmem:[#allocation6 + $0x64c] ss:$16 sps:$4 sm:$0xff]   ;;  %v6570_v50 = vld [vmem:[#allocation6 + $0x448] ss:$16 sps:$4 sm:$0xff]  }
 0x216   :  { %4245 = vmatpush2.bf16.msra.mxu0 %v6492_v51  ;;  %4288 = vmatpush2.bf16.msra.mxu1 %v6495_v52  ;;  %v6573_v51 = vld [vmem:[#allocation6 + $0x648] ss:$16 sps:$4 sm:$0xff]   ;;  %v6578_v52 = vld [vmem:[#allocation6 + $0x42c] ss:$16 sps:$4 sm:$0xff]  }
 0x217   :  { %4246 = vmatprep.subr.bf16.mxu0 %v6500_v53  ;;  %4289 = vmatprep.subr.bf16.mxu1 %v6503_v54  ;;  %v6581_v53 = vld [vmem:[#allocation6 + $0x62c] ss:$16 sps:$4 sm:$0xff]   ;;  %v6576_v54 = vld [vmem:[#allocation6 + $0x428] ss:$16 sps:$4 sm:$0xff]  }
 0x21a   :  { %4247 = vmatpush2.bf16.msra.mxu0 %v6498_v55  ;;  %4290 = vmatpush2.bf16.msra.mxu1 %v6501_v56  ;;  %v6579_v55 = vld [vmem:[#allocation6 + $0x628] ss:$16 sps:$4 sm:$0xff]   ;;  %v6584_v56 = vld [vmem:[#allocation6 + $0x40c] ss:$16 sps:$4 sm:$0xff]  }
 0x21b   :  { %4248 = vmatprep.subr.bf16.mxu0 %v6506_v57  ;;  %4291 = vmatprep.subr.bf16.mxu1 %v6509_v8  ;;  %v6587_v57 = vld [vmem:[#allocation6 + $0x60c] ss:$16 sps:$4 sm:$0xff]   ;;  %v6582_v8 = vld [vmem:[#allocation6 + $0x408] ss:$16 sps:$4 sm:$0xff]  }
 0x21e   :  { %4249 = vmatpush2.bf16.msra.mxu0 %v6504_v58  ;;  %4292 = vmatpush2.bf16.msra.mxu1 %v6507_v59  ;;  %v6585_v58 = vld [vmem:[#allocation6 + $0x608] ss:$16 sps:$4 sm:$0xff]   ;;  %v6590_v59 = vld [vmem:[#allocation6 + $0x5ec] ss:$16 sps:$4 sm:$0xff]  }
 0x21f   :  { %4250 = vmatprep.subr.bf16.mxu0 %v6512_v60  ;;  %4293 = vmatprep.subr.bf16.mxu1 %v6515_v61  ;;  %v6593_v60 = vld [vmem:[#allocation6 + $0x7ec] ss:$16 sps:$4 sm:$0xff]   ;;  %v6588_v61 = vld [vmem:[#allocation6 + $0x5e8] ss:$16 sps:$4 sm:$0xff]  }
 0x222   :  { %4251 = vmatpush2.bf16.msra.mxu0 %v6510_v62  ;;  %4294 = vmatpush2.bf16.msra.mxu1 %v6513_v63  ;;  %v6591_v62 = vld [vmem:[#allocation6 + $0x7e8] ss:$16 sps:$4 sm:$0xff]   ;;  %v6596_v63 = vld [vmem:[#allocation6 + $0x5cc] ss:$16 sps:$4 sm:$0xff]  }
 0x223   :  { %4252 = vmatprep.subr.bf16.mxu0 %v6518_v0  ;;  %4295 = vmatprep.subr.bf16.mxu1 %v6521_v1  ;;  %v6599_v0 = vld [vmem:[#allocation6 + $0x7cc] ss:$16 sps:$4 sm:$0xff]   ;;  %v6594_v1 = vld [vmem:[#allocation6 + $0x5c8] ss:$16 sps:$4 sm:$0xff]  }
 0x226   :  { %4253 = vmatpush2.bf16.msra.mxu0 %v6516_v2  ;;  %4296 = vmatpush2.bf16.msra.mxu1 %v6519_v6  ;;  %v6597_v2 = vld [vmem:[#allocation6 + $0x7c8] ss:$16 sps:$4 sm:$0xff]   ;;  %v6602_v6 = vld [vmem:[#allocation6 + $0x5ac] ss:$16 sps:$4 sm:$0xff]  }
 0x227   :  { %4254 = vmatprep.subr.bf16.mxu0 %v6524_v14  ;;  %4297 = vmatprep.subr.bf16.mxu1 %v6527_v15  ;;  %v6605_v14 = vld [vmem:[#allocation6 + $0x7ac] ss:$16 sps:$4 sm:$0xff]   ;;  %v6600_v15 = vld [vmem:[#allocation6 + $0x5a8] ss:$16 sps:$4 sm:$0xff]  }
 0x22a   :  { %4255 = vmatpush2.bf16.msra.mxu0 %v6522_v16  ;;  %4298 = vmatpush2.bf16.msra.mxu1 %v6525_v17  ;;  %v6603_v16 = vld [vmem:[#allocation6 + $0x7a8] ss:$16 sps:$4 sm:$0xff]   ;;  %v6608_v17 = vld [vmem:[#allocation6 + $0x58c] ss:$16 sps:$4 sm:$0xff]  }
 0x22b   :  { %4256 = vmatprep.subr.bf16.mxu0 %v6530_v18  ;;  %4299 = vmatprep.subr.bf16.mxu1 %v6533_v19  ;;  %v6611_v18 = vld [vmem:[#allocation6 + $0x78c] ss:$16 sps:$4 sm:$0xff]   ;;  %v6606_v19 = vld [vmem:[#allocation6 + $0x588] ss:$16 sps:$4 sm:$0xff]  }
 0x22e   :  { %4257 = vmatpush2.bf16.msra.mxu0 %v6528_v3  ;;  %4300 = vmatpush2.bf16.msra.mxu1 %v6531_v20  ;;  %v6609_v3 = vld [vmem:[#allocation6 + $0x788] ss:$16 sps:$4 sm:$0xff]   ;;  %v6614_v20 = vld [vmem:[#allocation6 + $0x56c] ss:$16 sps:$4 sm:$0xff]  }
 0x22f   :  { %4258 = vmatprep.subr.bf16.mxu0 %v6536_v21  ;;  %4301 = vmatprep.subr.bf16.mxu1 %v6539_v22  ;;  %v6617_v21 = vld [vmem:[#allocation6 + $0x76c] ss:$16 sps:$4 sm:$0xff]   ;;  %v6612_v22 = vld [vmem:[#allocation6 + $0x568] ss:$16 sps:$4 sm:$0xff]  }
 0x232   :  { %4259 = vmatpush2.bf16.msra.mxu0 %v6534_v23  ;;  %4302 = vmatpush2.bf16.msra.mxu1 %v6537_v27  ;;  %v6615_v23 = vld [vmem:[#allocation6 + $0x768] ss:$16 sps:$4 sm:$0xff]   ;;  %v6620_v27 = vld [vmem:[#allocation6 + $0x54c] ss:$16 sps:$4 sm:$0xff]  }
 0x233   :  { %4314 = vmatprep.subr.bf16.mxu0 %v6542_v41  ;;  %4357 = vmatprep.subr.bf16.mxu1 %v6545_v28  ;;  %v6623_v41 = vld [vmem:[#allocation6 + $0x74c] ss:$16 sps:$4 sm:$0xff]   ;;  %v6618_v28 = vld [vmem:[#allocation6 + $0x548] ss:$16 sps:$4 sm:$0xff]  }
 0x235   :  { %4261 = vmatmul.mubr.bf16.vlgmr.msra.gmra.mxu0 %v7158_v43  ;;  %4304 = vmatmul.mubr.bf16.vlgmr.msra.gmra.mxu1 %v7161_v44  ;;  %v6555_v43 = vld [vmem:[#allocation6 + $0x6a8] ss:$16 sps:$4 sm:$0xff]   ;;  %v6563_v44 = vld [vmem:[#allocation6 + $0x68c] ss:$16 sps:$4 sm:$0xff]  }
 0x236   :  { %4315 = vmatpush1.bf16.msra.mxu0 %v6540_v29  ;;  %4346 = vmatprep.mubr.bf16.mxu0 %v7176_v48  ;;  %v6561_v48 = vld [vmem:[#allocation6 + $0x688] ss:$16 sps:$4 sm:$0xff]  }
 0x237   :  { %4358 = vmatpush1.bf16.msra.mxu1 %v6543_v42  ;;  %4389 = vmatprep.mubr.bf16.mxu1 %v7179_v24  ;;  %v6564_v24 = vld [vmem:[#allocation6 + $0x468] ss:$16 sps:$4 sm:$0xff]   ;;  %v6626_v42 = vld [vmem:[#allocation6 + $0x52c] ss:$16 sps:$4 sm:$0xff]  }
 0x238   :  { %4316 = vmatprep.subr.bf16.mxu0 %v6548_v30  ;;  %4359 = vmatprep.subr.bf16.mxu1 %v6551_v31  ;;  %v6621_v29 = vld [vmem:[#allocation6 + $0x748] ss:$16 sps:$4 sm:$0xff]   ;;  %v6629_v30 = vld [vmem:[#allocation6 + $0x72c] ss:$16 sps:$4 sm:$0xff]  }
 0x239   :  { %v6624_v31 = vld [vmem:[#allocation6 + $0x528] ss:$16 sps:$4 sm:$0xff]  }
 0x23a   :  { %4317 = vmatpush1.bf16.msra.mxu0 %v6546_v32  ;;  %v6627_v32 = vld [vmem:[#allocation6 + $0x728] ss:$16 sps:$4 sm:$0xff]  }
 0x23b   :  { %4360 = vmatpush1.bf16.msra.mxu1 %v6549_v33  ;;  %4318 = vmatprep.subr.bf16.mxu0 %v6554_v34  ;;  %v6632_v33 = vld [vmem:[#allocation6 + $0x50c] ss:$16 sps:$4 sm:$0xff]  }
 0x23c   :  { %4361 = vmatprep.subr.bf16.mxu1 %v6557_v35  ;;  %v6635_v34 = vld [vmem:[#allocation6 + $0x70c] ss:$16 sps:$4 sm:$0xff]   ;;  %v6630_v35 = vld [vmem:[#allocation6 + $0x508] ss:$16 sps:$4 sm:$0xff]  }
 0x23e   :  { %4319 = vmatpush1.bf16.msra.mxu0 %v6552_v36  ;;  %v6633_v36 = vld [vmem:[#allocation6 + $0x708] ss:$16 sps:$4 sm:$0xff]  }
 0x23f   :  { %4362 = vmatpush1.bf16.msra.mxu1 %v6555_v43  ;;  %4320 = vmatprep.subr.bf16.mxu0 %v6560_v37  ;;  %v6638_v43 = vld [vmem:[#allocation6 + $0x8ec] ss:$16 sps:$4 sm:$0xff]  }
 0x240   :  { %4363 = vmatprep.subr.bf16.mxu1 %v6563_v44  ;;  %v6641_v37 = vld [vmem:[#allocation6 + $0xaec] ss:$16 sps:$4 sm:$0xff]   ;;  %v6636_v44 = vld [vmem:[#allocation6 + $0x8e8] ss:$16 sps:$4 sm:$0xff]  }
 0x242   :  { %4321 = vmatpush1.bf16.msra.mxu0 %v6558_v38  ;;  %v6639_v38 = vld [vmem:[#allocation6 + $0xae8] ss:$16 sps:$4 sm:$0xff]  }
 0x243   :  { %4364 = vmatpush1.bf16.msra.mxu1 %v6561_v48  ;;  %4322 = vmatprep.subr.bf16.mxu0 %v6566_v39  ;;  %v6644_v48 = vld [vmem:[#allocation6 + $0x8cc] ss:$16 sps:$4 sm:$0xff]  }
 0x244   :  { %4365 = vmatprep.subr.bf16.mxu1 %v6569_v45  ;;  %v6647_v39 = vld [vmem:[#allocation6 + $0xacc] ss:$16 sps:$4 sm:$0xff]   ;;  %v6642_v45 = vld [vmem:[#allocation6 + $0x8c8] ss:$16 sps:$4 sm:$0xff]  }
 0x246   :  { %4323 = vmatpush1.bf16.msra.mxu0 %v6564_v24  ;;  %v6645_v24 = vld [vmem:[#allocation6 + $0xac8] ss:$16 sps:$4 sm:$0xff]  }
 0x247   :  { %4366 = vmatpush1.bf16.msra.mxu1 %v6567_v46  ;;  %4324 = vmatprep.subr.bf16.mxu0 %v6572_v47  ;;  %v6650_v46 = vld [vmem:[#allocation6 + $0x8ac] ss:$16 sps:$4 sm:$0xff]  }
 0x248   :  { %4367 = vmatprep.subr.bf16.mxu1 %v6575_v49  ;;  %v6653_v47 = vld [vmem:[#allocation6 + $0xaac] ss:$16 sps:$4 sm:$0xff]   ;;  %v6648_v49 = vld [vmem:[#allocation6 + $0x8a8] ss:$16 sps:$4 sm:$0xff]  }
 0x24a   :  { %4325 = vmatpush1.bf16.msra.mxu0 %v6570_v50  ;;  %v6656_v50 = vld [vmem:[#allocation6 + $0x88c] ss:$16 sps:$4 sm:$0xff]  }
 0x24b   :  { %4368 = vmatpush1.bf16.msra.mxu1 %v6573_v51  ;;  %4326 = vmatprep.subr.bf16.mxu0 %v6578_v52  ;;  %v6654_v51 = vld [vmem:[#allocation6 + $0x888] ss:$16 sps:$4 sm:$0xff]   ;;  %v6662_v52 = vld [vmem:[#allocation6 + $0x86c] ss:$16 sps:$4 sm:$0xff]  }
 0x24c   :  { %4369 = vmatprep.subr.bf16.mxu1 %v6581_v53  ;;  %v6665_v53 = vld [vmem:[#allocation6 + $0xa6c] ss:$16 sps:$4 sm:$0xff]  }
 0x24e   :  { %4327 = vmatpush1.bf16.msra.mxu0 %v6576_v54  ;;  %v6663_v54 = vld [vmem:[#allocation6 + $0xa68] ss:$16 sps:$4 sm:$0xff]  }
 0x24f   :  { %4370 = vmatpush1.bf16.msra.mxu1 %v6579_v55  ;;  %4328 = vmatprep.subr.bf16.mxu0 %v6584_v56  ;;  %v6668_v55 = vld [vmem:[#allocation6 + $0x84c] ss:$16 sps:$4 sm:$0xff]  }
 0x250   :  { %4371 = vmatprep.subr.bf16.mxu1 %v6587_v57  ;;  %v6671_v56 = vld [vmem:[#allocation6 + $0xa4c] ss:$16 sps:$4 sm:$0xff]   ;;  %v6666_v57 = vld [vmem:[#allocation6 + $0x848] ss:$16 sps:$4 sm:$0xff]  }
 0x252   :  { %4329 = vmatpush1.bf16.msra.mxu0 %v6582_v8  ;;  %v6669_v8 = vld [vmem:[#allocation6 + $0xa48] ss:$16 sps:$4 sm:$0xff]  }
 0x253   :  { %4372 = vmatpush1.bf16.msra.mxu1 %v6585_v58  ;;  %4330 = vmatprep.subr.bf16.mxu0 %v6590_v59  ;;  %v6674_v58 = vld [vmem:[#allocation6 + $0x82c] ss:$16 sps:$4 sm:$0xff]  }
 0x254   :  { %4373 = vmatprep.subr.bf16.mxu1 %v6593_v60  ;;  %v6677_v59 = vld [vmem:[#allocation6 + $0xa2c] ss:$16 sps:$4 sm:$0xff]   ;;  %v6672_v60 = vld [vmem:[#allocation6 + $0x828] ss:$16 sps:$4 sm:$0xff]  }
 0x256   :  { %4331 = vmatpush2.bf16.msra.mxu0 %v6588_v61  ;;  %v6675_v61 = vld [vmem:[#allocation6 + $0xa28] ss:$16 sps:$4 sm:$0xff]  }
 0x257   :  { %4374 = vmatpush2.bf16.msra.mxu1 %v6591_v62  ;;  %4332 = vmatprep.subr.bf16.mxu0 %v6596_v63  ;;  %v6680_v62 = vld [vmem:[#allocation6 + $0x80c] ss:$16 sps:$4 sm:$0xff]  }
 0x258   :  { %4375 = vmatprep.subr.bf16.mxu1 %v6599_v0  ;;  %v6683_v63 = vld [vmem:[#allocation6 + $0xa0c] ss:$16 sps:$4 sm:$0xff]   ;;  %v6678_v0 = vld [vmem:[#allocation6 + $0x808] ss:$16 sps:$4 sm:$0xff]  }
 0x25a   :  { %4333 = vmatpush2.bf16.msra.mxu0 %v6594_v1  ;;  %v6681_v1 = vld [vmem:[#allocation6 + $0xa08] ss:$16 sps:$4 sm:$0xff]  }
 0x25b   :  { %4376 = vmatpush2.bf16.msra.mxu1 %v6597_v2  ;;  %4334 = vmatprep.subr.bf16.mxu0 %v6602_v6  ;;  %v6686_v2 = vld [vmem:[#allocation6 + $0x9ec] ss:$16 sps:$4 sm:$0xff]  }
 0x25c   :  { %4377 = vmatprep.subr.bf16.mxu1 %v6605_v14  ;;  %v6689_v6 = vld [vmem:[#allocation6 + $0xbec] ss:$16 sps:$4 sm:$0xff]   ;;  %v6684_v14 = vld [vmem:[#allocation6 + $0x9e8] ss:$16 sps:$4 sm:$0xff]  }
 0x25e   :  { %4335 = vmatpush2.bf16.msra.mxu0 %v6600_v15  ;;  %v6687_v15 = vld [vmem:[#allocation6 + $0xbe8] ss:$16 sps:$4 sm:$0xff]  }
 0x25f   :  { %4378 = vmatpush2.bf16.msra.mxu1 %v6603_v16  ;;  %4336 = vmatprep.subr.bf16.mxu0 %v6608_v17  ;;  %v6692_v16 = vld [vmem:[#allocation6 + $0x9cc] ss:$16 sps:$4 sm:$0xff]  }
 0x260   :  { %4379 = vmatprep.subr.bf16.mxu1 %v6611_v18  ;;  %v6695_v17 = vld [vmem:[#allocation6 + $0xbcc] ss:$16 sps:$4 sm:$0xff]   ;;  %v6690_v18 = vld [vmem:[#allocation6 + $0x9c8] ss:$16 sps:$4 sm:$0xff]  }
 0x262   :  { %4337 = vmatpush2.bf16.msra.mxu0 %v6606_v19  ;;  %v6693_v19 = vld [vmem:[#allocation6 + $0xbc8] ss:$16 sps:$4 sm:$0xff]  }
 0x263   :  { %4380 = vmatpush2.bf16.msra.mxu1 %v6609_v3  ;;  %4338 = vmatprep.subr.bf16.mxu0 %v6614_v20  ;;  %v6698_v3 = vld [vmem:[#allocation6 + $0x9ac] ss:$16 sps:$4 sm:$0xff]  }
 0x264   :  { %4381 = vmatprep.subr.bf16.mxu1 %v6617_v21  ;;  %v6701_v20 = vld [vmem:[#allocation6 + $0xbac] ss:$16 sps:$4 sm:$0xff]   ;;  %v7221_v21 = vpop.f32.mrf.mxu0 }
 0x266   :  { %4339 = vmatpush2.bf16.msra.mxu0 %v6612_v22  ;;  %v7223_v22 = vpop.f32.mrf.mxu1 }
 0x267   :  { %4382 = vmatpush2.bf16.msra.mxu1 %v6615_v23  ;;  %4340 = vmatprep.subr.bf16.mxu0 %v6620_v27  ;;  %v6696_v23 = vld [vmem:[#allocation6 + $0x9a8] ss:$16 sps:$4 sm:$0xff]  }
 0x268   :  { %4383 = vmatprep.subr.bf16.mxu1 %v6623_v41  ;;  %v6699_v27 = vld [vmem:[#allocation6 + $0xba8] ss:$16 sps:$4 sm:$0xff]   ;;  %v6704_v41 = vld [vmem:[#allocation6 + $0x98c] ss:$16 sps:$4 sm:$0xff]  }
 0x26a   :  { %4341 = vmatpush2.bf16.msra.mxu0 %v6618_v28  ;;  %v6707_v28 = vld [vmem:[#allocation6 + $0xb8c] ss:$16 sps:$4 sm:$0xff]  }
 0x26b   :  { %4384 = vmatpush2.bf16.msra.mxu1 %v6621_v29  ;;  %4342 = vmatprep.subr.bf16.mxu0 %v6626_v42  ;;  %v4006_v29 = vpop.f32.mrf.mxu0  ;;  %v4049_v42 = vpop.f32.mrf.mxu1 }
 0x26c   :  { %4385 = vmatprep.subr.bf16.mxu1 %v6629_v30  ;;  %v6702_v30 = vld [vmem:[#allocation6 + $0x988] ss:$16 sps:$4 sm:$0xff]  }
 0x26e   :  { %4343 = vmatpush2.bf16.msra.mxu0 %v6624_v31  ;;  %v6705_v31 = vld [vmem:[#allocation6 + $0xb88] ss:$16 sps:$4 sm:$0xff]  }
 0x26f   :  { %4386 = vmatpush2.bf16.msra.mxu1 %v6627_v32  ;;  %4344 = vmatprep.subr.bf16.mxu0 %v6632_v33  ;;  %v6710_v32 = vld [vmem:[#allocation6 + $0x96c] ss:$16 sps:$4 sm:$0xff]  }
 0x270   :  { %4387 = vmatprep.subr.bf16.mxu1 %v6635_v34  ;;  %v6713_v33 = vld [vmem:[#allocation6 + $0xb6c] ss:$16 sps:$4 sm:$0xff]   ;;  %v7225_v34 = vpop.f32.mrf.mxu0 }
 0x272   :  { %4345 = vmatpush2.bf16.msra.mxu0 %v6630_v35  ;;  %v7227_v35 = vpop.f32.mrf.mxu1 }
 0x273   :  { %4388 = vmatpush2.bf16.msra.mxu1 %v6633_v36  ;;  %4400 = vmatprep.subr.bf16.mxu0 %v6638_v43  ;;  %v6708_v36 = vld [vmem:[#allocation6 + $0x968] ss:$16 sps:$4 sm:$0xff]  }
 0x274   :  { %4443 = vmatprep.subr.bf16.mxu1 %v6641_v37  ;;  %v6711_v43 = vld [vmem:[#allocation6 + $0xb68] ss:$16 sps:$4 sm:$0xff]   ;;  %v6716_v37 = vld [vmem:[#allocation6 + $0x94c] ss:$16 sps:$4 sm:$0xff]  }
 0x275   :  { %4347 = vmatmul.mubr.bf16.vlgmr.msra.gmra.mxu0 %v7182_v25  ;;  %v6651_v25 = vld [vmem:[#allocation6 + $0xaa8] ss:$16 sps:$4 sm:$0xff]  }
 0x276   :  { %4390 = vmatmul.mubr.bf16.vlgmr.msra.gmra.mxu1 %v7185_v26  ;;  %4401 = vmatpush1.bf16.msra.mxu0 %v6636_v44  ;;  %v6659_v26 = vld [vmem:[#allocation6 + $0xa8c] ss:$16 sps:$4 sm:$0xff]  }
 0x277   :  { %4432 = vmatprep.mubr.bf16.mxu0 %v7196_v4  ;;  %4444 = vmatpush1.bf16.msra.mxu1 %v6639_v38  ;;  %v6657_v4 = vld [vmem:[#allocation6 + $0xa88] ss:$16 sps:$4 sm:$0xff]   ;;  %v6719_v44 = vld [vmem:[#allocation6 + $0xb4c] ss:$16 sps:$4 sm:$0xff]   ;;  %v4010_v38 = vpop.f32.mrf.mxu0 }
 0x278   :  { %4475 = vmatprep.mubr.bf16.mxu1 %v7199_v5  ;;  %4402 = vmatprep.subr.bf16.mxu0 %v6644_v48  ;;  %v6660_v5 = vld [vmem:[#allocation6 + $0x868] ss:$16 sps:$4 sm:$0xff]   ;;  %v4053_v48 = vpop.f32.mrf.mxu1 }
 0x279   :  { %4445 = vmatprep.subr.bf16.mxu1 %v6647_v39  ;;  %v6714_v39 = vld [vmem:[#allocation6 + $0x948] ss:$16 sps:$4 sm:$0xff]  }
 0x27a   :  { %4403 = vmatpush1.bf16.msra.mxu0 %v6642_v45  ;;  %v7229_v45 = vpop.f32.mrf.mxu0 }
 0x27b   :  { %4446 = vmatpush1.bf16.msra.mxu1 %v6645_v24  ;;  %4404 = vmatprep.subr.bf16.mxu0 %v6650_v46  ;;  %v6717_v24 = vld [vmem:[#allocation6 + $0xb48] ss:$16 sps:$4 sm:$0xff]   ;;  %v6722_v46 = vld [vmem:[#allocation6 + $0x92c] ss:$16 sps:$4 sm:$0xff]  }
 0x27c   :  { %4447 = vmatprep.subr.bf16.mxu1 %v6653_v47  ;;  %v7231_v47 = vpop.f32.mrf.mxu1 }
 0x27e   :  { %4405 = vmatpush1.bf16.msra.mxu0 %v6648_v49  ;;  %v6725_v49 = vld [vmem:[#allocation6 + $0xb2c] ss:$16 sps:$4 sm:$0xff]  }
 0x27f   :  { %4448 = vmatpush1.bf16.msra.mxu1 %v6651_v25  ;;  %4406 = vmatprep.subr.bf16.mxu0 %v6656_v50  ;;  %v7233_v25 = vld [vmem:[#allocation7] sm:$0xf] }
 0x280   :  { %4449 = vmatprep.subr.bf16.mxu1 %v6659_v26  ;;  %v2037_v50 = vrot.slane %v7233_v25, %v7138_v12  ;;  %v6720_v26 = vld [vmem:[#allocation6 + $0x928] ss:$16 sps:$4 sm:$0xff]  }
 0x282   :  { %4407 = vmatpush1.bf16.msra.mxu0 %v6654_v51  ;;  %v4092_v51 = vpop.f32.mrf.mxu0 }
 0x283   :  { %4450 = vmatpush1.bf16.msra.mxu1 %v6657_v4  ;;  %4408 = vmatprep.subr.bf16.mxu0 %v6662_v52  ;;  %v6723_v4 = vld [vmem:[#allocation6 + $0xb28] ss:$16 sps:$4 sm:$0xff]   ;;  %v6728_v52 = vld [vmem:[#allocation6 + $0x90c] ss:$16 sps:$4 sm:$0xff]  }
 0x284   :  { %4451 = vmatprep.subr.bf16.mxu1 %v6665_v53  ;;  %v4135_v53 = vpop.f32.mrf.mxu1 }
 0x286   :  { %4409 = vmatpush1.bf16.msra.mxu0 %v6660_v5  ;;  %v6731_v5 = vld [vmem:[#allocation6 + $0xb0c] ss:$16 sps:$4 sm:$0xff]  }
 0x287   :  { %4452 = vmatpush1.bf16.msra.mxu1 %v6663_v54  ;;  %4410 = vmatprep.subr.bf16.mxu0 %v6668_v55  ;;  %v4007_v54 = vadd.f32 %v4006_v29, %v2037_v50  ;;  %v6726_v55 = vld [vmem:[#allocation6 + $0x908] ss:$16 sps:$4 sm:$0xff]  }
 0x288   :  { %4453 = vmatprep.subr.bf16.mxu1 %v6671_v56  ;;  %v7237_v56 = vpop.f32.mrf.mxu0 }
 0x28a   :  { %4411 = vmatpush1.bf16.msra.mxu0 %v6666_v57  ;;  %v6729_v57 = vld [vmem:[#allocation6 + $0xb08] ss:$16 sps:$4 sm:$0xff]  }
 0x28b   :  { %4454 = vmatpush1.bf16.msra.mxu1 %v6669_v8  ;;  %4412 = vmatprep.subr.bf16.mxu0 %v6674_v58  ;;  %v6734_v8 = vld [vmem:[#allocation9 + $0x74] ss:$8 sps:$4 sm:$0xff]   ;;  %v4011_v58 = vadd.f32 %v4010_v38, %v2037_v50  ;;  %v6783_v38 = vld [vmem:[#allocation9 + $0x160] ss:$8 sps:$4 sm:$0xff]  }
 0x28c   :  { %4455 = vmatprep.subr.bf16.mxu1 %v6677_v59  ;;  %v7239_v59 = vpop.f32.mrf.mxu1  ;;  %v6747_v50 = vld [vmem:[#allocation9 + $0x20] ss:$8 sps:$4 sm:$0xff]  }
 0x28e   :  { %4413 = vmatpush1.bf16.msra.mxu0 %v6672_v60  ;;  %v4050_v60 = vadd.f32 %v4049_v42, %v4007_v54  ;;  %v6792_v54 = vld [vmem:[#allocation9 + $0x130] ss:$8 sps:$4 sm:$0xff]  }
 0x28f   :  { %4456 = vmatpush1.bf16.msra.mxu1 %v6675_v61  ;;  %4414 = vmatprep.subr.bf16.mxu0 %v6680_v62  ;;  %v6732_v61 = vld [vmem:[#allocation9 + $0x70] ss:$8 sps:$4 sm:$0xff]   ;;  %v4096_v62 = vpop.f32.mrf.mxu0 }
 0x290   :  { %4457 = vmatprep.subr.bf16.mxu1 %v6683_v63  ;;  %v6737_v63 = vld [vmem:[#allocation9 + $0x64] ss:$8 sps:$4 sm:$0xff]  }
 0x292   :  { %4415 = vmatpush1.bf16.msra.mxu0 %v6678_v0  ;;  %v4054_v0 = vadd.f32 %v4053_v48, %v4011_v58  ;;  %v6744_v48 = vld [vmem:[#allocation9 + $0x30] ss:$8 sps:$4 sm:$0xff]   ;;  %v6795_v58 = vld [vmem:[#allocation9 + $0x120] ss:$8 sps:$4 sm:$0xff]  }
 0x293   :  { %4458 = vmatpush1.bf16.msra.mxu1 %v6681_v1  ;;  %4416 = vmatprep.subr.bf16.mxu0 %v6686_v2  ;;  %v4093_v1 = vadd.f32 %v4092_v51, %v4050_v60  ;;  %v4139_v2 = vpop.f32.mrf.mxu1  ;;  %v6752_v51 = vld [vmem:[#allocation9 + $0x14] ss:$8 sps:$4 sm:$0xff]   ;;  %v6756_v60 = vld [vmem:[#allocation9 + $0xf0] ss:$8 sps:$4 sm:$0xff]  }
 0x294   :  { %4459 = vmatprep.subr.bf16.mxu1 %v6689_v6 }
 0x296   :  { %4417 = vmatpush2.bf16.msra.mxu0 %v6684_v14  ;;  %v4097_v14 = vadd.f32 %v4096_v62, %v4054_v0  ;;  %v6761_v62 = vld [vmem:[#allocation9 + $0xe4] ss:$8 sps:$4 sm:$0xff]   ;;  %v6759_v0 = vld [vmem:[#allocation9 + $0xe0] ss:$8 sps:$4 sm:$0xff]  }
 0x297   :  { %4460 = vmatpush2.bf16.msra.mxu1 %v6687_v15  ;;  %4418 = vmatprep.subr.bf16.mxu0 %v6692_v16  ;;  %v6735_v16 = vld [vmem:[#allocation9 + $0x60] ss:$8 sps:$4 sm:$0xff]  }
 0x298   :  { %4461 = vmatprep.subr.bf16.mxu1 %v6695_v17 }
 0x29a   :  { %4419 = vmatpush2.bf16.msra.mxu0 %v6690_v18  ;;  %v6740_v18 = vld [vmem:[#allocation9 + $0x54] ss:$8 sps:$4 sm:$0xff]  }
 0x29b   :  { %4462 = vmatpush2.bf16.msra.mxu1 %v6693_v19  ;;  %4420 = vmatprep.subr.bf16.mxu0 %v6698_v3  ;;  %v4136_v19 = vadd.f32 %v4135_v53, %v4093_v1  ;;  %v6794_v53 = vld [vmem:[#allocation9 + $0x134] ss:$8 sps:$4 sm:$0xff]   ;;  %v6803_v1 = vld [vmem:[#allocation9 + $0x104] ss:$8 sps:$4 sm:$0xff]  }
 0x29c   :  { %4463 = vmatprep.subr.bf16.mxu1 %v6701_v20 }
 0x29e   :  { %4421 = vmatpush2.bf16.msra.mxu0 %v6696_v23  ;;  %v4140_v23 = vadd.f32 %v4139_v2, %v4097_v14  ;;  %v6764_v2 = vld [vmem:[#allocation9 + $0xd4] ss:$8 sps:$4 sm:$0xff]   ;;  %v2033_v14 = vrot.slane %v7233_v25, %v7132_v10 }
 0x29f   :  { %4464 = vmatpush2.bf16.msra.mxu1 %v6699_v27  ;;  %4422 = vmatprep.subr.bf16.mxu0 %v6704_v41 }
 0x2a0   :  { %4465 = vmatprep.subr.bf16.mxu1 %v6707_v28 }
 0x2a2   :  { %4423 = vmatpush2.bf16.msra.mxu0 %v6702_v30 }
 0x2a3   :  { %4466 = vmatpush2.bf16.msra.mxu1 %v6705_v31  ;;  %4424 = vmatprep.subr.bf16.mxu0 %v6710_v32  ;;  %v6741_v32 = vld [vmem:[#allocation9 + $0x40] ss:$8 sps:$4 sm:$0xff]  }
 0x2a4   :  { %4467 = vmatprep.subr.bf16.mxu1 %v6713_v33  ;;  %v6780_v33 = vld [vmem:[#allocation9 + $0x170] ss:$8 sps:$4 sm:$0xff]  }
 0x2a6   :  { %4425 = vmatpush2.bf16.msra.mxu0 %v6708_v36  ;;  %v6782_v36 = vld [vmem:[#allocation9 + $0x174] ss:$8 sps:$4 sm:$0xff]  }
 0x2a7   :  { %4468 = vmatpush2.bf16.msra.mxu1 %v6711_v43  ;;  %4426 = vmatprep.subr.bf16.mxu0 %v6716_v37  ;;  %v6746_v43 = vld [vmem:[#allocation9 + $0x34] ss:$8 sps:$4 sm:$0xff]   ;;  %v6785_v37 = vld [vmem:[#allocation9 + $0x164] ss:$8 sps:$4 sm:$0xff]  }
 0x2a8   :  { %4469 = vmatprep.subr.bf16.mxu1 %v6719_v44 }
 0x2aa   :  { %4427 = vmatpush2.bf16.msra.mxu0 %v6714_v39 }
 0x2ab   :  { %4470 = vmatpush2.bf16.msra.mxu1 %v6717_v24  ;;  %4428 = vmatprep.subr.bf16.mxu0 %v6722_v46  ;;  %v6788_v24 = vld [vmem:[#allocation9 + $0x154] ss:$8 sps:$4 sm:$0xff]   ;;  %v6749_v46 = vld [vmem:[#allocation9 + $0x24] ss:$8 sps:$4 sm:$0xff]  }
 0x2ac   :  { %4471 = vmatprep.subr.bf16.mxu1 %v6725_v49  ;;  %v6786_v49 = vld [vmem:[#allocation9 + $0x150] ss:$8 sps:$4 sm:$0xff]  }
 0x2ae   :  { %4429 = vmatpush2.bf16.msra.mxu0 %v6720_v26  ;;  %v6791_v26 = vld [vmem:[#allocation9 + $0x144] ss:$8 sps:$4 sm:$0xff]  }
 0x2af   :  { %4472 = vmatpush2.bf16.msra.mxu1 %v6723_v4  ;;  %4430 = vmatprep.subr.bf16.mxu0 %v6728_v52  ;;  %v6789_v4 = vld [vmem:[#allocation9 + $0x140] ss:$8 sps:$4 sm:$0xff]   ;;  %v6750_v52 = vld [vmem:[#allocation9 + $0x10] ss:$8 sps:$4 sm:$0xff]  }
 0x2b0   :  { %4473 = vmatprep.subr.bf16.mxu1 %v6731_v5  ;;  %v6755_v5 = vld [vmem:[#allocation9 + $0x4] ss:$8 sps:$4 sm:$0xff]  }
 0x2b2   :  { %4431 = vmatpush2.bf16.msra.mxu0 %v6726_v55  ;;  %v6753_v55 = vld [vmem:[#allocation9] ss:$8 sps:$4 sm:$0xff]  }
 0x2b3   :  { %4474 = vmatpush2.bf16.msra.mxu1 %v6729_v57  ;;  %4890 = vmatprep.subr.bf16.mxu0 %v6734_v8  ;;  %v6797_v57 = vld [vmem:[#allocation9 + $0x124] ss:$8 sps:$4 sm:$0xff]   ;;  %v6758_v8 = vld [vmem:[#allocation9 + $0xf4] ss:$8 sps:$4 sm:$0xff]  }
 0x2b4   :  { %4933 = vmatprep.subr.bf16.mxu1 %v6782_v36 }
 0x2b5   :  { %4433 = vmatmul.mubr.bf16.vlgmr.msra.gmra.mxu0 %v7202_v7  ;;  %v7242_v6 = vpop.f32.mrf.mxu0  ;;  %v7245_v15 = vpop.f32.mrf.mxu1  ;;  %v6738_v7 = vld [vmem:[#allocation9 + $0x50] ss:$8 sps:$4 sm:$0xff]  }
 0x2b6   :  { %4476 = vmatmul.mubr.bf16.vlgmr.msra.gmra.mxu1 %v7205_v9  ;;  %4891 = vmatpush1.bf16.msra.mxu0 %v6732_v61  ;;  %v6743_v9 = vld [vmem:[#allocation9 + $0x44] ss:$8 sps:$4 sm:$0xff]   ;;  %v6800_v61 = vld [vmem:[#allocation9 + $0x114] ss:$8 sps:$4 sm:$0xff]  }
 0x2b7   :  { %v4178_v17 = vpop.f32.mrf.mxu0  ;;  %4892 = vmatprep.subr.bf16.mxu0 %v6737_v63  ;;  %v4221_v3 = vpop.f32.mrf.mxu1  ;;  %4934 = vmatpush1.bf16.msra.mxu1 %v6780_v33  ;;  %v6798_v63 = vld [vmem:[#allocation9 + $0x110] ss:$8 sps:$4 sm:$0xff]   ;;  %v6773_v33 = vld [vmem:[#allocation9 + $0xa4] ss:$8 sps:$4 sm:$0xff]  }
 0x2b8   :  { %v4179_v27 = vadd.f32 %v4178_v17, %v4136_v19  ;;  %4935 = vmatprep.subr.bf16.mxu1 %v6785_v37  ;;  %v6762_v17 = vld [vmem:[#allocation9 + $0xd0] ss:$8 sps:$4 sm:$0xff]   ;;  %v4009_v19 = vadd.f32 %v7225_v34, %v2033_v14  ;;  %v6807_v34 = vld [vmem:[#allocation9 + $0x1e0] ss:$8 sps:$4 sm:$0xff]  }
 0x2b9   :  { %v7247_v20 = vpop.f32.mrf.mxu0  ;;  %v7249_v41 = vpop.f32.mrf.mxu1 }
 0x2ba   :  { %4893 = vmatpush1.bf16.msra.mxu0 %v6735_v16  ;;  %v4222_v30 = vadd.f32 %v4221_v3, %v4179_v27  ;;  %v6801_v16 = vld [vmem:[#allocation9 + $0x100] ss:$8 sps:$4 sm:$0xff]   ;;  %v6767_v3 = vld [vmem:[#allocation9 + $0xc4] ss:$8 sps:$4 sm:$0xff]   ;;  %v6804_v27 = vld [vmem:[#allocation9 + $0x1f0] ss:$8 sps:$4 sm:$0xff]  }
 0x2bb   :  { %v4182_v28 = vpop.f32.mrf.mxu0  ;;  %4894 = vmatprep.subr.bf16.mxu0 %v6740_v18  ;;  %v4225_v42 = vpop.f32.mrf.mxu1  ;;  %4936 = vmatpush1.bf16.msra.mxu1 %v6783_v38  ;;  %v6806_v18 = vld [vmem:[#allocation9 + $0x1f4] ss:$8 sps:$4 sm:$0xff]  }
 0x2bc   :  { %v4183_v29 = vadd.f32 %v4182_v28, %v4140_v23  ;;  %4937 = vmatprep.subr.bf16.mxu1 %v6788_v24  ;;  %v4005_v23 = vadd.f32 %v7221_v21, %v2033_v14  ;;  %v6809_v28 = vld [vmem:[#allocation9 + $0x1e4] ss:$8 sps:$4 sm:$0xff]   ;;  %v6812_v21 = vld [vmem:[#allocation9 + $0x1d4] ss:$8 sps:$4 sm:$0xff]  }
 0x2be   :  { %v4226_v31 = vadd.f32 %v4225_v42, %v4183_v29  ;;  %4895 = vmatpush1.bf16.msra.mxu0 %v6738_v7  ;;  %v6765_v7 = vld [vmem:[#allocation9 + $0xc0] ss:$8 sps:$4 sm:$0xff]   ;;  %v6770_v29 = vld [vmem:[#allocation9 + $0xb4] ss:$8 sps:$4 sm:$0xff]   ;;  %v4048_v42 = vadd.f32 %v7223_v22, %v4005_v23  ;;  %v6815_v22 = vld [vmem:[#allocation9 + $0x1c4] ss:$8 sps:$4 sm:$0xff]   ;;  %v2045_v23 = vrot.slane %v7233_v25, %v7141_v13 }
 0x2bf   :  { %4896 = vmatprep.subr.bf16.mxu0 %v6743_v9  ;;  %4938 = vmatpush1.bf16.msra.mxu1 %v6786_v49  ;;  %v4052_v9 = vadd.f32 %v7227_v35, %v4009_v19  ;;  %v6810_v35 = vld [vmem:[#allocation9 + $0x1d0] ss:$8 sps:$4 sm:$0xff]  }
 0x2c0   :  { %v4487_v44 = vpack.c.bf16 %v4226_v31, %v4222_v30  ;;  %4939 = vmatprep.subr.bf16.mxu1 %v6791_v26  ;;  %v6768_v31 = vld [vmem:[#allocation9 + $0xb0] ss:$8 sps:$4 sm:$0xff]   ;;  %v6819_v26 = vld [vmem:[#allocation9 + $0x1a0] ss:$8 sps:$4 sm:$0xff]  }
 0x2c1   :  { %v4095_v30 = vadd.f32 %v7237_v56, %v4052_v9  ;;  %v6816_v49 = vld [vmem:[#allocation9 + $0x1b0] ss:$8 sps:$4 sm:$0xff]  }
 0x2c2   :  { %4897 = vmatpush1.bf16.msra.mxu0 %v6741_v32  ;;  %v4491_v39 = vmax.bf16 %v7030_v40, %v4487_v44  ;;  %v4091_v32 = vadd.f32 %v7229_v45, %v4048_v42  ;;  %v6776_v44 = vld [vmem:[#allocation9 + $0x94] ss:$8 sps:$4 sm:$0xff]   ;;  %v6813_v45 = vld [vmem:[#allocation9 + $0x1c0] ss:$8 sps:$4 sm:$0xff]  }
 0x2c3   :  { %4898 = vmatprep.subr.bf16.mxu0 %v6746_v43  ;;  %4940 = vmatpush1.bf16.msra.mxu1 %v6789_v4  ;;  %v4138_v36 = vadd.f32 %v7239_v59, %v4095_v30  ;;  %v6771_v43 = vld [vmem:[#allocation9 + $0xa0] ss:$8 sps:$4 sm:$0xff]   ;;  %v6827_v4 = vld [vmem:[#allocation9 + $0x184] ss:$8 sps:$4 sm:$0xff]  }
 0x2c4   :  { %4922 = vmatprep.mubr.bf16.mxu0 %v4491_v39  ;;  %4941 = vmatprep.subr.bf16.mxu1 %v6794_v53  ;;  %v4134_v56 = vadd.f32 %v7231_v47, %v4091_v32  ;;  %v6779_v39 = vld [vmem:[#allocation9 + $0x84] ss:$8 sps:$4 sm:$0xff]   ;;  %v6777_v47 = vld [vmem:[#allocation9 + $0x80] ss:$8 sps:$4 sm:$0xff]  }
 0x2c5   :  { %v4181_v37 = vadd.f32 %v7247_v20, %v4138_v36  ;;  %v6829_v53 = vld [vmem:[#allocation12 + $0x38] sm:$0xff]  }
 0x2c6   :  { %4899 = vmatpush1.bf16.msra.mxu0 %v6744_v48  ;;  %v4177_v38 = vadd.f32 %v7242_v6, %v4134_v56  ;;  %v6774_v48 = vld [vmem:[#allocation9 + $0x90] ss:$8 sps:$4 sm:$0xff]   ;;  %v6818_v6 = vld [vmem:[#allocation9 + $0x1b4] ss:$8 sps:$4 sm:$0xff]  }
 0x2c7   :  { %4900 = vmatprep.subr.bf16.mxu0 %v6749_v46  ;;  %4942 = vmatpush1.bf16.msra.mxu1 %v6792_v54  ;;  %v4224_v59 = vadd.f32 %v7249_v41, %v4181_v37  ;;  %v6824_v41 = vld [vmem:[#allocation9 + $0x194] ss:$8 sps:$4 sm:$0xff]  }
 0x2c8   :  { %4943 = vmatprep.subr.bf16.mxu1 %v6797_v57  ;;  %v4220_v24 = vadd.f32 %v7245_v15, %v4177_v38  ;;  %v6825_v15 = vld [vmem:[#allocation9 + $0x180] ss:$8 sps:$4 sm:$0xff]   ;;  %v6831_v54 = vld [vmem:[#allocation12 + $0x30] sm:$0xff]  }
 0x2c9   :  { %v6833_v57 = vld [vmem:[#allocation12 + $0x28] sm:$0xff]  }
 0x2ca   :  { %4901 = vmatpush1.bf16.msra.mxu0 %v6747_v50  ;;  %v4486_v46 = vpack.c.bf16 %v4224_v59, %v4220_v24  ;;  %v6821_v50 = vld [vmem:[#allocation9 + $0x1a4] ss:$8 sps:$4 sm:$0xff]  }
 0x2cb   :  { %4902 = vmatprep.subr.bf16.mxu0 %v6752_v51  ;;  %4944 = vmatpush1.bf16.msra.mxu1 %v6795_v58  ;;  %v6822_v51 = vld [vmem:[#allocation9 + $0x190] ss:$8 sps:$4 sm:$0xff]   ;;  %v6835_v58 = vld [vmem:[#allocation12 + $0x20] sm:$0xff]  }
 0x2cc   :  { %4945 = vmatprep.subr.bf16.mxu1 %v6800_v61  ;;  %v4490_v20 = vmax.bf16 %v7030_v40, %v4486_v46  ;;  %v6837_v61 = vld [vmem:[#allocation12 + $0x18] sm:$0xff]  }
 0x2ce   :  { %4903 = vmatpush1.bf16.msra.mxu0 %v6750_v52  ;;  %v6828_v52 = vld [vmem:[#allocation12 + $0x78] sm:$0xff]  }
 0x2cf   :  { %4904 = vmatprep.subr.bf16.mxu0 %v6755_v5  ;;  %4946 = vmatpush1.bf16.msra.mxu1 %v6798_v63  ;;  %v6830_v5 = vld [vmem:[#allocation12 + $0x70] sm:$0xff]  }
 0x2d0   :  { %4947 = vmatprep.subr.bf16.mxu1 %v6803_v1 }
 0x2d2   :  { %4905 = vmatpush1.bf16.msra.mxu0 %v6753_v55  ;;  %v6832_v55 = vld [vmem:[#allocation12 + $0x68] sm:$0xff]  }
 0x2d3   :  { %4906 = vmatprep.subr.bf16.mxu0 %v6758_v8  ;;  %4948 = vmatpush1.bf16.msra.mxu1 %v6801_v16  ;;  %v6834_v8 = vld [vmem:[#allocation12 + $0x60] sm:$0xff]  }
 0x2d4   :  { %4949 = vmatprep.subr.bf16.mxu1 %v6806_v18 }
 0x2d6   :  { %4907 = vmatpush2.bf16.msra.mxu0 %v6756_v60  ;;  %v6836_v60 = vld [vmem:[#allocation12 + $0x58] sm:$0xff]  }
 0x2d7   :  { %4908 = vmatprep.subr.bf16.mxu0 %v6761_v62  ;;  %4950 = vmatpush2.bf16.msra.mxu1 %v6804_v27 }
 0x2d8   :  { %4951 = vmatprep.subr.bf16.mxu1 %v6809_v28 }
 0x2da   :  { %4909 = vmatpush2.bf16.msra.mxu0 %v6759_v0 }
 0x2db   :  { %4910 = vmatprep.subr.bf16.mxu0 %v6764_v2  ;;  %4952 = vmatpush2.bf16.msra.mxu1 %v6807_v34 }
 0x2dc   :  { %4953 = vmatprep.subr.bf16.mxu1 %v6812_v21 }
 0x2de   :  { %4911 = vmatpush2.bf16.msra.mxu0 %v6762_v17 }
 0x2df   :  { %4912 = vmatprep.subr.bf16.mxu0 %v6767_v3  ;;  %4954 = vmatpush2.bf16.msra.mxu1 %v6810_v35  ;;  %v2041_v3 = vrot.slane %v7233_v25, %v7135_v11 }
 0x2e0   :  { %4955 = vmatprep.subr.bf16.mxu1 %v6815_v22 }
 0x2e2   :  { %4913 = vmatpush2.bf16.msra.mxu0 %v6765_v7 }
 0x2e3   :  { %4914 = vmatprep.subr.bf16.mxu0 %v6770_v29  ;;  %4956 = vmatpush2.bf16.msra.mxu1 %v6813_v45 }
 0x2e4   :  { %4957 = vmatprep.subr.bf16.mxu1 %v6818_v6 }
 0x2e6   :  { %4915 = vmatpush2.bf16.msra.mxu0 %v6768_v31 }
 0x2e7   :  { %4916 = vmatprep.subr.bf16.mxu0 %v6773_v33  ;;  %4958 = vmatpush2.bf16.msra.mxu1 %v6816_v49 }
 0x2e8   :  { %4959 = vmatprep.subr.bf16.mxu1 %v6821_v50 }
 0x2ea   :  { %4917 = vmatpush2.bf16.msra.mxu0 %v6771_v43 }
 0x2eb   :  { %4918 = vmatprep.subr.bf16.mxu0 %v6776_v44  ;;  %4960 = vmatpush2.bf16.msra.mxu1 %v6819_v26 }
 0x2ec   :  { %4961 = vmatprep.subr.bf16.mxu1 %v6824_v41 }
 0x2ee   :  { %4919 = vmatpush2.bf16.msra.mxu0 %v6774_v48 }
 0x2ef   :  { %4920 = vmatprep.subr.bf16.mxu0 %v6779_v39  ;;  %4962 = vmatpush2.bf16.msra.mxu1 %v6822_v51 }
 0x2f0   :  { %4963 = vmatprep.subr.bf16.mxu1 %v6827_v4 }
 0x2f2   :  { %4921 = vmatpush2.bf16.msra.mxu0 %v6777_v47 }
 0x2f3   :  { %4964 = vmatpush2.bf16.msra.mxu1 %v6825_v15  ;;  %5826 = vmatprep.subr.bf16.mxu0 %v6828_v52 }
 0x2f5   :  { %4923 = vmatmul.mubr.bf16.vlgmr.msra.gmra.mxu0 %v4490_v20  ;;  %v4262_v62 = vpop.f32.mrf.mxu0  ;;  %v4305_v63 = vpop.f32.mrf.mxu1 }
 0x2f6   :  { %5827 = vmatpush3.bf16.msra.mxu0 %v6829_v53  ;;  %v4263_v28 = vadd.f32 %v4262_v62, %v2041_v3 }
 0x2f7   :  { %5828 = vmatprep.subr.bf16.mxu0 %v6830_v5  ;;  %v4264_v0 = vpop.f32.mrf.mxu0  ;;  %v4307_v1 = vpop.f32.mrf.mxu1 }
 0x2f8   :  { %v4265_v9 = vadd.f32 %v4264_v0, %v2045_v23  ;;  %v4306_v31 = vadd.f32 %v4305_v63, %v4263_v28  ;;  %v4558_v63 = vld [vmem:[#allocation10] sm:$0x3] }
 0x2f9   :  { %v4266_v2 = vpop.f32.mrf.mxu0  ;;  %v4309_v14 = vpop.f32.mrf.mxu1 }
 0x2fa   :  { %5829 = vmatpush3.bf16.msra.mxu0 %v6831_v54  ;;  %v4267_v29 = vadd.f32 %v4266_v2, %v2041_v3  ;;  %v4308_v21 = vadd.f32 %v4307_v1, %v4265_v9  ;;  %v6838_v54 = vld [vmem:[#allocation12 + $0x50] sm:$0xff]   ;;  %v4563_v1 = vrot.slane %v4558_v63, %v7132_v10 }
 0x2fb   :  { %5830 = vmatprep.subr.bf16.mxu0 %v6832_v55  ;;  %v4268_v16 = vpop.f32.mrf.mxu0  ;;  %v4311_v17 = vpop.f32.mrf.mxu1  ;;  %v6839_v55 = vld [vmem:[#allocation12 + $0x10] sm:$0xff]  }
 0x2fc   :  { %v4269_v30 = vadd.f32 %v4268_v16, %v2045_v23  ;;  %v4310_v32 = vadd.f32 %v4309_v14, %v4267_v29  ;;  %v4567_v14 = vrot.slane %v4558_v63, %v7138_v12 }
 0x2fe   :  { %5831 = vmatpush3.bf16.msra.mxu0 %v6833_v57  ;;  %v4312_v35 = vadd.f32 %v4311_v17, %v4269_v30  ;;  %v6840_v57 = vld [vmem:[#allocation12 + $0x48] sm:$0xff]  }
 0x2ff   :  { %5832 = vmatprep.subr.bf16.mxu0 %v6834_v8  ;;  %v6841_v8 = vld [vmem:[#allocation12 + $0x8] sm:$0xff]  }
 0x302   :  { %5833 = vmatpush3.bf16.msra.mxu0 %v6835_v58  ;;  %v6842_v58 = vld [vmem:[#allocation12 + $0x40] sm:$0xff]  }
 0x303   :  { %5834 = vmatprep.subr.bf16.mxu0 %v6836_v60  ;;  %v6843_v60 = vld [vmem:[#allocation12] sm:$0xff]  }
 0x306   :  { %5835 = vmatpush3.bf16.msra.mxu0 %v6837_v61 }
 0x307   :  { %5836 = vmatprep.subr.bf16.mxu0 %v6838_v54 }
 0x30a   :  { %5837 = vmatpush3.bf16.msra.mxu0 %v6839_v55 }
 0x30b   :  { %5838 = vmatprep.subr.bf16.mxu0 %v6840_v57 }
 0x30e   :  { %5839 = vmatpush3.bf16.msra.mxu0 %v6841_v8 }
 0x30f   :  { %5840 = vmatprep.subr.bf16.mxu0 %v6842_v58 }
 0x312   :  { %5841 = vmatpush3.bf16.msra.mxu0 %v6843_v60 }
 0x335   :  { %v4348_v18 = vpop.f32.mrf.mxu0 }
 0x336   :  { %v4391_v19 = vpop.f32.mrf.mxu1  ;;  %v4349_v33 = vadd.f32 %v4348_v18, %v4306_v31 }
 0x337   :  { %v4350_v27 = vpop.f32.mrf.mxu0 }
 0x338   :  { %v4393_v7 = vpop.f32.mrf.mxu1  ;;  %v4351_v43 = vadd.f32 %v4350_v27, %v4308_v21  ;;  %v4392_v25 = vadd.f32 %v4391_v19, %v4349_v33  ;;  %v5809_v21 = vld [vmem:[#allocation13] ss:$0 sm:$0xff] }
 0x339   :  { %v4352_v42 = vpop.f32.mrf.mxu0 }
 0x33a   :  { %v4395_v34 = vpop.f32.mrf.mxu1  ;;  %v4353_v22 = vadd.f32 %v4352_v42, %v4310_v32  ;;  %v4394_v38 = vadd.f32 %v4393_v7, %v4351_v43 }
 0x33b   :  { %v4354_v36 = vpop.f32.mrf.mxu0 }
 0x33c   :  { %v4397_v11 = vpop.f32.mrf.mxu1  ;;  %v4355_v37 = vadd.f32 %v4354_v36, %v4312_v35  ;;  %v4396_v45 = vadd.f32 %v4395_v34, %v4353_v22 }
 0x33e   :  { %v4398_v24 = vadd.f32 %v4397_v11, %v4355_v37 }
 0x375   :  { %v4434_v56 = vpop.f32.mrf.mxu0 }
 0x376   :  { %v4477_v13 = vpop.f32.mrf.mxu1  ;;  %v4435_v59 = vadd.f32 %v4434_v56, %v4392_v25 }
 0x377   :  { %v4436_v44 = vpop.f32.mrf.mxu0 }
 0x378   :  { %v4479_v48 = vpop.f32.mrf.mxu1  ;;  %v4437_v47 = vadd.f32 %v4436_v44, %v4394_v38  ;;  %v4478_v26 = vadd.f32 %v4477_v13, %v4435_v59 }
 0x379   :  { %v4438_v39 = vpop.f32.mrf.mxu0 }
 0x37a   :  { %v4439_v46 = vadd.f32 %v4438_v39, %v4396_v45  ;;  %v4481_v20 = vpop.f32.mrf.mxu1  ;;  %v4480_v51 = vadd.f32 %v4479_v48, %v4437_v47 }
 0x37b   :  { %v4440_v6 = vpop.f32.mrf.mxu0 }
 0x37c   :  { %v4482_v49 = vadd.f32 %v4481_v20, %v4439_v46  ;;  %v4441_v50 = vadd.f32 %v4440_v6, %v4398_v24  ;;  %v4483_v41 = vpop.f32.mrf.mxu1 }
 0x37e   :  { %v4484_v15 = vadd.f32 %v4483_v41, %v4441_v50  ;;  %v4488_v4 = vpack.c.bf16 %v4482_v49, %v4478_v26 }
 0x380   :  { %v4489_v52 = vpack.c.bf16 %v4484_v15, %v4480_v51  ;;  %v4492_v5 = vmax.bf16 %v7030_v40, %v4488_v4 }
 0x382   :  { %v4493_v53 = vmax.bf16 %v7030_v40, %v4489_v52 }
 0x384   :  { %4965 = vmatprep.mubr.bf16.mxu1 %v4493_v53 }
 0x385   :  { %4966 = vmatmul.mubr.bf16.vlgmr.msra.gmra.mxu1 %v4492_v5 }
 0x3b5   :  { %v4924_v61 = vpop.f32.mrf.mxu0 }
 0x3b6   :  { %v4925_v19 = vadd.f32 %v4924_v61, %v4563_v1 }
 0x3b7   :  { %v4926_v62 = vpop.f32.mrf.mxu0 }
 0x3b8   :  { %v4927_v23 = vadd.f32 %v4926_v62, %v4567_v14 }
 0x3b9   :  { %v4928_v0 = vpop.f32.mrf.mxu0 }
 0x3ba   :  { %v4929_v18 = vadd.f32 %v4928_v0, %v4563_v1 }
 0x3bb   :  { %v4930_v16 = vpop.f32.mrf.mxu0 }
 0x3bc   :  { %v4931_v27 = vadd.f32 %v4930_v16, %v4567_v14 }
 0x445   :  { %v4967_v2 = vpop.f32.mrf.mxu1 }
 0x446   :  { %v4968_v28 = vadd.f32 %v4967_v2, %v4925_v19 }
 0x447   :  { %v4969_v17 = vpop.f32.mrf.mxu1 }
 0x448   :  { %v4970_v29 = vadd.f32 %v4969_v17, %v4927_v23 }
 0x449   :  { %v4971_v3 = vpop.f32.mrf.mxu1 }
 0x44a   :  { %v4972_v7 = vadd.f32 %v4971_v3, %v4929_v18 }
 0x44b   :  { %v4973_v9 = vpop.f32.mrf.mxu1 }
 0x44c   :  { %v4974_v42 = vadd.f32 %v4973_v9, %v4931_v27  ;;  %v4976_v30 = vpack.c.bf16 %v4972_v7, %v4968_v28 }
 0x44e   :  { %v4977_v34 = vpack.c.bf16 %v4974_v42, %v4970_v29  ;;  %v4978_v10 = vmax.bf16 %v7030_v40, %v4976_v30 }
 0x450   :  { %v4979_v31 = vmax.bf16 %v7030_v40, %v4977_v34 }
 0x452   :  { %5147 = vmatprep.mubr.bf16.mxu0 %v4979_v31 }
 0x453   :  { %5148 = vmatmul.mubr.bf16.vlgmr.msra.gmra.mxu0 %v4978_v10 }
 0x513   :  { %v5842_v12 = vpop.f32.mrf.mxu0 }
 0x515   :  { %v5843_v32 = vpop.f32.mrf.mxu0 }
 0x516   :  { %v5844_v33 = vadd.f32 %v5843_v32, %v5842_v12 }
 0x517   :  { %v5845_v36 = vpop.f32.mrf.mxu0 }
 0x518   :  { %v5150_v35 = vadd.f32 %v5844_v33, %v5809_v21 }
 0x519   :  { %v5846_v43 = vpop.f32.mrf.mxu0 }
 0x51a   :  { %5156 = vst [vmem:[%s7292_s9] sm:$0xff] %v5150_v35  ;;  %v5847_v22 = vadd.f32 %v5846_v43, %v5845_v36 }
 0x51c   :  { %v5153_v11 = vadd.f32 %v5847_v22, %v5809_v21 }
 0x51e   :  { %5157 = vst [vmem:[%s7292_s9 + $0x8] sm:$0xff] %v5153_v11 }
 0x51f   :  { %5162 = vsyncpa [#allocation3], 1 }
 0x520   :  { %5163 = vsyncpa [#allocation5], 1 }
 0x521   :  { %5164 = vsyncpa [#allocation8], 1 }
 0x522   :  { %5165 = vsyncpa [#allocation11], 1 }
 0x523   :  { %5166 = vsyncpa [#allocation14], 1 }

</bundles_post_ra>
